<compile_context>
chip_gen: v5e
topology: v5e:2x2
jax: 0.10.0
libtpu: 0.0.40
codegen_flags: <defaults>
</compile_context>

<pallas_src>
import math

import jax
import jax.numpy as jnp
from jax.experimental import pallas as pl
from jax.experimental.pallas import tpu as pltpu

# ---------------- configuration (small synthetic shapes) ----------------
B = 2              # real batch
BP = 8             # sublane-padded batch (8 = vreg sublane count)
V = 8              # a_n_node (vertices)
M = 8              # a_n_type (node feature dim, m_dim)
E_TOTAL = 4        # b_n_type (bond types); GCN uses E_TOTAL - 1 of them
E = E_TOTAL - 1
U0, U1 = 16, 32    # graph_conv_dim
AUX = 32           # aux_dim
LIN0 = 32          # enc_linear_dim = [32]
N_VOCAB = 20
D_EMB = 16
Q_DH = 32          # encoder GRU hidden (num_layers=1, unidirectional)
D_Z = 16           # latent dim
D_DH = 32          # decoder GRU hidden
T = 10             # sequence length (equal-length batch)
PAD, BOS, EOS = 0, 1, 2

# fused node-projection column offsets: [wa0 | wl0 | wa1_n | wl1_n | wi_n | wj_n]
_N_A0 = 0                      # wa0   : E*U0 = 48
_N_L0 = _N_A0 + E * U0         # wl0   : U0   = 16
_N_A1 = _N_L0 + U0             # wa1_n : E*U1 = 96
_N_L1 = _N_A1 + E * U1         # wl1_n : U1   = 32
_N_I = _N_L1 + U1              # wi_n  : AUX  = 32
_N_J = _N_I + AUX              # wj_n  : AUX  = 32
_N_TOT = _N_J + AUX            # 256 columns total

WEIGHT_ORDER = [
    'w_node', 'b_node', 'w_h0', 'w_h1', 'wd', 'bd',
    'w_x', 'b_x', 'enc_whh', 'enc_bhh',
    'w_mulv', 'b_mulv',
    'dec_wlat', 'dec_blat', 'dec_wih_z', 'dec_whh', 'dec_bhh',
    'dec_wfc', 'dec_bfc',
]


# ---------------------------------------------------------------------------
# single fused kernel
# ---------------------------------------------------------------------------
def gvae_fused_kernel(
    node_ref, ablk_ref, sel_ref, xflat_ref, eps_ref, tgt_ref, bmask_ref,
    w_node_ref, b_node_ref, w_h0_ref, w_h1_ref, wd_ref, bd_ref,
    w_x_ref, b_x_ref, enc_whh_ref, enc_bhh_ref,
    w_mulv_ref, b_mulv_ref,
    dec_wlat_ref, dec_blat_ref, dec_wih_z_ref, dec_whh_ref, dec_bhh_ref,
    dec_wfc_ref, dec_bfc_ref,
    out_ref,
    hs_ref,                      # VMEM scratch: [(T-1)*BP, D_DH] decoder states
):
    f32 = jnp.float32

    def dot(a, b):
        return jnp.dot(a, b, preferred_element_type=f32)

    node = node_ref[...]                     # [BP*V, M]
    ablk = ablk_ref[...]                     # [E, BP*V, BP*V] batch-block-diag adjacency

    # -------- single fused node projection (6 logical matmuls -> 1) --------
    NP = dot(node, w_node_ref[...]) + b_node_ref[...]            # [BP*V, 256]

    # -------- GCN layer 0 (E block-diag adjacency matmuls) -----------------
    msg0 = dot(ablk[0], NP[:, _N_A0:_N_A0 + U0])
    for e in range(1, E):
        msg0 = msg0 + dot(ablk[e], NP[:, _N_A0 + e * U0:_N_A0 + (e + 1) * U0])
    h0 = jnp.tanh(msg0 + NP[:, _N_L0:_N_L0 + U0])                 # [BP*V, U0]

    # -------- GCN layer 1 (annotations = [node, h0] via fused split weights)
    HP0 = dot(h0, w_h0_ref[...])                                  # [BP*V, 128] = wa1_h|wl1_h
    H1 = NP[:, _N_A1:_N_A1 + E * U1] + HP0[:, 0:E * U1]           # [BP*V, 96]
    msg1 = dot(ablk[0], H1[:, 0:U1])
    for e in range(1, E):
        msg1 = msg1 + dot(ablk[e], H1[:, e * U1:(e + 1) * U1])
    h1 = jnp.tanh(msg1 + NP[:, _N_L1:_N_L1 + U1] + HP0[:, E * U1:E * U1 + U1])

    # -------- gated aggregation (annotations = [node, h1]) -----------------
    HP1 = dot(h1, w_h1_ref[...])                                  # [BP*V, 64] = wi_h|wj_h
    gi = jax.nn.sigmoid(NP[:, _N_I:_N_I + AUX] + HP1[:, 0:AUX])
    gj = jnp.tanh(NP[:, _N_J:_N_J + AUX] + HP1[:, AUX:2 * AUX])
    prod = gi * gj                                                # [BP*V, AUX]
    agg = jnp.tanh(dot(sel_ref[...], prod))                       # [BP, AUX] per-graph sum
    hidden1 = jnp.tanh(dot(agg, wd_ref[...]) + bd_ref[...])       # [BP, LIN0]

    # -------- shared input projection for encoder + decoder GRU ------------
    Xall = dot(xflat_ref[...], w_x_ref[...]) + b_x_ref[...]       # [T*BP, 192]
    Xenc = Xall[:, 0:3 * Q_DH]                                    # [T*BP, 96]
    Xdec = Xall[:, 3 * Q_DH:3 * Q_DH + 3 * D_DH]                  # [T*BP, 96]

    # -------- encoder GRU (fused gates, one sigmoid per step) --------------
    H = Q_DH
    enc_whh = enc_whh_ref[...]
    enc_bhh = enc_bhh_ref[...]
    h = jnp.zeros((BP, H), f32)
    for t in range(T):                                            # fully unrolled
        gi_t = Xenc[t * BP:(t + 1) * BP, :]
        gh_t = dot(h, enc_whh) + enc_bhh
        rz = jax.nn.sigmoid(gi_t[:, 0:2 * H] + gh_t[:, 0:2 * H])
        n = jnp.tanh(gi_t[:, 2 * H:3 * H] + rz[:, 0:H] * gh_t[:, 2 * H:3 * H])
        zg = rz[:, H:2 * H]
        h = (1.0 - zg) * n + zg * h
    h_enc = h                                                     # [BP, Q_DH]

    # -------- latent: fused mu|logvar head, reparameterize, masked KL ------
    hcat = jnp.concatenate([h_enc, hidden1], axis=1)              # [BP, Q_DH+LIN0]
    ml = dot(hcat, w_mulv_ref[...]) + b_mulv_ref[...]             # [BP, 2*D_Z]
    mu = ml[:, 0:D_Z]
    lv = ml[:, D_Z:2 * D_Z]
    z = mu + jnp.exp(0.5 * lv) * eps_ref[...]                     # [BP, D_Z]
    bmask = bmask_ref[...]                                        # [BP, 1]
    kl_row = jnp.sum(jnp.exp(lv) + mu * mu - 1.0 - lv, axis=1, keepdims=True)
    kl = 0.5 * jnp.sum(kl_row * bmask, axis=0, keepdims=True) / B  # [1, 1]

    # -------- decoder GRU: only the h_dec update is serial -----------------
    Hd = D_DH
    h_dec = dot(z, dec_wlat_ref[...]) + dec_blat_ref[...]         # [BP, D_DH]
    zproj = dot(z, dec_wih_z_ref[...])                            # loop-invariant
    dec_whh = dec_whh_ref[...]
    dec_bhh = dec_bhh_ref[...]
    for t in range(T - 1):                                        # fully unrolled
        gi_t = Xdec[t * BP:(t + 1) * BP, :] + zproj
        gh_t = dot(h_dec, dec_whh) + dec_bhh
        rz = jax.nn.sigmoid(gi_t[:, 0:2 * Hd] + gh_t[:, 0:2 * Hd])
        n = jnp.tanh(gi_t[:, 2 * Hd:3 * Hd] + rz[:, 0:Hd] * gh_t[:, 2 * Hd:3 * Hd])
        zg = rz[:, Hd:2 * Hd]
        h_dec = (1.0 - zg) * n + zg * h_dec
        hs_ref[t * BP:(t + 1) * BP, :] = h_dec                    # off the critical path

    # -------- one batched FC + masked cross-entropy ------------------------
    logits = dot(hs_ref[...], dec_wfc_ref[...]) + dec_bfc_ref[...]  # [(T-1)*BP, N_VOCAB]
    tgt = tgt_ref[...]                                              # [(T-1)*BP, 1] int32
    vocab_iota = jax.lax.broadcasted_iota(jnp.int32, ((T - 1) * BP, N_VOCAB), 1)
    onehot = (vocab_iota == tgt).astype(f32)
    valid = (tgt != PAD).astype(f32)                                # padded rows -> 0
    mx = jnp.max(logits, axis=-1, keepdims=True)
    lse = mx + jnp.log(jnp.sum(jnp.exp(logits - mx), axis=-1, keepdims=True))
    picked = jnp.sum(logits * onehot, axis=-1, keepdims=True)
    total = jnp.sum((lse - picked) * valid, axis=0, keepdims=True)  # [1, 1]
    count = jnp.maximum(jnp.sum(valid, axis=0, keepdims=True), 1.0)
    recon = total / count                                           # [1, 1]

    # coalesced single store: [kl, recon]
    out_ref[...] = jnp.concatenate([kl, recon], axis=1)             # [1, 2]


# ---------------------------------------------------------------------------
# wrapper
# ---------------------------------------------------------------------------
@jax.jit
def gvae_forward(x_tokens, bond, node, adj_unused, params, eps_key):
    del adj_unused                                    # reference forward never uses `adj`
    f32 = jnp.float32
    pad_b = BP - B

    # ---- pad batch to a sublane multiple (extra rows fully masked) ----
    x_pad = jnp.concatenate(
        [x_tokens.astype(jnp.int32), jnp.full((pad_b, T), PAD, jnp.int32)], axis=0)
    bond_pad = jnp.concatenate(
        [bond.astype(f32), jnp.zeros((pad_b,) + bond.shape[1:], f32)], axis=0)
    node_pad = jnp.concatenate(
        [node.astype(f32), jnp.zeros((pad_b,) + node.shape[1:], f32)], axis=0)

    # adj[:, :-1]  -> batch-block-diagonal per edge type: [E, BP*V, BP*V]
    adj = bond_pad[:, :E, :, :]                                           # [BP, E, V, V]
    ablk = jnp.einsum('bc,beij->ebicj', jnp.eye(BP, dtype=f32), adj)
    ablk = ablk.reshape(E, BP * V, BP * V)

    node_flat = node_pad.reshape(BP * V, M)

    # per-graph vertex-sum selection matrix (precomputed constant)
    sel = jnp.kron(jnp.eye(BP, dtype=f32), jnp.ones((1, V), f32))         # [BP, BP*V]

    # embedding gather + time-major flatten (rows per step are 8-aligned)
    x_emb = jnp.take(params['emb'], x_pad, axis=0)                        # [BP, T, D_EMB]
    xflat = jnp.transpose(x_emb, (1, 0, 2)).reshape(T * BP, D_EMB)

    eps = jax.random.normal(eps_key, (BP, D_Z), dtype=f32)
    tgt = jnp.transpose(x_pad[:, 1:], (1, 0)).reshape((T - 1) * BP, 1)    # [(T-1)*BP, 1]
    bmask = (jnp.arange(BP, dtype=jnp.int32) < B).astype(f32).reshape(BP, 1)

    args = [node_flat, ablk, sel, xflat, eps, tgt, bmask] + [params[k] for k in WEIGHT_ORDER]
    out = pl.pallas_call(
        gvae_fused_kernel,
        out_shape=jax.ShapeDtypeStruct((1, 2), jnp.float32),
        scratch_shapes=[pltpu.VMEM(((T - 1) * BP, D_DH), jnp.float32)],
    )(*args)
    return out[0, 0], out[0, 1]


# ---------------------------------------------------------------------------
# deterministic parameter init (PyTorch-style uniform(-1/sqrt(fan), ..))
# stored directly in the fused / split layouts the kernel expects.
# ---------------------------------------------------------------------------
def _uniform(key, shape, fan):
    bound = 1.0 / math.sqrt(fan)
    return jax.random.uniform(key, shape, jnp.float32, -bound, bound)


def _linear(key, fan_in, fan_out):
    kw, kb = jax.random.split(key)
    return _uniform(kw, (fan_in, fan_out), fan_in), _uniform(kb, (1, fan_out), fan_in)


def _linear_split(key, fan_a, fan_b, fan_out):
    kw, kb = jax.random.split(key)
    fan_in = fan_a + fan_b
    w = _uniform(kw, (fan_in, fan_out), fan_in)
    b = _uniform(kb, (1, fan_out), fan_in)
    return w[:fan_a], w[fan_a:], b


def _edge_linear_cat(key, fan_in, fan_out, n_edge):
    kw, kb = jax.random.split(key)
    w = _uniform(kw, (n_edge, fan_in, fan_out), fan_in)
    b = _uniform(kb, (n_edge, 1, fan_out), fan_in)
    return (jnp.transpose(w, (1, 0, 2)).reshape(fan_in, n_edge * fan_out),
            b.reshape(1, n_edge * fan_out))


def _edge_linear_split(key, fan_a, fan_b, fan_out, n_edge):
    kw, kb = jax.random.split(key)
    fan_in = fan_a + fan_b
    w = _uniform(kw, (n_edge, fan_in, fan_out), fan_in)
    b = _uniform(kb, (n_edge, 1, fan_out), fan_in)
    wa = jnp.transpose(w[:, :fan_a, :], (1, 0, 2)).reshape(fan_a, n_edge * fan_out)
    wb = jnp.transpose(w[:, fan_a:, :], (1, 0, 2)).reshape(fan_b, n_edge * fan_out)
    return wa, wb, b.reshape(1, n_edge * fan_out)


def _gru_fused(key, d_in, d_h):
    # fused gate layout: [d_in, 3*d_h] / [d_h, 3*d_h], gate order r, z, n
    k1, k2, k3, k4 = jax.random.split(key, 4)
    wih = _uniform(k1, (d_in, 3 * d_h), d_h)
    whh = _uniform(k2, (d_h, 3 * d_h), d_h)
    bih = _uniform(k3, (1, 3 * d_h), d_h)
    bhh = _uniform(k4, (1, 3 * d_h), d_h)
    return wih, bih, whh, bhh


def init_params(key):
    ks = jax.random.split(key, 16)
    p = {}
    # graph encoder pieces
    wa0, ba0 = _edge_linear_cat(ks[0], M, U0, E)
    wl0, bl0 = _linear(ks[1], M, U0)
    wa1_n, wa1_h, ba1 = _edge_linear_split(ks[2], M, U0, U1, E)      # annot = [node, h0]
    wl1_n, wl1_h, bl1 = _linear_split(ks[3], M, U0, U1)
    wi_n, wi_h, bi = _linear_split(ks[4], M, U1, AUX)                # annot = [node, h1]
    wj_n, wj_h, bj = _linear_split(ks[5], M, U1, AUX)
    # fused projections
    p['w_node'] = jnp.concatenate([wa0, wl0, wa1_n, wl1_n, wi_n, wj_n], axis=1)   # [M, 256]
    p['b_node'] = jnp.concatenate([ba0, bl0, ba1, bl1, bi, bj], axis=1)           # [1, 256]
    p['w_h0'] = jnp.concatenate([wa1_h, wl1_h], axis=1)                           # [U0, 128]
    p['w_h1'] = jnp.concatenate([wi_h, wj_h], axis=1)                             # [U1, 64]
    p['wd'], p['bd'] = _linear(ks[6], AUX, LIN0)

    emb = jax.random.normal(ks[7], (N_VOCAB, D_EMB), jnp.float32) * 0.1
    p['emb'] = emb.at[PAD].set(0.0)

    enc_wih, enc_bih, enc_whh, enc_bhh = _gru_fused(ks[8], D_EMB, Q_DH)
    p['enc_whh'], p['enc_bhh'] = enc_whh, enc_bhh

    # fused mu|logvar head over h_cat = [h_enc, hidden1]
    wmu, bmu = _linear(ks[9], Q_DH + LIN0, D_Z)
    wlv, blv = _linear(ks[10], Q_DH + LIN0, D_Z)
    p['w_mulv'] = jnp.concatenate([wmu, wlv], axis=1)                # [64, 2*D_Z]
    p['b_mulv'] = jnp.concatenate([bmu, blv], axis=1)

    p['dec_wlat'], p['dec_blat'] = _linear(ks[11], D_Z, D_DH)
    dec_wih, dec_bih, dec_whh, dec_bhh = _gru_fused(ks[12], D_EMB + D_Z, D_DH)
    p['dec_wih_z'] = dec_wih[D_EMB:]                                 # [D_Z, 3*D_DH]
    p['dec_whh'], p['dec_bhh'] = dec_whh, dec_bhh
    # fused x-input projection feeding BOTH GRUs: cols 0:96 encoder, 96:192 decoder
    p['w_x'] = jnp.concatenate([enc_wih, dec_wih[:D_EMB]], axis=1)   # [D_EMB, 192]
    p['b_x'] = jnp.concatenate([enc_bih, dec_bih], axis=1)           # [1, 192]

    p['dec_wfc'], p['dec_bfc'] = _linear(ks[13], D_DH, N_VOCAB)
    return p


if __name__ == "__main__":
    key = jax.random.PRNGKey(0)
    k_param, k_tok, k_bond, k_node, k_eps = jax.random.split(key, 5)
    params = init_params(k_param)

    # token sequences: <bos> body... <eos>, equal lengths (no pads)
    body = jax.random.randint(k_tok, (B, T - 2), 3, N_VOCAB).astype(jnp.int32)
    x_tokens = jnp.concatenate(
        [jnp.full((B, 1), BOS, jnp.int32), body, jnp.full((B, 1), EOS, jnp.int32)], axis=1)

    bond = jax.nn.softmax(jax.random.normal(k_bond, (B, E_TOTAL, V, V)), axis=1).astype(jnp.float32)
    node = jax.nn.one_hot(jax.random.randint(k_node, (B, V), 0, M), M, dtype=jnp.float32)
    adj = (jnp.sum(bond[:, :E], axis=1) > 0.5).astype(jnp.float32)  # unused, signature parity

    kl_loss, recon_loss = gvae_forward(x_tokens, bond, node, adj, params, k_eps)
    jax.block_until_ready((kl_loss, recon_loss))
    assert kl_loss.shape == () and recon_loss.shape == ()
    assert bool(jnp.isfinite(kl_loss)) and bool(jnp.isfinite(recon_loss))
    print("KERNEL_OK")
</pallas_src>

<mosaic_0001>
module attributes {stable_mosaic.version = 11 : i64} {
  func.func @gvae_fused_kernel(%arg0: memref<64x8xf32, #tpu.memory_space<vmem>>, %arg1: memref<3x64x64xf32, #tpu.memory_space<vmem>>, %arg2: memref<8x64xf32, #tpu.memory_space<vmem>>, %arg3: memref<80x16xf32, #tpu.memory_space<vmem>>, %arg4: memref<8x16xf32, #tpu.memory_space<vmem>>, %arg5: memref<72x1xi32, #tpu.memory_space<vmem>>, %arg6: memref<8x1xf32, #tpu.memory_space<vmem>>, %arg7: memref<8x256xf32, #tpu.memory_space<vmem>>, %arg8: memref<1x256xf32, #tpu.memory_space<vmem>>, %arg9: memref<16x128xf32, #tpu.memory_space<vmem>>, %arg10: memref<32x64xf32, #tpu.memory_space<vmem>>, %arg11: memref<32x32xf32, #tpu.memory_space<vmem>>, %arg12: memref<1x32xf32, #tpu.memory_space<vmem>>, %arg13: memref<16x192xf32, #tpu.memory_space<vmem>>, %arg14: memref<1x192xf32, #tpu.memory_space<vmem>>, %arg15: memref<32x96xf32, #tpu.memory_space<vmem>>, %arg16: memref<1x96xf32, #tpu.memory_space<vmem>>, %arg17: memref<64x32xf32, #tpu.memory_space<vmem>>, %arg18: memref<1x32xf32, #tpu.memory_space<vmem>>, %arg19: memref<16x32xf32, #tpu.memory_space<vmem>>, %arg20: memref<1x32xf32, #tpu.memory_space<vmem>>, %arg21: memref<16x96xf32, #tpu.memory_space<vmem>>, %arg22: memref<32x96xf32, #tpu.memory_space<vmem>>, %arg23: memref<1x96xf32, #tpu.memory_space<vmem>>, %arg24: memref<32x20xf32, #tpu.memory_space<vmem>>, %arg25: memref<1x20xf32, #tpu.memory_space<vmem>>, %arg26: memref<1x2xf32, #tpu.memory_space<vmem>>, %arg27: memref<72x32xf32, #tpu.memory_space<vmem>>) attributes {dimension_semantics = [], scalar_prefetch = 0 : i64, scratch_operands = 1 : i64, tpu.core_type = #tpu.core_type<tc>} {
    %c0 = arith.constant 0 : index
    %c0_0 = arith.constant 0 : index
    %0 = vector.load %arg0[%c0, %c0_0] : memref<64x8xf32, #tpu.memory_space<vmem>>, vector<64x8xf32>
    %c0_1 = arith.constant 0 : index
    %c0_2 = arith.constant 0 : index
    %c0_3 = arith.constant 0 : index
    %1 = vector.load %arg1[%c0_1, %c0_2, %c0_3] : memref<3x64x64xf32, #tpu.memory_space<vmem>>, vector<3x64x64xf32>
    %c0_4 = arith.constant 0 : index
    %c0_5 = arith.constant 0 : index
    %2 = vector.load %arg7[%c0_4, %c0_5] : memref<8x256xf32, #tpu.memory_space<vmem>>, vector<8x256xf32>
    %cst = arith.constant dense<0.000000e+00> : vector<64x256xf32>
    %3 = tpu.matmul %0, %2, %cst {dimension_numbers = #tpu.dot_dimension_numbers<[1], [0], [0], [1], [0, 0, 1, 1], [], []>} : vector<64x8xf32>, vector<8x256xf32>, vector<64x256xf32> -> vector<64x256xf32>
    %c0_6 = arith.constant 0 : index
    %c0_7 = arith.constant 0 : index
    %4 = vector.load %arg8[%c0_6, %c0_7] : memref<1x256xf32, #tpu.memory_space<vmem>>, vector<1x256xf32>
    %5 = vector.broadcast %4 : vector<1x256xf32> to vector<64x256xf32>
    %6 = arith.addf %3, %5 : vector<64x256xf32>
    %7 = vector.extract_strided_slice %1 {offsets = [0, 0, 0], sizes = [1, 64, 64], strides = [1, 1, 1]} : vector<3x64x64xf32> to vector<1x64x64xf32>
    %8 = vector.shape_cast %7 : vector<1x64x64xf32> to vector<64x64xf32>
    %9 = vector.extract_strided_slice %6 {offsets = [0, 0], sizes = [64, 16], strides = [1, 1]} : vector<64x256xf32> to vector<64x16xf32>
    %cst_8 = arith.constant dense<0.000000e+00> : vector<64x16xf32>
    %10 = tpu.matmul %8, %9, %cst_8 {dimension_numbers = #tpu.dot_dimension_numbers<[1], [0], [0], [1], [0, 0, 1, 1], [], []>} : vector<64x64xf32>, vector<64x16xf32>, vector<64x16xf32> -> vector<64x16xf32>
    %11 = vector.extract_strided_slice %1 {offsets = [1, 0, 0], sizes = [1, 64, 64], strides = [1, 1, 1]} : vector<3x64x64xf32> to vector<1x64x64xf32>
    %12 = vector.shape_cast %11 : vector<1x64x64xf32> to vector<64x64xf32>
    %13 = vector.extract_strided_slice %6 {offsets = [0, 16], sizes = [64, 16], strides = [1, 1]} : vector<64x256xf32> to vector<64x16xf32>
    %cst_9 = arith.constant dense<0.000000e+00> : vector<64x16xf32>
    %14 = tpu.matmul %12, %13, %cst_9 {dimension_numbers = #tpu.dot_dimension_numbers<[1], [0], [0], [1], [0, 0, 1, 1], [], []>} : vector<64x64xf32>, vector<64x16xf32>, vector<64x16xf32> -> vector<64x16xf32>
    %15 = arith.addf %10, %14 : vector<64x16xf32>
    %16 = vector.extract_strided_slice %1 {offsets = [2, 0, 0], sizes = [1, 64, 64], strides = [1, 1, 1]} : vector<3x64x64xf32> to vector<1x64x64xf32>
    %17 = vector.shape_cast %16 : vector<1x64x64xf32> to vector<64x64xf32>
    %18 = vector.extract_strided_slice %6 {offsets = [0, 32], sizes = [64, 16], strides = [1, 1]} : vector<64x256xf32> to vector<64x16xf32>
    %cst_10 = arith.constant dense<0.000000e+00> : vector<64x16xf32>
    %19 = tpu.matmul %17, %18, %cst_10 {dimension_numbers = #tpu.dot_dimension_numbers<[1], [0], [0], [1], [0, 0, 1, 1], [], []>} : vector<64x64xf32>, vector<64x16xf32>, vector<64x16xf32> -> vector<64x16xf32>
    %20 = arith.addf %15, %19 : vector<64x16xf32>
    %21 = vector.extract_strided_slice %6 {offsets = [0, 48], sizes = [64, 16], strides = [1, 1]} : vector<64x256xf32> to vector<64x16xf32>
    %22 = arith.addf %20, %21 : vector<64x16xf32>
    %23 = math.tanh %22 : vector<64x16xf32>
    %c0_11 = arith.constant 0 : index
    %c0_12 = arith.constant 0 : index
    %24 = vector.load %arg9[%c0_11, %c0_12] : memref<16x128xf32, #tpu.memory_space<vmem>>, vector<16x128xf32>
    %cst_13 = arith.constant dense<0.000000e+00> : vector<64x128xf32>
    %25 = tpu.matmul %23, %24, %cst_13 {dimension_numbers = #tpu.dot_dimension_numbers<[1], [0], [0], [1], [0, 0, 1, 1], [], []>} : vector<64x16xf32>, vector<16x128xf32>, vector<64x128xf32> -> vector<64x128xf32>
    %26 = vector.extract_strided_slice %6 {offsets = [0, 64], sizes = [64, 96], strides = [1, 1]} : vector<64x256xf32> to vector<64x96xf32>
    %27 = vector.extract_strided_slice %25 {offsets = [0, 0], sizes = [64, 96], strides = [1, 1]} : vector<64x128xf32> to vector<64x96xf32>
    %28 = arith.addf %26, %27 : vector<64x96xf32>
    %29 = vector.extract_strided_slice %1 {offsets = [0, 0, 0], sizes = [1, 64, 64], strides = [1, 1, 1]} : vector<3x64x64xf32> to vector<1x64x64xf32>
    %30 = vector.shape_cast %29 : vector<1x64x64xf32> to vector<64x64xf32>
    %31 = vector.extract_strided_slice %28 {offsets = [0, 0], sizes = [64, 32], strides = [1, 1]} : vector<64x96xf32> to vector<64x32xf32>
    %cst_14 = arith.constant dense<0.000000e+00> : vector<64x32xf32>
    %32 = tpu.matmul %30, %31, %cst_14 {dimension_numbers = #tpu.dot_dimension_numbers<[1], [0], [0], [1], [0, 0, 1, 1], [], []>} : vector<64x64xf32>, vector<64x32xf32>, vector<64x32xf32> -> vector<64x32xf32>
    %33 = vector.extract_strided_slice %1 {offsets = [1, 0, 0], sizes = [1, 64, 64], strides = [1, 1, 1]} : vector<3x64x64xf32> to vector<1x64x64xf32>
    %34 = vector.shape_cast %33 : vector<1x64x64xf32> to vector<64x64xf32>
    %35 = vector.extract_strided_slice %28 {offsets = [0, 32], sizes = [64, 32], strides = [1, 1]} : vector<64x96xf32> to vector<64x32xf32>
    %cst_15 = arith.constant dense<0.000000e+00> : vector<64x32xf32>
    %36 = tpu.matmul %34, %35, %cst_15 {dimension_numbers = #tpu.dot_dimension_numbers<[1], [0], [0], [1], [0, 0, 1, 1], [], []>} : vector<64x64xf32>, vector<64x32xf32>, vector<64x32xf32> -> vector<64x32xf32>
    %37 = arith.addf %32, %36 : vector<64x32xf32>
    %38 = vector.extract_strided_slice %1 {offsets = [2, 0, 0], sizes = [1, 64, 64], strides = [1, 1, 1]} : vector<3x64x64xf32> to vector<1x64x64xf32>
    %39 = vector.shape_cast %38 : vector<1x64x64xf32> to vector<64x64xf32>
    %40 = vector.extract_strided_slice %28 {offsets = [0, 64], sizes = [64, 32], strides = [1, 1]} : vector<64x96xf32> to vector<64x32xf32>
    %cst_16 = arith.constant dense<0.000000e+00> : vector<64x32xf32>
    %41 = tpu.matmul %39, %40, %cst_16 {dimension_numbers = #tpu.dot_dimension_numbers<[1], [0], [0], [1], [0, 0, 1, 1], [], []>} : vector<64x64xf32>, vector<64x32xf32>, vector<64x32xf32> -> vector<64x32xf32>
    %42 = arith.addf %37, %41 : vector<64x32xf32>
    %43 = vector.extract_strided_slice %6 {offsets = [0, 160], sizes = [64, 32], strides = [1, 1]} : vector<64x256xf32> to vector<64x32xf32>
    %44 = arith.addf %42, %43 : vector<64x32xf32>
    %45 = vector.extract_strided_slice %25 {offsets = [0, 96], sizes = [64, 32], strides = [1, 1]} : vector<64x128xf32> to vector<64x32xf32>
    %46 = arith.addf %44, %45 : vector<64x32xf32>
    %47 = math.tanh %46 : vector<64x32xf32>
    %c0_17 = arith.constant 0 : index
    %c0_18 = arith.constant 0 : index
    %48 = vector.load %arg10[%c0_17, %c0_18] : memref<32x64xf32, #tpu.memory_space<vmem>>, vector<32x64xf32>
    %cst_19 = arith.constant dense<0.000000e+00> : vector<64x64xf32>
    %49 = tpu.matmul %47, %48, %cst_19 {dimension_numbers = #tpu.dot_dimension_numbers<[1], [0], [0], [1], [0, 0, 1, 1], [], []>} : vector<64x32xf32>, vector<32x64xf32>, vector<64x64xf32> -> vector<64x64xf32>
    %50 = vector.extract_strided_slice %6 {offsets = [0, 192], sizes = [64, 32], strides = [1, 1]} : vector<64x256xf32> to vector<64x32xf32>
    %51 = vector.extract_strided_slice %49 {offsets = [0, 0], sizes = [64, 32], strides = [1, 1]} : vector<64x64xf32> to vector<64x32xf32>
    %52 = arith.addf %50, %51 : vector<64x32xf32>
    %53 = arith.negf %52 : vector<64x32xf32>
    %54 = math.exp %53 : vector<64x32xf32>
    %cst_20 = arith.constant 1.000000e+00 : f32
    %55 = vector.broadcast %cst_20 : f32 to vector<64x32xf32>
    %56 = arith.addf %55, %54 : vector<64x32xf32>
    %57 = arith.divf %55, %56 : vector<64x32xf32>
    %58 = vector.extract_strided_slice %6 {offsets = [0, 224], sizes = [64, 32], strides = [1, 1]} : vector<64x256xf32> to vector<64x32xf32>
    %59 = vector.extract_strided_slice %49 {offsets = [0, 32], sizes = [64, 32], strides = [1, 1]} : vector<64x64xf32> to vector<64x32xf32>
    %60 = arith.addf %58, %59 : vector<64x32xf32>
    %61 = math.tanh %60 : vector<64x32xf32>
    %62 = arith.mulf %57, %61 : vector<64x32xf32>
    %c0_21 = arith.constant 0 : index
    %c0_22 = arith.constant 0 : index
    %63 = vector.load %arg2[%c0_21, %c0_22] : memref<8x64xf32, #tpu.memory_space<vmem>>, vector<8x64xf32>
    %cst_23 = arith.constant dense<0.000000e+00> : vector<8x32xf32>
    %64 = tpu.matmul %63, %62, %cst_23 {dimension_numbers = #tpu.dot_dimension_numbers<[1], [0], [0], [1], [0, 0, 1, 1], [], []>} : vector<8x64xf32>, vector<64x32xf32>, vector<8x32xf32> -> vector<8x32xf32>
    %65 = math.tanh %64 : vector<8x32xf32>
    %c0_24 = arith.constant 0 : index
    %c0_25 = arith.constant 0 : index
    %66 = vector.load %arg11[%c0_24, %c0_25] : memref<32x32xf32, #tpu.memory_space<vmem>>, vector<32x32xf32>
    %cst_26 = arith.constant dense<0.000000e+00> : vector<8x32xf32>
    %67 = tpu.matmul %65, %66, %cst_26 {dimension_numbers = #tpu.dot_dimension_numbers<[1], [0], [0], [1], [0, 0, 1, 1], [], []>} : vector<8x32xf32>, vector<32x32xf32>, vector<8x32xf32> -> vector<8x32xf32>
    %c0_27 = arith.constant 0 : index
    %c0_28 = arith.constant 0 : index
    %68 = vector.load %arg12[%c0_27, %c0_28] : memref<1x32xf32, #tpu.memory_space<vmem>>, vector<1x32xf32>
    %69 = vector.broadcast %68 : vector<1x32xf32> to vector<8x32xf32>
    %70 = arith.addf %67, %69 : vector<8x32xf32>
    %71 = math.tanh %70 : vector<8x32xf32>
    %c0_29 = arith.constant 0 : index
    %c0_30 = arith.constant 0 : index
    %72 = vector.load %arg3[%c0_29, %c0_30] : memref<80x16xf32, #tpu.memory_space<vmem>>, vector<80x16xf32>
    %c0_31 = arith.constant 0 : index
    %c0_32 = arith.constant 0 : index
    %73 = vector.load %arg13[%c0_31, %c0_32] : memref<16x192xf32, #tpu.memory_space<vmem>>, vector<16x192xf32>
    %cst_33 = arith.constant dense<0.000000e+00> : vector<80x192xf32>
    %74 = tpu.matmul %72, %73, %cst_33 {dimension_numbers = #tpu.dot_dimension_numbers<[1], [0], [0], [1], [0, 0, 1, 1], [], []>} : vector<80x16xf32>, vector<16x192xf32>, vector<80x192xf32> -> vector<80x192xf32>
    %c0_34 = arith.constant 0 : index
    %c0_35 = arith.constant 0 : index
    %75 = vector.load %arg14[%c0_34, %c0_35] : memref<1x192xf32, #tpu.memory_space<vmem>>, vector<1x192xf32>
    %76 = vector.broadcast %75 : vector<1x192xf32> to vector<80x192xf32>
    %77 = arith.addf %74, %76 : vector<80x192xf32>
    %78 = vector.extract_strided_slice %77 {offsets = [0, 0], sizes = [80, 96], strides = [1, 1]} : vector<80x192xf32> to vector<80x96xf32>
    %79 = vector.extract_strided_slice %77 {offsets = [0, 96], sizes = [80, 96], strides = [1, 1]} : vector<80x192xf32> to vector<80x96xf32>
    %c0_36 = arith.constant 0 : index
    %c0_37 = arith.constant 0 : index
    %80 = vector.load %arg15[%c0_36, %c0_37] : memref<32x96xf32, #tpu.memory_space<vmem>>, vector<32x96xf32>
    %c0_38 = arith.constant 0 : index
    %c0_39 = arith.constant 0 : index
    %81 = vector.load %arg16[%c0_38, %c0_39] : memref<1x96xf32, #tpu.memory_space<vmem>>, vector<1x96xf32>
    %cst_40 = arith.constant 0.000000e+00 : f32
    %82 = vector.broadcast %cst_40 : f32 to vector<8x32xf32>
    %83 = vector.extract_strided_slice %78 {offsets = [0, 0], sizes = [8, 96], strides = [1, 1]} : vector<80x96xf32> to vector<8x96xf32>
    %cst_41 = arith.constant dense<0.000000e+00> : vector<8x96xf32>
    %84 = tpu.matmul %82, %80, %cst_41 {dimension_numbers = #tpu.dot_dimension_numbers<[1], [0], [0], [1], [0, 0, 1, 1], [], []>} : vector<8x32xf32>, vector<32x96xf32>, vector<8x96xf32> -> vector<8x96xf32>
    %85 = vector.broadcast %81 : vector<1x96xf32> to vector<8x96xf32>
    %86 = arith.addf %84, %85 : vector<8x96xf32>
    %87 = vector.extract_strided_slice %83 {offsets = [0, 0], sizes = [8, 64], strides = [1, 1]} : vector<8x96xf32> to vector<8x64xf32>
    %88 = vector.extract_strided_slice %86 {offsets = [0, 0], sizes = [8, 64], strides = [1, 1]} : vector<8x96xf32> to vector<8x64xf32>
    %89 = arith.addf %87, %88 : vector<8x64xf32>
    %90 = arith.negf %89 : vector<8x64xf32>
    %91 = math.exp %90 : vector<8x64xf32>
    %cst_42 = arith.constant 1.000000e+00 : f32
    %92 = vector.broadcast %cst_42 : f32 to vector<8x64xf32>
    %93 = arith.addf %92, %91 : vector<8x64xf32>
    %94 = arith.divf %92, %93 : vector<8x64xf32>
    %95 = vector.extract_strided_slice %83 {offsets = [0, 64], sizes = [8, 32], strides = [1, 1]} : vector<8x96xf32> to vector<8x32xf32>
    %96 = vector.extract_strided_slice %94 {offsets = [0, 0], sizes = [8, 32], strides = [1, 1]} : vector<8x64xf32> to vector<8x32xf32>
    %97 = vector.extract_strided_slice %86 {offsets = [0, 64], sizes = [8, 32], strides = [1, 1]} : vector<8x96xf32> to vector<8x32xf32>
    %98 = arith.mulf %96, %97 : vector<8x32xf32>
    %99 = arith.addf %95, %98 : vector<8x32xf32>
    %100 = math.tanh %99 : vector<8x32xf32>
    %101 = vector.extract_strided_slice %94 {offsets = [0, 32], sizes = [8, 32], strides = [1, 1]} : vector<8x64xf32> to vector<8x32xf32>
    %cst_43 = arith.constant 1.000000e+00 : f32
    %102 = vector.broadcast %cst_43 : f32 to vector<8x32xf32>
    %103 = arith.subf %102, %101 : vector<8x32xf32>
    %104 = arith.mulf %103, %100 : vector<8x32xf32>
    %105 = arith.mulf %101, %82 : vector<8x32xf32>
    %106 = arith.addf %104, %105 : vector<8x32xf32>
    %107 = vector.extract_strided_slice %78 {offsets = [8, 0], sizes = [8, 96], strides = [1, 1]} : vector<80x96xf32> to vector<8x96xf32>
    %cst_44 = arith.constant dense<0.000000e+00> : vector<8x96xf32>
    %108 = tpu.matmul %106, %80, %cst_44 {dimension_numbers = #tpu.dot_dimension_numbers<[1], [0], [0], [1], [0, 0, 1, 1], [], []>} : vector<8x32xf32>, vector<32x96xf32>, vector<8x96xf32> -> vector<8x96xf32>
    %109 = vector.broadcast %81 : vector<1x96xf32> to vector<8x96xf32>
    %110 = arith.addf %108, %109 : vector<8x96xf32>
    %111 = vector.extract_strided_slice %107 {offsets = [0, 0], sizes = [8, 64], strides = [1, 1]} : vector<8x96xf32> to vector<8x64xf32>
    %112 = vector.extract_strided_slice %110 {offsets = [0, 0], sizes = [8, 64], strides = [1, 1]} : vector<8x96xf32> to vector<8x64xf32>
    %113 = arith.addf %111, %112 : vector<8x64xf32>
    %114 = arith.negf %113 : vector<8x64xf32>
    %115 = math.exp %114 : vector<8x64xf32>
    %cst_45 = arith.constant 1.000000e+00 : f32
    %116 = vector.broadcast %cst_45 : f32 to vector<8x64xf32>
    %117 = arith.addf %116, %115 : vector<8x64xf32>
    %118 = arith.divf %116, %117 : vector<8x64xf32>
    %119 = vector.extract_strided_slice %107 {offsets = [0, 64], sizes = [8, 32], strides = [1, 1]} : vector<8x96xf32> to vector<8x32xf32>
    %120 = vector.extract_strided_slice %118 {offsets = [0, 0], sizes = [8, 32], strides = [1, 1]} : vector<8x64xf32> to vector<8x32xf32>
    %121 = vector.extract_strided_slice %110 {offsets = [0, 64], sizes = [8, 32], strides = [1, 1]} : vector<8x96xf32> to vector<8x32xf32>
    %122 = arith.mulf %120, %121 : vector<8x32xf32>
    %123 = arith.addf %119, %122 : vector<8x32xf32>
    %124 = math.tanh %123 : vector<8x32xf32>
    %125 = vector.extract_strided_slice %118 {offsets = [0, 32], sizes = [8, 32], strides = [1, 1]} : vector<8x64xf32> to vector<8x32xf32>
    %cst_46 = arith.constant 1.000000e+00 : f32
    %126 = vector.broadcast %cst_46 : f32 to vector<8x32xf32>
    %127 = arith.subf %126, %125 : vector<8x32xf32>
    %128 = arith.mulf %127, %124 : vector<8x32xf32>
    %129 = arith.mulf %125, %106 : vector<8x32xf32>
    %130 = arith.addf %128, %129 : vector<8x32xf32>
    %131 = vector.extract_strided_slice %78 {offsets = [16, 0], sizes = [8, 96], strides = [1, 1]} : vector<80x96xf32> to vector<8x96xf32>
    %cst_47 = arith.constant dense<0.000000e+00> : vector<8x96xf32>
    %132 = tpu.matmul %130, %80, %cst_47 {dimension_numbers = #tpu.dot_dimension_numbers<[1], [0], [0], [1], [0, 0, 1, 1], [], []>} : vector<8x32xf32>, vector<32x96xf32>, vector<8x96xf32> -> vector<8x96xf32>
    %133 = vector.broadcast %81 : vector<1x96xf32> to vector<8x96xf32>
    %134 = arith.addf %132, %133 : vector<8x96xf32>
    %135 = vector.extract_strided_slice %131 {offsets = [0, 0], sizes = [8, 64], strides = [1, 1]} : vector<8x96xf32> to vector<8x64xf32>
    %136 = vector.extract_strided_slice %134 {offsets = [0, 0], sizes = [8, 64], strides = [1, 1]} : vector<8x96xf32> to vector<8x64xf32>
    %137 = arith.addf %135, %136 : vector<8x64xf32>
    %138 = arith.negf %137 : vector<8x64xf32>
    %139 = math.exp %138 : vector<8x64xf32>
    %cst_48 = arith.constant 1.000000e+00 : f32
    %140 = vector.broadcast %cst_48 : f32 to vector<8x64xf32>
    %141 = arith.addf %140, %139 : vector<8x64xf32>
    %142 = arith.divf %140, %141 : vector<8x64xf32>
    %143 = vector.extract_strided_slice %131 {offsets = [0, 64], sizes = [8, 32], strides = [1, 1]} : vector<8x96xf32> to vector<8x32xf32>
    %144 = vector.extract_strided_slice %142 {offsets = [0, 0], sizes = [8, 32], strides = [1, 1]} : vector<8x64xf32> to vector<8x32xf32>
    %145 = vector.extract_strided_slice %134 {offsets = [0, 64], sizes = [8, 32], strides = [1, 1]} : vector<8x96xf32> to vector<8x32xf32>
    %146 = arith.mulf %144, %145 : vector<8x32xf32>
    %147 = arith.addf %143, %146 : vector<8x32xf32>
    %148 = math.tanh %147 : vector<8x32xf32>
    %149 = vector.extract_strided_slice %142 {offsets = [0, 32], sizes = [8, 32], strides = [1, 1]} : vector<8x64xf32> to vector<8x32xf32>
    %cst_49 = arith.constant 1.000000e+00 : f32
    %150 = vector.broadcast %cst_49 : f32 to vector<8x32xf32>
    %151 = arith.subf %150, %149 : vector<8x32xf32>
    %152 = arith.mulf %151, %148 : vector<8x32xf32>
    %153 = arith.mulf %149, %130 : vector<8x32xf32>
    %154 = arith.addf %152, %153 : vector<8x32xf32>
    %155 = vector.extract_strided_slice %78 {offsets = [24, 0], sizes = [8, 96], strides = [1, 1]} : vector<80x96xf32> to vector<8x96xf32>
    %cst_50 = arith.constant dense<0.000000e+00> : vector<8x96xf32>
    %156 = tpu.matmul %154, %80, %cst_50 {dimension_numbers = #tpu.dot_dimension_numbers<[1], [0], [0], [1], [0, 0, 1, 1], [], []>} : vector<8x32xf32>, vector<32x96xf32>, vector<8x96xf32> -> vector<8x96xf32>
    %157 = vector.broadcast %81 : vector<1x96xf32> to vector<8x96xf32>
    %158 = arith.addf %156, %157 : vector<8x96xf32>
    %159 = vector.extract_strided_slice %155 {offsets = [0, 0], sizes = [8, 64], strides = [1, 1]} : vector<8x96xf32> to vector<8x64xf32>
    %160 = vector.extract_strided_slice %158 {offsets = [0, 0], sizes = [8, 64], strides = [1, 1]} : vector<8x96xf32> to vector<8x64xf32>
    %161 = arith.addf %159, %160 : vector<8x64xf32>
    %162 = arith.negf %161 : vector<8x64xf32>
    %163 = math.exp %162 : vector<8x64xf32>
    %cst_51 = arith.constant 1.000000e+00 : f32
    %164 = vector.broadcast %cst_51 : f32 to vector<8x64xf32>
    %165 = arith.addf %164, %163 : vector<8x64xf32>
    %166 = arith.divf %164, %165 : vector<8x64xf32>
    %167 = vector.extract_strided_slice %155 {offsets = [0, 64], sizes = [8, 32], strides = [1, 1]} : vector<8x96xf32> to vector<8x32xf32>
    %168 = vector.extract_strided_slice %166 {offsets = [0, 0], sizes = [8, 32], strides = [1, 1]} : vector<8x64xf32> to vector<8x32xf32>
    %169 = vector.extract_strided_slice %158 {offsets = [0, 64], sizes = [8, 32], strides = [1, 1]} : vector<8x96xf32> to vector<8x32xf32>
    %170 = arith.mulf %168, %169 : vector<8x32xf32>
    %171 = arith.addf %167, %170 : vector<8x32xf32>
    %172 = math.tanh %171 : vector<8x32xf32>
    %173 = vector.extract_strided_slice %166 {offsets = [0, 32], sizes = [8, 32], strides = [1, 1]} : vector<8x64xf32> to vector<8x32xf32>
    %cst_52 = arith.constant 1.000000e+00 : f32
    %174 = vector.broadcast %cst_52 : f32 to vector<8x32xf32>
    %175 = arith.subf %174, %173 : vector<8x32xf32>
    %176 = arith.mulf %175, %172 : vector<8x32xf32>
    %177 = arith.mulf %173, %154 : vector<8x32xf32>
    %178 = arith.addf %176, %177 : vector<8x32xf32>
    %179 = vector.extract_strided_slice %78 {offsets = [32, 0], sizes = [8, 96], strides = [1, 1]} : vector<80x96xf32> to vector<8x96xf32>
    %cst_53 = arith.constant dense<0.000000e+00> : vector<8x96xf32>
    %180 = tpu.matmul %178, %80, %cst_53 {dimension_numbers = #tpu.dot_dimension_numbers<[1], [0], [0], [1], [0, 0, 1, 1], [], []>} : vector<8x32xf32>, vector<32x96xf32>, vector<8x96xf32> -> vector<8x96xf32>
    %181 = vector.broadcast %81 : vector<1x96xf32> to vector<8x96xf32>
    %182 = arith.addf %180, %181 : vector<8x96xf32>
    %183 = vector.extract_strided_slice %179 {offsets = [0, 0], sizes = [8, 64], strides = [1, 1]} : vector<8x96xf32> to vector<8x64xf32>
    %184 = vector.extract_strided_slice %182 {offsets = [0, 0], sizes = [8, 64], strides = [1, 1]} : vector<8x96xf32> to vector<8x64xf32>
    %185 = arith.addf %183, %184 : vector<8x64xf32>
    %186 = arith.negf %185 : vector<8x64xf32>
    %187 = math.exp %186 : vector<8x64xf32>
    %cst_54 = arith.constant 1.000000e+00 : f32
    %188 = vector.broadcast %cst_54 : f32 to vector<8x64xf32>
    %189 = arith.addf %188, %187 : vector<8x64xf32>
    %190 = arith.divf %188, %189 : vector<8x64xf32>
    %191 = vector.extract_strided_slice %179 {offsets = [0, 64], sizes = [8, 32], strides = [1, 1]} : vector<8x96xf32> to vector<8x32xf32>
    %192 = vector.extract_strided_slice %190 {offsets = [0, 0], sizes = [8, 32], strides = [1, 1]} : vector<8x64xf32> to vector<8x32xf32>
    %193 = vector.extract_strided_slice %182 {offsets = [0, 64], sizes = [8, 32], strides = [1, 1]} : vector<8x96xf32> to vector<8x32xf32>
    %194 = arith.mulf %192, %193 : vector<8x32xf32>
    %195 = arith.addf %191, %194 : vector<8x32xf32>
    %196 = math.tanh %195 : vector<8x32xf32>
    %197 = vector.extract_strided_slice %190 {offsets = [0, 32], sizes = [8, 32], strides = [1, 1]} : vector<8x64xf32> to vector<8x32xf32>
    %cst_55 = arith.constant 1.000000e+00 : f32
    %198 = vector.broadcast %cst_55 : f32 to vector<8x32xf32>
    %199 = arith.subf %198, %197 : vector<8x32xf32>
    %200 = arith.mulf %199, %196 : vector<8x32xf32>
    %201 = arith.mulf %197, %178 : vector<8x32xf32>
    %202 = arith.addf %200, %201 : vector<8x32xf32>
    %203 = vector.extract_strided_slice %78 {offsets = [40, 0], sizes = [8, 96], strides = [1, 1]} : vector<80x96xf32> to vector<8x96xf32>
    %cst_56 = arith.constant dense<0.000000e+00> : vector<8x96xf32>
    %204 = tpu.matmul %202, %80, %cst_56 {dimension_numbers = #tpu.dot_dimension_numbers<[1], [0], [0], [1], [0, 0, 1, 1], [], []>} : vector<8x32xf32>, vector<32x96xf32>, vector<8x96xf32> -> vector<8x96xf32>
    %205 = vector.broadcast %81 : vector<1x96xf32> to vector<8x96xf32>
    %206 = arith.addf %204, %205 : vector<8x96xf32>
    %207 = vector.extract_strided_slice %203 {offsets = [0, 0], sizes = [8, 64], strides = [1, 1]} : vector<8x96xf32> to vector<8x64xf32>
    %208 = vector.extract_strided_slice %206 {offsets = [0, 0], sizes = [8, 64], strides = [1, 1]} : vector<8x96xf32> to vector<8x64xf32>
    %209 = arith.addf %207, %208 : vector<8x64xf32>
    %210 = arith.negf %209 : vector<8x64xf32>
    %211 = math.exp %210 : vector<8x64xf32>
    %cst_57 = arith.constant 1.000000e+00 : f32
    %212 = vector.broadcast %cst_57 : f32 to vector<8x64xf32>
    %213 = arith.addf %212, %211 : vector<8x64xf32>
    %214 = arith.divf %212, %213 : vector<8x64xf32>
    %215 = vector.extract_strided_slice %203 {offsets = [0, 64], sizes = [8, 32], strides = [1, 1]} : vector<8x96xf32> to vector<8x32xf32>
    %216 = vector.extract_strided_slice %214 {offsets = [0, 0], sizes = [8, 32], strides = [1, 1]} : vector<8x64xf32> to vector<8x32xf32>
    %217 = vector.extract_strided_slice %206 {offsets = [0, 64], sizes = [8, 32], strides = [1, 1]} : vector<8x96xf32> to vector<8x32xf32>
    %218 = arith.mulf %216, %217 : vector<8x32xf32>
    %219 = arith.addf %215, %218 : vector<8x32xf32>
    %220 = math.tanh %219 : vector<8x32xf32>
    %221 = vector.extract_strided_slice %214 {offsets = [0, 32], sizes = [8, 32], strides = [1, 1]} : vector<8x64xf32> to vector<8x32xf32>
    %cst_58 = arith.constant 1.000000e+00 : f32
    %222 = vector.broadcast %cst_58 : f32 to vector<8x32xf32>
    %223 = arith.subf %222, %221 : vector<8x32xf32>
    %224 = arith.mulf %223, %220 : vector<8x32xf32>
    %225 = arith.mulf %221, %202 : vector<8x32xf32>
    %226 = arith.addf %224, %225 : vector<8x32xf32>
    %227 = vector.extract_strided_slice %78 {offsets = [48, 0], sizes = [8, 96], strides = [1, 1]} : vector<80x96xf32> to vector<8x96xf32>
    %cst_59 = arith.constant dense<0.000000e+00> : vector<8x96xf32>
    %228 = tpu.matmul %226, %80, %cst_59 {dimension_numbers = #tpu.dot_dimension_numbers<[1], [0], [0], [1], [0, 0, 1, 1], [], []>} : vector<8x32xf32>, vector<32x96xf32>, vector<8x96xf32> -> vector<8x96xf32>
    %229 = vector.broadcast %81 : vector<1x96xf32> to vector<8x96xf32>
    %230 = arith.addf %228, %229 : vector<8x96xf32>
    %231 = vector.extract_strided_slice %227 {offsets = [0, 0], sizes = [8, 64], strides = [1, 1]} : vector<8x96xf32> to vector<8x64xf32>
    %232 = vector.extract_strided_slice %230 {offsets = [0, 0], sizes = [8, 64], strides = [1, 1]} : vector<8x96xf32> to vector<8x64xf32>
    %233 = arith.addf %231, %232 : vector<8x64xf32>
    %234 = arith.negf %233 : vector<8x64xf32>
    %235 = math.exp %234 : vector<8x64xf32>
    %cst_60 = arith.constant 1.000000e+00 : f32
    %236 = vector.broadcast %cst_60 : f32 to vector<8x64xf32>
    %237 = arith.addf %236, %235 : vector<8x64xf32>
    %238 = arith.divf %236, %237 : vector<8x64xf32>
    %239 = vector.extract_strided_slice %227 {offsets = [0, 64], sizes = [8, 32], strides = [1, 1]} : vector<8x96xf32> to vector<8x32xf32>
    %240 = vector.extract_strided_slice %238 {offsets = [0, 0], sizes = [8, 32], strides = [1, 1]} : vector<8x64xf32> to vector<8x32xf32>
    %241 = vector.extract_strided_slice %230 {offsets = [0, 64], sizes = [8, 32], strides = [1, 1]} : vector<8x96xf32> to vector<8x32xf32>
    %242 = arith.mulf %240, %241 : vector<8x32xf32>
    %243 = arith.addf %239, %242 : vector<8x32xf32>
    %244 = math.tanh %243 : vector<8x32xf32>
    %245 = vector.extract_strided_slice %238 {offsets = [0, 32], sizes = [8, 32], strides = [1, 1]} : vector<8x64xf32> to vector<8x32xf32>
    %cst_61 = arith.constant 1.000000e+00 : f32
    %246 = vector.broadcast %cst_61 : f32 to vector<8x32xf32>
    %247 = arith.subf %246, %245 : vector<8x32xf32>
    %248 = arith.mulf %247, %244 : vector<8x32xf32>
    %249 = arith.mulf %245, %226 : vector<8x32xf32>
    %250 = arith.addf %248, %249 : vector<8x32xf32>
    %251 = vector.extract_strided_slice %78 {offsets = [56, 0], sizes = [8, 96], strides = [1, 1]} : vector<80x96xf32> to vector<8x96xf32>
    %cst_62 = arith.constant dense<0.000000e+00> : vector<8x96xf32>
    %252 = tpu.matmul %250, %80, %cst_62 {dimension_numbers = #tpu.dot_dimension_numbers<[1], [0], [0], [1], [0, 0, 1, 1], [], []>} : vector<8x32xf32>, vector<32x96xf32>, vector<8x96xf32> -> vector<8x96xf32>
    %253 = vector.broadcast %81 : vector<1x96xf32> to vector<8x96xf32>
    %254 = arith.addf %252, %253 : vector<8x96xf32>
    %255 = vector.extract_strided_slice %251 {offsets = [0, 0], sizes = [8, 64], strides = [1, 1]} : vector<8x96xf32> to vector<8x64xf32>
    %256 = vector.extract_strided_slice %254 {offsets = [0, 0], sizes = [8, 64], strides = [1, 1]} : vector<8x96xf32> to vector<8x64xf32>
    %257 = arith.addf %255, %256 : vector<8x64xf32>
    %258 = arith.negf %257 : vector<8x64xf32>
    %259 = math.exp %258 : vector<8x64xf32>
    %cst_63 = arith.constant 1.000000e+00 : f32
    %260 = vector.broadcast %cst_63 : f32 to vector<8x64xf32>
    %261 = arith.addf %260, %259 : vector<8x64xf32>
    %262 = arith.divf %260, %261 : vector<8x64xf32>
    %263 = vector.extract_strided_slice %251 {offsets = [0, 64], sizes = [8, 32], strides = [1, 1]} : vector<8x96xf32> to vector<8x32xf32>
    %264 = vector.extract_strided_slice %262 {offsets = [0, 0], sizes = [8, 32], strides = [1, 1]} : vector<8x64xf32> to vector<8x32xf32>
    %265 = vector.extract_strided_slice %254 {offsets = [0, 64], sizes = [8, 32], strides = [1, 1]} : vector<8x96xf32> to vector<8x32xf32>
    %266 = arith.mulf %264, %265 : vector<8x32xf32>
    %267 = arith.addf %263, %266 : vector<8x32xf32>
    %268 = math.tanh %267 : vector<8x32xf32>
    %269 = vector.extract_strided_slice %262 {offsets = [0, 32], sizes = [8, 32], strides = [1, 1]} : vector<8x64xf32> to vector<8x32xf32>
    %cst_64 = arith.constant 1.000000e+00 : f32
    %270 = vector.broadcast %cst_64 : f32 to vector<8x32xf32>
    %271 = arith.subf %270, %269 : vector<8x32xf32>
    %272 = arith.mulf %271, %268 : vector<8x32xf32>
    %273 = arith.mulf %269, %250 : vector<8x32xf32>
    %274 = arith.addf %272, %273 : vector<8x32xf32>
    %275 = vector.extract_strided_slice %78 {offsets = [64, 0], sizes = [8, 96], strides = [1, 1]} : vector<80x96xf32> to vector<8x96xf32>
    %cst_65 = arith.constant dense<0.000000e+00> : vector<8x96xf32>
    %276 = tpu.matmul %274, %80, %cst_65 {dimension_numbers = #tpu.dot_dimension_numbers<[1], [0], [0], [1], [0, 0, 1, 1], [], []>} : vector<8x32xf32>, vector<32x96xf32>, vector<8x96xf32> -> vector<8x96xf32>
    %277 = vector.broadcast %81 : vector<1x96xf32> to vector<8x96xf32>
    %278 = arith.addf %276, %277 : vector<8x96xf32>
    %279 = vector.extract_strided_slice %275 {offsets = [0, 0], sizes = [8, 64], strides = [1, 1]} : vector<8x96xf32> to vector<8x64xf32>
    %280 = vector.extract_strided_slice %278 {offsets = [0, 0], sizes = [8, 64], strides = [1, 1]} : vector<8x96xf32> to vector<8x64xf32>
    %281 = arith.addf %279, %280 : vector<8x64xf32>
    %282 = arith.negf %281 : vector<8x64xf32>
    %283 = math.exp %282 : vector<8x64xf32>
    %cst_66 = arith.constant 1.000000e+00 : f32
    %284 = vector.broadcast %cst_66 : f32 to vector<8x64xf32>
    %285 = arith.addf %284, %283 : vector<8x64xf32>
    %286 = arith.divf %284, %285 : vector<8x64xf32>
    %287 = vector.extract_strided_slice %275 {offsets = [0, 64], sizes = [8, 32], strides = [1, 1]} : vector<8x96xf32> to vector<8x32xf32>
    %288 = vector.extract_strided_slice %286 {offsets = [0, 0], sizes = [8, 32], strides = [1, 1]} : vector<8x64xf32> to vector<8x32xf32>
    %289 = vector.extract_strided_slice %278 {offsets = [0, 64], sizes = [8, 32], strides = [1, 1]} : vector<8x96xf32> to vector<8x32xf32>
    %290 = arith.mulf %288, %289 : vector<8x32xf32>
    %291 = arith.addf %287, %290 : vector<8x32xf32>
    %292 = math.tanh %291 : vector<8x32xf32>
    %293 = vector.extract_strided_slice %286 {offsets = [0, 32], sizes = [8, 32], strides = [1, 1]} : vector<8x64xf32> to vector<8x32xf32>
    %cst_67 = arith.constant 1.000000e+00 : f32
    %294 = vector.broadcast %cst_67 : f32 to vector<8x32xf32>
    %295 = arith.subf %294, %293 : vector<8x32xf32>
    %296 = arith.mulf %295, %292 : vector<8x32xf32>
    %297 = arith.mulf %293, %274 : vector<8x32xf32>
    %298 = arith.addf %296, %297 : vector<8x32xf32>
    %299 = vector.extract_strided_slice %78 {offsets = [72, 0], sizes = [8, 96], strides = [1, 1]} : vector<80x96xf32> to vector<8x96xf32>
    %cst_68 = arith.constant dense<0.000000e+00> : vector<8x96xf32>
    %300 = tpu.matmul %298, %80, %cst_68 {dimension_numbers = #tpu.dot_dimension_numbers<[1], [0], [0], [1], [0, 0, 1, 1], [], []>} : vector<8x32xf32>, vector<32x96xf32>, vector<8x96xf32> -> vector<8x96xf32>
    %301 = vector.broadcast %81 : vector<1x96xf32> to vector<8x96xf32>
    %302 = arith.addf %300, %301 : vector<8x96xf32>
    %303 = vector.extract_strided_slice %299 {offsets = [0, 0], sizes = [8, 64], strides = [1, 1]} : vector<8x96xf32> to vector<8x64xf32>
    %304 = vector.extract_strided_slice %302 {offsets = [0, 0], sizes = [8, 64], strides = [1, 1]} : vector<8x96xf32> to vector<8x64xf32>
    %305 = arith.addf %303, %304 : vector<8x64xf32>
    %306 = arith.negf %305 : vector<8x64xf32>
    %307 = math.exp %306 : vector<8x64xf32>
    %cst_69 = arith.constant 1.000000e+00 : f32
    %308 = vector.broadcast %cst_69 : f32 to vector<8x64xf32>
    %309 = arith.addf %308, %307 : vector<8x64xf32>
    %310 = arith.divf %308, %309 : vector<8x64xf32>
    %311 = vector.extract_strided_slice %299 {offsets = [0, 64], sizes = [8, 32], strides = [1, 1]} : vector<8x96xf32> to vector<8x32xf32>
    %312 = vector.extract_strided_slice %310 {offsets = [0, 0], sizes = [8, 32], strides = [1, 1]} : vector<8x64xf32> to vector<8x32xf32>
    %313 = vector.extract_strided_slice %302 {offsets = [0, 64], sizes = [8, 32], strides = [1, 1]} : vector<8x96xf32> to vector<8x32xf32>
    %314 = arith.mulf %312, %313 : vector<8x32xf32>
    %315 = arith.addf %311, %314 : vector<8x32xf32>
    %316 = math.tanh %315 : vector<8x32xf32>
    %317 = vector.extract_strided_slice %310 {offsets = [0, 32], sizes = [8, 32], strides = [1, 1]} : vector<8x64xf32> to vector<8x32xf32>
    %cst_70 = arith.constant 1.000000e+00 : f32
    %318 = vector.broadcast %cst_70 : f32 to vector<8x32xf32>
    %319 = arith.subf %318, %317 : vector<8x32xf32>
    %320 = arith.mulf %319, %316 : vector<8x32xf32>
    %321 = arith.mulf %317, %298 : vector<8x32xf32>
    %322 = arith.addf %320, %321 : vector<8x32xf32>
    %323 = tpu.concatenate %322, %71 in 1 : vector<8x32xf32>, vector<8x32xf32> -> vector<8x64xf32>
    %c0_71 = arith.constant 0 : index
    %c0_72 = arith.constant 0 : index
    %324 = vector.load %arg17[%c0_71, %c0_72] : memref<64x32xf32, #tpu.memory_space<vmem>>, vector<64x32xf32>
    %cst_73 = arith.constant dense<0.000000e+00> : vector<8x32xf32>
    %325 = tpu.matmul %323, %324, %cst_73 {dimension_numbers = #tpu.dot_dimension_numbers<[1], [0], [0], [1], [0, 0, 1, 1], [], []>} : vector<8x64xf32>, vector<64x32xf32>, vector<8x32xf32> -> vector<8x32xf32>
    %c0_74 = arith.constant 0 : index
    %c0_75 = arith.constant 0 : index
    %326 = vector.load %arg18[%c0_74, %c0_75] : memref<1x32xf32, #tpu.memory_space<vmem>>, vector<1x32xf32>
    %327 = vector.broadcast %326 : vector<1x32xf32> to vector<8x32xf32>
    %328 = arith.addf %325, %327 : vector<8x32xf32>
    %329 = vector.extract_strided_slice %328 {offsets = [0, 0], sizes = [8, 16], strides = [1, 1]} : vector<8x32xf32> to vector<8x16xf32>
    %330 = vector.extract_strided_slice %328 {offsets = [0, 16], sizes = [8, 16], strides = [1, 1]} : vector<8x32xf32> to vector<8x16xf32>
    %cst_76 = arith.constant 5.000000e-01 : f32
    %331 = vector.broadcast %cst_76 : f32 to vector<8x16xf32>
    %332 = arith.mulf %331, %330 : vector<8x16xf32>
    %333 = math.exp %332 : vector<8x16xf32>
    %c0_77 = arith.constant 0 : index
    %c0_78 = arith.constant 0 : index
    %334 = vector.load %arg4[%c0_77, %c0_78] : memref<8x16xf32, #tpu.memory_space<vmem>>, vector<8x16xf32>
    %335 = arith.mulf %333, %334 : vector<8x16xf32>
    %336 = arith.addf %329, %335 : vector<8x16xf32>
    %c0_79 = arith.constant 0 : index
    %c0_80 = arith.constant 0 : index
    %337 = vector.load %arg6[%c0_79, %c0_80] : memref<8x1xf32, #tpu.memory_space<vmem>>, vector<8x1xf32>
    %338 = math.exp %330 : vector<8x16xf32>
    %339 = arith.mulf %329, %329 : vector<8x16xf32>
    %340 = arith.addf %338, %339 : vector<8x16xf32>
    %cst_81 = arith.constant 1.000000e+00 : f32
    %341 = vector.broadcast %cst_81 : f32 to vector<8x16xf32>
    %342 = arith.subf %340, %341 : vector<8x16xf32>
    %343 = arith.subf %342, %330 : vector<8x16xf32>
    %cst_82 = arith.constant dense<0.000000e+00> : vector<8xf32>
    %344 = vector.multi_reduction <add>, %343, %cst_82 [1] : vector<8x16xf32> to vector<8xf32>
    %345 = vector.shape_cast %344 : vector<8xf32> to vector<8x1xf32>
    %346 = arith.mulf %345, %337 : vector<8x1xf32>
    %cst_83 = arith.constant dense<0.000000e+00> : vector<1xf32>
    %347 = vector.multi_reduction <add>, %346, %cst_83 [0] : vector<8x1xf32> to vector<1xf32>
    %348 = vector.shape_cast %347 : vector<1xf32> to vector<1x1xf32>
    %cst_84 = arith.constant 5.000000e-01 : f32
    %349 = vector.broadcast %cst_84 : f32 to vector<1x1xf32>
    %350 = arith.mulf %349, %348 : vector<1x1xf32>
    %cst_85 = arith.constant 2.000000e+00 : f32
    %351 = vector.broadcast %cst_85 : f32 to vector<1x1xf32>
    %352 = arith.divf %350, %351 : vector<1x1xf32>
    %c0_86 = arith.constant 0 : index
    %c0_87 = arith.constant 0 : index
    %353 = vector.load %arg19[%c0_86, %c0_87] : memref<16x32xf32, #tpu.memory_space<vmem>>, vector<16x32xf32>
    %cst_88 = arith.constant dense<0.000000e+00> : vector<8x32xf32>
    %354 = tpu.matmul %336, %353, %cst_88 {dimension_numbers = #tpu.dot_dimension_numbers<[1], [0], [0], [1], [0, 0, 1, 1], [], []>} : vector<8x16xf32>, vector<16x32xf32>, vector<8x32xf32> -> vector<8x32xf32>
    %c0_89 = arith.constant 0 : index
    %c0_90 = arith.constant 0 : index
    %355 = vector.load %arg20[%c0_89, %c0_90] : memref<1x32xf32, #tpu.memory_space<vmem>>, vector<1x32xf32>
    %356 = vector.broadcast %355 : vector<1x32xf32> to vector<8x32xf32>
    %357 = arith.addf %354, %356 : vector<8x32xf32>
    %c0_91 = arith.constant 0 : index
    %c0_92 = arith.constant 0 : index
    %358 = vector.load %arg21[%c0_91, %c0_92] : memref<16x96xf32, #tpu.memory_space<vmem>>, vector<16x96xf32>
    %cst_93 = arith.constant dense<0.000000e+00> : vector<8x96xf32>
    %359 = tpu.matmul %336, %358, %cst_93 {dimension_numbers = #tpu.dot_dimension_numbers<[1], [0], [0], [1], [0, 0, 1, 1], [], []>} : vector<8x16xf32>, vector<16x96xf32>, vector<8x96xf32> -> vector<8x96xf32>
    %c0_94 = arith.constant 0 : index
    %c0_95 = arith.constant 0 : index
    %360 = vector.load %arg22[%c0_94, %c0_95] : memref<32x96xf32, #tpu.memory_space<vmem>>, vector<32x96xf32>
    %c0_96 = arith.constant 0 : index
    %c0_97 = arith.constant 0 : index
    %361 = vector.load %arg23[%c0_96, %c0_97] : memref<1x96xf32, #tpu.memory_space<vmem>>, vector<1x96xf32>
    %362 = vector.extract_strided_slice %79 {offsets = [0, 0], sizes = [8, 96], strides = [1, 1]} : vector<80x96xf32> to vector<8x96xf32>
    %363 = arith.addf %362, %359 : vector<8x96xf32>
    %cst_98 = arith.constant dense<0.000000e+00> : vector<8x96xf32>
    %364 = tpu.matmul %357, %360, %cst_98 {dimension_numbers = #tpu.dot_dimension_numbers<[1], [0], [0], [1], [0, 0, 1, 1], [], []>} : vector<8x32xf32>, vector<32x96xf32>, vector<8x96xf32> -> vector<8x96xf32>
    %365 = vector.broadcast %361 : vector<1x96xf32> to vector<8x96xf32>
    %366 = arith.addf %364, %365 : vector<8x96xf32>
    %367 = vector.extract_strided_slice %363 {offsets = [0, 0], sizes = [8, 64], strides = [1, 1]} : vector<8x96xf32> to vector<8x64xf32>
    %368 = vector.extract_strided_slice %366 {offsets = [0, 0], sizes = [8, 64], strides = [1, 1]} : vector<8x96xf32> to vector<8x64xf32>
    %369 = arith.addf %367, %368 : vector<8x64xf32>
    %370 = arith.negf %369 : vector<8x64xf32>
    %371 = math.exp %370 : vector<8x64xf32>
    %cst_99 = arith.constant 1.000000e+00 : f32
    %372 = vector.broadcast %cst_99 : f32 to vector<8x64xf32>
    %373 = arith.addf %372, %371 : vector<8x64xf32>
    %374 = arith.divf %372, %373 : vector<8x64xf32>
    %375 = vector.extract_strided_slice %363 {offsets = [0, 64], sizes = [8, 32], strides = [1, 1]} : vector<8x96xf32> to vector<8x32xf32>
    %376 = vector.extract_strided_slice %374 {offsets = [0, 0], sizes = [8, 32], strides = [1, 1]} : vector<8x64xf32> to vector<8x32xf32>
    %377 = vector.extract_strided_slice %366 {offsets = [0, 64], sizes = [8, 32], strides = [1, 1]} : vector<8x96xf32> to vector<8x32xf32>
    %378 = arith.mulf %376, %377 : vector<8x32xf32>
    %379 = arith.addf %375, %378 : vector<8x32xf32>
    %380 = math.tanh %379 : vector<8x32xf32>
    %381 = vector.extract_strided_slice %374 {offsets = [0, 32], sizes = [8, 32], strides = [1, 1]} : vector<8x64xf32> to vector<8x32xf32>
    %cst_100 = arith.constant 1.000000e+00 : f32
    %382 = vector.broadcast %cst_100 : f32 to vector<8x32xf32>
    %383 = arith.subf %382, %381 : vector<8x32xf32>
    %384 = arith.mulf %383, %380 : vector<8x32xf32>
    %385 = arith.mulf %381, %357 : vector<8x32xf32>
    %386 = arith.addf %384, %385 : vector<8x32xf32>
    %c0_101 = arith.constant 0 : index
    %c0_102 = arith.constant 0 : index
    %387 = vector.load %arg27[%c0_101, %c0_102] : memref<72x32xf32, #tpu.memory_space<vmem>>, vector<8x32xf32>
    tpu.vector_store %arg27[%c0_101, %c0_102], %386 {strides = array<i32>} : memref<72x32xf32, #tpu.memory_space<vmem>>, vector<8x32xf32>,
    %388 = vector.extract_strided_slice %79 {offsets = [8, 0], sizes = [8, 96], strides = [1, 1]} : vector<80x96xf32> to vector<8x96xf32>
    %389 = arith.addf %388, %359 : vector<8x96xf32>
    %cst_103 = arith.constant dense<0.000000e+00> : vector<8x96xf32>
    %390 = tpu.matmul %386, %360, %cst_103 {dimension_numbers = #tpu.dot_dimension_numbers<[1], [0], [0], [1], [0, 0, 1, 1], [], []>} : vector<8x32xf32>, vector<32x96xf32>, vector<8x96xf32> -> vector<8x96xf32>
    %391 = vector.broadcast %361 : vector<1x96xf32> to vector<8x96xf32>
    %392 = arith.addf %390, %391 : vector<8x96xf32>
    %393 = vector.extract_strided_slice %389 {offsets = [0, 0], sizes = [8, 64], strides = [1, 1]} : vector<8x96xf32> to vector<8x64xf32>
    %394 = vector.extract_strided_slice %392 {offsets = [0, 0], sizes = [8, 64], strides = [1, 1]} : vector<8x96xf32> to vector<8x64xf32>
    %395 = arith.addf %393, %394 : vector<8x64xf32>
    %396 = arith.negf %395 : vector<8x64xf32>
    %397 = math.exp %396 : vector<8x64xf32>
    %cst_104 = arith.constant 1.000000e+00 : f32
    %398 = vector.broadcast %cst_104 : f32 to vector<8x64xf32>
    %399 = arith.addf %398, %397 : vector<8x64xf32>
    %400 = arith.divf %398, %399 : vector<8x64xf32>
    %401 = vector.extract_strided_slice %389 {offsets = [0, 64], sizes = [8, 32], strides = [1, 1]} : vector<8x96xf32> to vector<8x32xf32>
    %402 = vector.extract_strided_slice %400 {offsets = [0, 0], sizes = [8, 32], strides = [1, 1]} : vector<8x64xf32> to vector<8x32xf32>
    %403 = vector.extract_strided_slice %392 {offsets = [0, 64], sizes = [8, 32], strides = [1, 1]} : vector<8x96xf32> to vector<8x32xf32>
    %404 = arith.mulf %402, %403 : vector<8x32xf32>
    %405 = arith.addf %401, %404 : vector<8x32xf32>
    %406 = math.tanh %405 : vector<8x32xf32>
    %407 = vector.extract_strided_slice %400 {offsets = [0, 32], sizes = [8, 32], strides = [1, 1]} : vector<8x64xf32> to vector<8x32xf32>
    %cst_105 = arith.constant 1.000000e+00 : f32
    %408 = vector.broadcast %cst_105 : f32 to vector<8x32xf32>
    %409 = arith.subf %408, %407 : vector<8x32xf32>
    %410 = arith.mulf %409, %406 : vector<8x32xf32>
    %411 = arith.mulf %407, %386 : vector<8x32xf32>
    %412 = arith.addf %410, %411 : vector<8x32xf32>
    %c8 = arith.constant 8 : index
    %c0_106 = arith.constant 0 : index
    %413 = vector.load %arg27[%c8, %c0_106] : memref<72x32xf32, #tpu.memory_space<vmem>>, vector<8x32xf32>
    tpu.vector_store %arg27[%c8, %c0_106], %412 {strides = array<i32>} : memref<72x32xf32, #tpu.memory_space<vmem>>, vector<8x32xf32>,
    %414 = vector.extract_strided_slice %79 {offsets = [16, 0], sizes = [8, 96], strides = [1, 1]} : vector<80x96xf32> to vector<8x96xf32>
    %415 = arith.addf %414, %359 : vector<8x96xf32>
    %cst_107 = arith.constant dense<0.000000e+00> : vector<8x96xf32>
    %416 = tpu.matmul %412, %360, %cst_107 {dimension_numbers = #tpu.dot_dimension_numbers<[1], [0], [0], [1], [0, 0, 1, 1], [], []>} : vector<8x32xf32>, vector<32x96xf32>, vector<8x96xf32> -> vector<8x96xf32>
    %417 = vector.broadcast %361 : vector<1x96xf32> to vector<8x96xf32>
    %418 = arith.addf %416, %417 : vector<8x96xf32>
    %419 = vector.extract_strided_slice %415 {offsets = [0, 0], sizes = [8, 64], strides = [1, 1]} : vector<8x96xf32> to vector<8x64xf32>
    %420 = vector.extract_strided_slice %418 {offsets = [0, 0], sizes = [8, 64], strides = [1, 1]} : vector<8x96xf32> to vector<8x64xf32>
    %421 = arith.addf %419, %420 : vector<8x64xf32>
    %422 = arith.negf %421 : vector<8x64xf32>
    %423 = math.exp %422 : vector<8x64xf32>
    %cst_108 = arith.constant 1.000000e+00 : f32
    %424 = vector.broadcast %cst_108 : f32 to vector<8x64xf32>
    %425 = arith.addf %424, %423 : vector<8x64xf32>
    %426 = arith.divf %424, %425 : vector<8x64xf32>
    %427 = vector.extract_strided_slice %415 {offsets = [0, 64], sizes = [8, 32], strides = [1, 1]} : vector<8x96xf32> to vector<8x32xf32>
    %428 = vector.extract_strided_slice %426 {offsets = [0, 0], sizes = [8, 32], strides = [1, 1]} : vector<8x64xf32> to vector<8x32xf32>
    %429 = vector.extract_strided_slice %418 {offsets = [0, 64], sizes = [8, 32], strides = [1, 1]} : vector<8x96xf32> to vector<8x32xf32>
    %430 = arith.mulf %428, %429 : vector<8x32xf32>
    %431 = arith.addf %427, %430 : vector<8x32xf32>
    %432 = math.tanh %431 : vector<8x32xf32>
    %433 = vector.extract_strided_slice %426 {offsets = [0, 32], sizes = [8, 32], strides = [1, 1]} : vector<8x64xf32> to vector<8x32xf32>
    %cst_109 = arith.constant 1.000000e+00 : f32
    %434 = vector.broadcast %cst_109 : f32 to vector<8x32xf32>
    %435 = arith.subf %434, %433 : vector<8x32xf32>
    %436 = arith.mulf %435, %432 : vector<8x32xf32>
    %437 = arith.mulf %433, %412 : vector<8x32xf32>
    %438 = arith.addf %436, %437 : vector<8x32xf32>
    %c16 = arith.constant 16 : index
    %c0_110 = arith.constant 0 : index
    %439 = vector.load %arg27[%c16, %c0_110] : memref<72x32xf32, #tpu.memory_space<vmem>>, vector<8x32xf32>
    tpu.vector_store %arg27[%c16, %c0_110], %438 {strides = array<i32>} : memref<72x32xf32, #tpu.memory_space<vmem>>, vector<8x32xf32>,
    %440 = vector.extract_strided_slice %79 {offsets = [24, 0], sizes = [8, 96], strides = [1, 1]} : vector<80x96xf32> to vector<8x96xf32>
    %441 = arith.addf %440, %359 : vector<8x96xf32>
    %cst_111 = arith.constant dense<0.000000e+00> : vector<8x96xf32>
    %442 = tpu.matmul %438, %360, %cst_111 {dimension_numbers = #tpu.dot_dimension_numbers<[1], [0], [0], [1], [0, 0, 1, 1], [], []>} : vector<8x32xf32>, vector<32x96xf32>, vector<8x96xf32> -> vector<8x96xf32>
    %443 = vector.broadcast %361 : vector<1x96xf32> to vector<8x96xf32>
    %444 = arith.addf %442, %443 : vector<8x96xf32>
    %445 = vector.extract_strided_slice %441 {offsets = [0, 0], sizes = [8, 64], strides = [1, 1]} : vector<8x96xf32> to vector<8x64xf32>
    %446 = vector.extract_strided_slice %444 {offsets = [0, 0], sizes = [8, 64], strides = [1, 1]} : vector<8x96xf32> to vector<8x64xf32>
    %447 = arith.addf %445, %446 : vector<8x64xf32>
    %448 = arith.negf %447 : vector<8x64xf32>
    %449 = math.exp %448 : vector<8x64xf32>
    %cst_112 = arith.constant 1.000000e+00 : f32
    %450 = vector.broadcast %cst_112 : f32 to vector<8x64xf32>
    %451 = arith.addf %450, %449 : vector<8x64xf32>
    %452 = arith.divf %450, %451 : vector<8x64xf32>
    %453 = vector.extract_strided_slice %441 {offsets = [0, 64], sizes = [8, 32], strides = [1, 1]} : vector<8x96xf32> to vector<8x32xf32>
    %454 = vector.extract_strided_slice %452 {offsets = [0, 0], sizes = [8, 32], strides = [1, 1]} : vector<8x64xf32> to vector<8x32xf32>
    %455 = vector.extract_strided_slice %444 {offsets = [0, 64], sizes = [8, 32], strides = [1, 1]} : vector<8x96xf32> to vector<8x32xf32>
    %456 = arith.mulf %454, %455 : vector<8x32xf32>
    %457 = arith.addf %453, %456 : vector<8x32xf32>
    %458 = math.tanh %457 : vector<8x32xf32>
    %459 = vector.extract_strided_slice %452 {offsets = [0, 32], sizes = [8, 32], strides = [1, 1]} : vector<8x64xf32> to vector<8x32xf32>
    %cst_113 = arith.constant 1.000000e+00 : f32
    %460 = vector.broadcast %cst_113 : f32 to vector<8x32xf32>
    %461 = arith.subf %460, %459 : vector<8x32xf32>
    %462 = arith.mulf %461, %458 : vector<8x32xf32>
    %463 = arith.mulf %459, %438 : vector<8x32xf32>
    %464 = arith.addf %462, %463 : vector<8x32xf32>
    %c24 = arith.constant 24 : index
    %c0_114 = arith.constant 0 : index
    %465 = vector.load %arg27[%c24, %c0_114] : memref<72x32xf32, #tpu.memory_space<vmem>>, vector<8x32xf32>
    tpu.vector_store %arg27[%c24, %c0_114], %464 {strides = array<i32>} : memref<72x32xf32, #tpu.memory_space<vmem>>, vector<8x32xf32>,
    %466 = vector.extract_strided_slice %79 {offsets = [32, 0], sizes = [8, 96], strides = [1, 1]} : vector<80x96xf32> to vector<8x96xf32>
    %467 = arith.addf %466, %359 : vector<8x96xf32>
    %cst_115 = arith.constant dense<0.000000e+00> : vector<8x96xf32>
    %468 = tpu.matmul %464, %360, %cst_115 {dimension_numbers = #tpu.dot_dimension_numbers<[1], [0], [0], [1], [0, 0, 1, 1], [], []>} : vector<8x32xf32>, vector<32x96xf32>, vector<8x96xf32> -> vector<8x96xf32>
    %469 = vector.broadcast %361 : vector<1x96xf32> to vector<8x96xf32>
    %470 = arith.addf %468, %469 : vector<8x96xf32>
    %471 = vector.extract_strided_slice %467 {offsets = [0, 0], sizes = [8, 64], strides = [1, 1]} : vector<8x96xf32> to vector<8x64xf32>
    %472 = vector.extract_strided_slice %470 {offsets = [0, 0], sizes = [8, 64], strides = [1, 1]} : vector<8x96xf32> to vector<8x64xf32>
    %473 = arith.addf %471, %472 : vector<8x64xf32>
    %474 = arith.negf %473 : vector<8x64xf32>
    %475 = math.exp %474 : vector<8x64xf32>
    %cst_116 = arith.constant 1.000000e+00 : f32
    %476 = vector.broadcast %cst_116 : f32 to vector<8x64xf32>
    %477 = arith.addf %476, %475 : vector<8x64xf32>
    %478 = arith.divf %476, %477 : vector<8x64xf32>
    %479 = vector.extract_strided_slice %467 {offsets = [0, 64], sizes = [8, 32], strides = [1, 1]} : vector<8x96xf32> to vector<8x32xf32>
    %480 = vector.extract_strided_slice %478 {offsets = [0, 0], sizes = [8, 32], strides = [1, 1]} : vector<8x64xf32> to vector<8x32xf32>
    %481 = vector.extract_strided_slice %470 {offsets = [0, 64], sizes = [8, 32], strides = [1, 1]} : vector<8x96xf32> to vector<8x32xf32>
    %482 = arith.mulf %480, %481 : vector<8x32xf32>
    %483 = arith.addf %479, %482 : vector<8x32xf32>
    %484 = math.tanh %483 : vector<8x32xf32>
    %485 = vector.extract_strided_slice %478 {offsets = [0, 32], sizes = [8, 32], strides = [1, 1]} : vector<8x64xf32> to vector<8x32xf32>
    %cst_117 = arith.constant 1.000000e+00 : f32
    %486 = vector.broadcast %cst_117 : f32 to vector<8x32xf32>
    %487 = arith.subf %486, %485 : vector<8x32xf32>
    %488 = arith.mulf %487, %484 : vector<8x32xf32>
    %489 = arith.mulf %485, %464 : vector<8x32xf32>
    %490 = arith.addf %488, %489 : vector<8x32xf32>
    %c32 = arith.constant 32 : index
    %c0_118 = arith.constant 0 : index
    %491 = vector.load %arg27[%c32, %c0_118] : memref<72x32xf32, #tpu.memory_space<vmem>>, vector<8x32xf32>
    tpu.vector_store %arg27[%c32, %c0_118], %490 {strides = array<i32>} : memref<72x32xf32, #tpu.memory_space<vmem>>, vector<8x32xf32>,
    %492 = vector.extract_strided_slice %79 {offsets = [40, 0], sizes = [8, 96], strides = [1, 1]} : vector<80x96xf32> to vector<8x96xf32>
    %493 = arith.addf %492, %359 : vector<8x96xf32>
    %cst_119 = arith.constant dense<0.000000e+00> : vector<8x96xf32>
    %494 = tpu.matmul %490, %360, %cst_119 {dimension_numbers = #tpu.dot_dimension_numbers<[1], [0], [0], [1], [0, 0, 1, 1], [], []>} : vector<8x32xf32>, vector<32x96xf32>, vector<8x96xf32> -> vector<8x96xf32>
    %495 = vector.broadcast %361 : vector<1x96xf32> to vector<8x96xf32>
    %496 = arith.addf %494, %495 : vector<8x96xf32>
    %497 = vector.extract_strided_slice %493 {offsets = [0, 0], sizes = [8, 64], strides = [1, 1]} : vector<8x96xf32> to vector<8x64xf32>
    %498 = vector.extract_strided_slice %496 {offsets = [0, 0], sizes = [8, 64], strides = [1, 1]} : vector<8x96xf32> to vector<8x64xf32>
    %499 = arith.addf %497, %498 : vector<8x64xf32>
    %500 = arith.negf %499 : vector<8x64xf32>
    %501 = math.exp %500 : vector<8x64xf32>
    %cst_120 = arith.constant 1.000000e+00 : f32
    %502 = vector.broadcast %cst_120 : f32 to vector<8x64xf32>
    %503 = arith.addf %502, %501 : vector<8x64xf32>
    %504 = arith.divf %502, %503 : vector<8x64xf32>
    %505 = vector.extract_strided_slice %493 {offsets = [0, 64], sizes = [8, 32], strides = [1, 1]} : vector<8x96xf32> to vector<8x32xf32>
    %506 = vector.extract_strided_slice %504 {offsets = [0, 0], sizes = [8, 32], strides = [1, 1]} : vector<8x64xf32> to vector<8x32xf32>
    %507 = vector.extract_strided_slice %496 {offsets = [0, 64], sizes = [8, 32], strides = [1, 1]} : vector<8x96xf32> to vector<8x32xf32>
    %508 = arith.mulf %506, %507 : vector<8x32xf32>
    %509 = arith.addf %505, %508 : vector<8x32xf32>
    %510 = math.tanh %509 : vector<8x32xf32>
    %511 = vector.extract_strided_slice %504 {offsets = [0, 32], sizes = [8, 32], strides = [1, 1]} : vector<8x64xf32> to vector<8x32xf32>
    %cst_121 = arith.constant 1.000000e+00 : f32
    %512 = vector.broadcast %cst_121 : f32 to vector<8x32xf32>
    %513 = arith.subf %512, %511 : vector<8x32xf32>
    %514 = arith.mulf %513, %510 : vector<8x32xf32>
    %515 = arith.mulf %511, %490 : vector<8x32xf32>
    %516 = arith.addf %514, %515 : vector<8x32xf32>
    %c40 = arith.constant 40 : index
    %c0_122 = arith.constant 0 : index
    %517 = vector.load %arg27[%c40, %c0_122] : memref<72x32xf32, #tpu.memory_space<vmem>>, vector<8x32xf32>
    tpu.vector_store %arg27[%c40, %c0_122], %516 {strides = array<i32>} : memref<72x32xf32, #tpu.memory_space<vmem>>, vector<8x32xf32>,
    %518 = vector.extract_strided_slice %79 {offsets = [48, 0], sizes = [8, 96], strides = [1, 1]} : vector<80x96xf32> to vector<8x96xf32>
    %519 = arith.addf %518, %359 : vector<8x96xf32>
    %cst_123 = arith.constant dense<0.000000e+00> : vector<8x96xf32>
    %520 = tpu.matmul %516, %360, %cst_123 {dimension_numbers = #tpu.dot_dimension_numbers<[1], [0], [0], [1], [0, 0, 1, 1], [], []>} : vector<8x32xf32>, vector<32x96xf32>, vector<8x96xf32> -> vector<8x96xf32>
    %521 = vector.broadcast %361 : vector<1x96xf32> to vector<8x96xf32>
    %522 = arith.addf %520, %521 : vector<8x96xf32>
    %523 = vector.extract_strided_slice %519 {offsets = [0, 0], sizes = [8, 64], strides = [1, 1]} : vector<8x96xf32> to vector<8x64xf32>
    %524 = vector.extract_strided_slice %522 {offsets = [0, 0], sizes = [8, 64], strides = [1, 1]} : vector<8x96xf32> to vector<8x64xf32>
    %525 = arith.addf %523, %524 : vector<8x64xf32>
    %526 = arith.negf %525 : vector<8x64xf32>
    %527 = math.exp %526 : vector<8x64xf32>
    %cst_124 = arith.constant 1.000000e+00 : f32
    %528 = vector.broadcast %cst_124 : f32 to vector<8x64xf32>
    %529 = arith.addf %528, %527 : vector<8x64xf32>
    %530 = arith.divf %528, %529 : vector<8x64xf32>
    %531 = vector.extract_strided_slice %519 {offsets = [0, 64], sizes = [8, 32], strides = [1, 1]} : vector<8x96xf32> to vector<8x32xf32>
    %532 = vector.extract_strided_slice %530 {offsets = [0, 0], sizes = [8, 32], strides = [1, 1]} : vector<8x64xf32> to vector<8x32xf32>
    %533 = vector.extract_strided_slice %522 {offsets = [0, 64], sizes = [8, 32], strides = [1, 1]} : vector<8x96xf32> to vector<8x32xf32>
    %534 = arith.mulf %532, %533 : vector<8x32xf32>
    %535 = arith.addf %531, %534 : vector<8x32xf32>
    %536 = math.tanh %535 : vector<8x32xf32>
    %537 = vector.extract_strided_slice %530 {offsets = [0, 32], sizes = [8, 32], strides = [1, 1]} : vector<8x64xf32> to vector<8x32xf32>
    %cst_125 = arith.constant 1.000000e+00 : f32
    %538 = vector.broadcast %cst_125 : f32 to vector<8x32xf32>
    %539 = arith.subf %538, %537 : vector<8x32xf32>
    %540 = arith.mulf %539, %536 : vector<8x32xf32>
    %541 = arith.mulf %537, %516 : vector<8x32xf32>
    %542 = arith.addf %540, %541 : vector<8x32xf32>
    %c48 = arith.constant 48 : index
    %c0_126 = arith.constant 0 : index
    %543 = vector.load %arg27[%c48, %c0_126] : memref<72x32xf32, #tpu.memory_space<vmem>>, vector<8x32xf32>
    tpu.vector_store %arg27[%c48, %c0_126], %542 {strides = array<i32>} : memref<72x32xf32, #tpu.memory_space<vmem>>, vector<8x32xf32>,
    %544 = vector.extract_strided_slice %79 {offsets = [56, 0], sizes = [8, 96], strides = [1, 1]} : vector<80x96xf32> to vector<8x96xf32>
    %545 = arith.addf %544, %359 : vector<8x96xf32>
    %cst_127 = arith.constant dense<0.000000e+00> : vector<8x96xf32>
    %546 = tpu.matmul %542, %360, %cst_127 {dimension_numbers = #tpu.dot_dimension_numbers<[1], [0], [0], [1], [0, 0, 1, 1], [], []>} : vector<8x32xf32>, vector<32x96xf32>, vector<8x96xf32> -> vector<8x96xf32>
    %547 = vector.broadcast %361 : vector<1x96xf32> to vector<8x96xf32>
    %548 = arith.addf %546, %547 : vector<8x96xf32>
    %549 = vector.extract_strided_slice %545 {offsets = [0, 0], sizes = [8, 64], strides = [1, 1]} : vector<8x96xf32> to vector<8x64xf32>
    %550 = vector.extract_strided_slice %548 {offsets = [0, 0], sizes = [8, 64], strides = [1, 1]} : vector<8x96xf32> to vector<8x64xf32>
    %551 = arith.addf %549, %550 : vector<8x64xf32>
    %552 = arith.negf %551 : vector<8x64xf32>
    %553 = math.exp %552 : vector<8x64xf32>
    %cst_128 = arith.constant 1.000000e+00 : f32
    %554 = vector.broadcast %cst_128 : f32 to vector<8x64xf32>
    %555 = arith.addf %554, %553 : vector<8x64xf32>
    %556 = arith.divf %554, %555 : vector<8x64xf32>
    %557 = vector.extract_strided_slice %545 {offsets = [0, 64], sizes = [8, 32], strides = [1, 1]} : vector<8x96xf32> to vector<8x32xf32>
    %558 = vector.extract_strided_slice %556 {offsets = [0, 0], sizes = [8, 32], strides = [1, 1]} : vector<8x64xf32> to vector<8x32xf32>
    %559 = vector.extract_strided_slice %548 {offsets = [0, 64], sizes = [8, 32], strides = [1, 1]} : vector<8x96xf32> to vector<8x32xf32>
    %560 = arith.mulf %558, %559 : vector<8x32xf32>
    %561 = arith.addf %557, %560 : vector<8x32xf32>
    %562 = math.tanh %561 : vector<8x32xf32>
    %563 = vector.extract_strided_slice %556 {offsets = [0, 32], sizes = [8, 32], strides = [1, 1]} : vector<8x64xf32> to vector<8x32xf32>
    %cst_129 = arith.constant 1.000000e+00 : f32
    %564 = vector.broadcast %cst_129 : f32 to vector<8x32xf32>
    %565 = arith.subf %564, %563 : vector<8x32xf32>
    %566 = arith.mulf %565, %562 : vector<8x32xf32>
    %567 = arith.mulf %563, %542 : vector<8x32xf32>
    %568 = arith.addf %566, %567 : vector<8x32xf32>
    %c56 = arith.constant 56 : index
    %c0_130 = arith.constant 0 : index
    %569 = vector.load %arg27[%c56, %c0_130] : memref<72x32xf32, #tpu.memory_space<vmem>>, vector<8x32xf32>
    tpu.vector_store %arg27[%c56, %c0_130], %568 {strides = array<i32>} : memref<72x32xf32, #tpu.memory_space<vmem>>, vector<8x32xf32>,
    %570 = vector.extract_strided_slice %79 {offsets = [64, 0], sizes = [8, 96], strides = [1, 1]} : vector<80x96xf32> to vector<8x96xf32>
    %571 = arith.addf %570, %359 : vector<8x96xf32>
    %cst_131 = arith.constant dense<0.000000e+00> : vector<8x96xf32>
    %572 = tpu.matmul %568, %360, %cst_131 {dimension_numbers = #tpu.dot_dimension_numbers<[1], [0], [0], [1], [0, 0, 1, 1], [], []>} : vector<8x32xf32>, vector<32x96xf32>, vector<8x96xf32> -> vector<8x96xf32>
    %573 = vector.broadcast %361 : vector<1x96xf32> to vector<8x96xf32>
    %574 = arith.addf %572, %573 : vector<8x96xf32>
    %575 = vector.extract_strided_slice %571 {offsets = [0, 0], sizes = [8, 64], strides = [1, 1]} : vector<8x96xf32> to vector<8x64xf32>
    %576 = vector.extract_strided_slice %574 {offsets = [0, 0], sizes = [8, 64], strides = [1, 1]} : vector<8x96xf32> to vector<8x64xf32>
    %577 = arith.addf %575, %576 : vector<8x64xf32>
    %578 = arith.negf %577 : vector<8x64xf32>
    %579 = math.exp %578 : vector<8x64xf32>
    %cst_132 = arith.constant 1.000000e+00 : f32
    %580 = vector.broadcast %cst_132 : f32 to vector<8x64xf32>
    %581 = arith.addf %580, %579 : vector<8x64xf32>
    %582 = arith.divf %580, %581 : vector<8x64xf32>
    %583 = vector.extract_strided_slice %571 {offsets = [0, 64], sizes = [8, 32], strides = [1, 1]} : vector<8x96xf32> to vector<8x32xf32>
    %584 = vector.extract_strided_slice %582 {offsets = [0, 0], sizes = [8, 32], strides = [1, 1]} : vector<8x64xf32> to vector<8x32xf32>
    %585 = vector.extract_strided_slice %574 {offsets = [0, 64], sizes = [8, 32], strides = [1, 1]} : vector<8x96xf32> to vector<8x32xf32>
    %586 = arith.mulf %584, %585 : vector<8x32xf32>
    %587 = arith.addf %583, %586 : vector<8x32xf32>
    %588 = math.tanh %587 : vector<8x32xf32>
    %589 = vector.extract_strided_slice %582 {offsets = [0, 32], sizes = [8, 32], strides = [1, 1]} : vector<8x64xf32> to vector<8x32xf32>
    %cst_133 = arith.constant 1.000000e+00 : f32
    %590 = vector.broadcast %cst_133 : f32 to vector<8x32xf32>
    %591 = arith.subf %590, %589 : vector<8x32xf32>
    %592 = arith.mulf %591, %588 : vector<8x32xf32>
    %593 = arith.mulf %589, %568 : vector<8x32xf32>
    %594 = arith.addf %592, %593 : vector<8x32xf32>
    %c64 = arith.constant 64 : index
    %c0_134 = arith.constant 0 : index
    %595 = vector.load %arg27[%c64, %c0_134] : memref<72x32xf32, #tpu.memory_space<vmem>>, vector<8x32xf32>
    tpu.vector_store %arg27[%c64, %c0_134], %594 {strides = array<i32>} : memref<72x32xf32, #tpu.memory_space<vmem>>, vector<8x32xf32>,
    %c0_135 = arith.constant 0 : index
    %c0_136 = arith.constant 0 : index
    %596 = vector.load %arg27[%c0_135, %c0_136] : memref<72x32xf32, #tpu.memory_space<vmem>>, vector<72x32xf32>
    %c0_137 = arith.constant 0 : index
    %c0_138 = arith.constant 0 : index
    %597 = vector.load %arg24[%c0_137, %c0_138] : memref<32x20xf32, #tpu.memory_space<vmem>>, vector<32x20xf32>
    %cst_139 = arith.constant dense<0.000000e+00> : vector<72x20xf32>
    %598 = tpu.matmul %596, %597, %cst_139 {dimension_numbers = #tpu.dot_dimension_numbers<[1], [0], [0], [1], [0, 0, 1, 1], [], []>} : vector<72x32xf32>, vector<32x20xf32>, vector<72x20xf32> -> vector<72x20xf32>
    %c0_140 = arith.constant 0 : index
    %c0_141 = arith.constant 0 : index
    %599 = vector.load %arg25[%c0_140, %c0_141] : memref<1x20xf32, #tpu.memory_space<vmem>>, vector<1x20xf32>
    %600 = vector.broadcast %599 : vector<1x20xf32> to vector<72x20xf32>
    %601 = arith.addf %598, %600 : vector<72x20xf32>
    %c0_142 = arith.constant 0 : index
    %c0_143 = arith.constant 0 : index
    %602 = vector.load %arg5[%c0_142, %c0_143] : memref<72x1xi32, #tpu.memory_space<vmem>>, vector<72x1xi32>
    %603 = tpu.iota {dimensions = array<i32: 1>} : vector<72x20xi32>
    %604 = vector.broadcast %602 : vector<72x1xi32> to vector<72x20xi32>
    %605 = arith.cmpi eq, %603, %604 : vector<72x20xi32>
    %606 = arith.extui %605 : vector<72x20xi1> to vector<72x20xi32>
    %607 = arith.sitofp %606 : vector<72x20xi32> to vector<72x20xf32>
    %c0_i32 = arith.constant 0 : i32
    %608 = vector.broadcast %c0_i32 : i32 to vector<72x1xi32>
    %609 = arith.cmpi ne, %602, %608 : vector<72x1xi32>
    %610 = arith.extui %609 : vector<72x1xi1> to vector<72x1xi32>
    %611 = arith.sitofp %610 : vector<72x1xi32> to vector<72x1xf32>
    %cst_144 = arith.constant dense<0xFF800000> : vector<72xf32>
    %612 = vector.multi_reduction <maximumf>, %601, %cst_144 [1] : vector<72x20xf32> to vector<72xf32>
    %613 = vector.shape_cast %612 : vector<72xf32> to vector<72x1xf32>
    %614 = vector.broadcast %613 : vector<72x1xf32> to vector<72x20xf32>
    %615 = arith.subf %601, %614 : vector<72x20xf32>
    %616 = math.exp %615 : vector<72x20xf32>
    %cst_145 = arith.constant dense<0.000000e+00> : vector<72xf32>
    %617 = vector.multi_reduction <add>, %616, %cst_145 [1] : vector<72x20xf32> to vector<72xf32>
    %618 = vector.shape_cast %617 : vector<72xf32> to vector<72x1xf32>
    %619 = math.log %618 : vector<72x1xf32>
    %620 = arith.addf %613, %619 : vector<72x1xf32>
    %621 = arith.mulf %601, %607 : vector<72x20xf32>
    %cst_146 = arith.constant dense<0.000000e+00> : vector<72xf32>
    %622 = vector.multi_reduction <add>, %621, %cst_146 [1] : vector<72x20xf32> to vector<72xf32>
    %623 = vector.shape_cast %622 : vector<72xf32> to vector<72x1xf32>
    %624 = arith.subf %620, %623 : vector<72x1xf32>
    %625 = arith.mulf %624, %611 : vector<72x1xf32>
    %cst_147 = arith.constant dense<0.000000e+00> : vector<1xf32>
    %626 = vector.multi_reduction <add>, %625, %cst_147 [0] : vector<72x1xf32> to vector<1xf32>
    %627 = vector.shape_cast %626 : vector<1xf32> to vector<1x1xf32>
    %cst_148 = arith.constant dense<0.000000e+00> : vector<1xf32>
    %628 = vector.multi_reduction <add>, %611, %cst_148 [0] : vector<72x1xf32> to vector<1xf32>
    %629 = vector.shape_cast %628 : vector<1xf32> to vector<1x1xf32>
    %cst_149 = arith.constant 1.000000e+00 : f32
    %630 = vector.broadcast %cst_149 : f32 to vector<1x1xf32>
    %631 = arith.maximumf %629, %630 : vector<1x1xf32>
    %632 = arith.divf %627, %631 : vector<1x1xf32>
    %633 = tpu.concatenate %352, %632 in 1 : vector<1x1xf32>, vector<1x1xf32> -> vector<1x2xf32>
    %c0_150 = arith.constant 0 : index
    %c0_151 = arith.constant 0 : index
    %634 = vector.load %arg26[%c0_150, %c0_151] : memref<1x2xf32, #tpu.memory_space<vmem>>, vector<1x2xf32>
    tpu.vector_store %arg26[%c0_150, %c0_151], %633 {strides = array<i32>} : memref<1x2xf32, #tpu.memory_space<vmem>>, vector<1x2xf32>,
    return
  }
}

</mosaic_0001>

<bundles_post_ra>
// kernel: gvae_forward.1
= control target key start
LH: loop header
LB: loop body
LE: loop exit
PB: predicated region body
PF: predicated region fallthrough
CT: control target
= control target key end

     0   :  { %vm123_vm0 = vcmask 64512   ;;  %vm262_vm1 = vcmask 523264   ;;  %vm532_vm2 = vcmask 130048   ;;  %vm917_vm3 = vcmask 261120   ;;  %s5761_s7 = inlined_call_operand.vmem [shape: f32[8,256], index: 7, kind: input, shape index: {}]   ;;  %s5762_s0 = inlined_call_operand.vmem [shape: f32[64,8], index: 0, kind: input, shape index: {}]   ;;  %s5763_s8 = inlined_call_operand.vmem [shape: f32[1,256], index: 8, kind: input, shape index: {}]   ;;  %s5764_s1 = inlined_call_operand.vmem [shape: f32[3,64,64], index: 1, kind: input, shape index: {}]   ;;  %s5765_s9 = inlined_call_operand.vmem [shape: f32[16,128], index: 9, kind: input, shape index: {}]   ;;  %s5766_s15 = inlined_call_operand.vmem [shape: f32[32,96], index: 15, kind: input, shape index: {}]   ;;  %s5767_s10 = inlined_call_operand.vmem [shape: f32[32,64], index: 10, kind: input, shape index: {}]   ;;  %s5768_s16 = inlined_call_operand.vmem [shape: f32[1,96], index: 16, kind: input, shape index: {}]   ;;  %s5769_s13 = inlined_call_operand.vmem [shape: f32[16,192], index: 13, kind: input, shape index: {}]   ;;  %s5770_s3 = inlined_call_operand.vmem [shape: f32[80,16], index: 3, kind: input, shape index: {}]   ;;  %s5771_s14 = inlined_call_operand.vmem [shape: f32[1,192], index: 14, kind: input, shape index: {}]   ;;  %s5772_s2 = inlined_call_operand.vmem [shape: f32[8,64], index: 2, kind: input, shape index: {}]   ;;  %s5773_s11 = inlined_call_operand.vmem [shape: f32[32,32], index: 11, kind: input, shape index: {}]   ;;  %s5774_s12 = inlined_call_operand.vmem [shape: f32[1,32], index: 12, kind: input, shape index: {}]   ;;  %s5775_s18 = inlined_call_operand.vmem [shape: f32[1,32], index: 18, kind: input, shape index: {}]   ;;  %s5776_s17 = inlined_call_operand.vmem [shape: f32[64,32], index: 17, kind: input, shape index: {}]   ;;  %s5777_s4 = inlined_call_operand.vmem [shape: f32[8,16], index: 4, kind: input, shape index: {}]   ;;  %s5778_s19 = inlined_call_operand.vmem [shape: f32[16,32], index: 19, kind: input, shape index: {}]   ;;  %s5779_s21 = inlined_call_operand.vmem [shape: f32[16,96], index: 21, kind: input, shape index: {}]   ;;  %s5780_s20 = inlined_call_operand.vmem [shape: f32[1,32], index: 20, kind: input, shape index: {}]   ;;  %s5781_s22 = inlined_call_operand.vmem [shape: f32[32,96], index: 22, kind: input, shape index: {}]   ;;  %s5782_s23 = inlined_call_operand.vmem [shape: f32[1,96], index: 23, kind: input, shape index: {}]   ;;  %s5783_s24 = inlined_call_operand.vmem [shape: f32[32,20], index: 24, kind: input, shape index: {}]   ;;  %s5784_s25 = inlined_call_operand.vmem [shape: f32[1,20], index: 25, kind: input, shape index: {}]   ;;  %s5785_s5 = inlined_call_operand.vmem [shape: s32[72,1], index: 5, kind: input, shape index: {}]   ;;  %s5786_s6 = inlined_call_operand.vmem [shape: f32[8,1], index: 6, kind: input, shape index: {}]   ;;  %s5787_s26 = inlined_call_operand.vmem [shape: f32[1,2], index: 26, kind: output, shape index: {}]  }
   0x1   :  { %5800 = sst [smem:[#allocation3_spill]] %s5761_s7 }
   0x2   :  { %5801 = sst [smem:[#allocation4_spill]] %s5762_s0 }
   0x3   :  { %5802 = sst [smem:[#allocation5_spill]] %s5763_s8  ;;  %s4083_s8 = smov 96  }
   0x4   :  { %5803 = sst [smem:[#allocation6_spill]] %s5764_s1 }
   0x5   :  { %5804 = sst [smem:[#allocation7_spill]] %s5765_s9 }
   0x6   :  { %5805 = sst [smem:[#allocation8_spill]] %s5766_s15  ;;  %s4084_s15 = smov 80  }
   0x7   :  { %5806 = sst [smem:[#allocation9_spill]] %s5767_s10 }
   0x8   :  { %5807 = sst [smem:[#allocation10_spill]] %s5768_s16 }
   0x9   :  { %5808 = sst [smem:[#allocation11_spill]] %s5769_s13  ;;  %s4085_s13 = smov 64  }
   0xa   :  { %5809 = sst [smem:[#allocation12_spill]] %s5770_s3  ;;  %s4086_s3 = smov 32  }
   0xb   :  { %5810 = sst [smem:[#allocation13_spill]] %s5771_s14 }
   0xc   :  { %s5811_s16 = sld [smem:[#allocation3_spill]] }
   0xd   :  { %s5812_s9 = sld [smem:[#allocation4_spill]] }
   0xe   :  { %s5813_s30 = sld [smem:[#allocation5_spill]] }
   0xf   :  { %s5814_s27 = sld [smem:[#allocation6_spill]] }
  0x10   :  { %s5817_s29 = sld [smem:[#allocation9_spill]] }
  0x11   :  { %s5818_s14 = sld [smem:[#allocation11_spill]] }
  0x12   :  { %v115_v0 = vld [vmem:[%s5811_s16] sm:$0xff]  ;;  %v116_v31 = vld [vmem:[%s5811_s16 + $0x8] sm:$0xff]  ;;  %s5819_s1 = sld [smem:[#allocation12_spill]] }
  0x13   :  { %v83_v1 = vld [vmem:[%s5812_s9] sm:$0xff]  ;;  %163 = vmatpush.msra.mxu0 %v115_v0  ;;  %v84_v2 = vld [vmem:[%s5812_s9 + $0x8] sm:$0xff]  ;;  %v85_v3 = vld [vmem:[%s5812_s9 + $0x10] sm:$0xff]  ;;  %204 = vmatpush.msra.mxu1 %v116_v31  ;;  %s5820_s28 = sld [smem:[#allocation10_spill]] }
  0x14   :  { %3466 = vmatmul.msk.f32.vlgmr.msra.gmra.mxu0 %vm123_vm0, %v83_v1  ;;  %v86_v4 = vld [vmem:[%s5812_s9 + $0x18] sm:$0xff]  ;;  %v4249_v5 = vld [vmem:[%s5812_s9 + $0x20] sm:$0xff]  ;;  %v4256_v6 = vld [vmem:[%s5812_s9 + $0x28] sm:$0xff]  ;;  %3474 = vmatmul.msk.f32.vlgmr.msra.gmra.mxu1 %vm123_vm0, %v83_v1  ;;  %s5821_s7 = sld [smem:[#allocation13_spill]] }
  0x15   :  { %v4263_v7 = vld [vmem:[%s5812_s9 + $0x30] sm:$0xff]  ;;  %v4270_v8 = vld [vmem:[%s5812_s9 + $0x38] sm:$0xff]  ;;  %v4277_v12 = vld [vmem:[%s5813_s30] sm:$0x3]  ;;  %s5798_s9 = smov 112   ;;  %s5816_s30 = sld [smem:[#allocation8_spill]] }
  0x16   :  { %v119_v13 = vperm.slane %v4277_v12, 0  ;;  %v4332_v45 = vld [vmem:[%s5814_s27 + $0x68] sm:$0xff]  ;;  %v4337_v47 = vld [vmem:[%s5814_s27 + $0x40] sm:$0xff]  ;;  %v4351_v53 = vld [vmem:[%s5814_s27 + $0x70] sm:$0xff] }
  0x17   :  { %v4356_v55 = vld [vmem:[%s5814_s27 + $0x48] sm:$0xff]  ;;  %v4364_v58 = vld [vmem:[%s5814_s27 + $0x58] sm:$0xff]  ;;  %v4383_v62 = vld [vmem:[%s5814_s27 + $0x80] sm:$0xff] }
  0x18   :  { %v4378_v61 = vld [vmem:[%s5814_s27 + $0x78] sm:$0xff]  ;;  %v4391_v63 = vld [vmem:[%s5814_s27 + $0x60] sm:$0xff]  ;;  %v4407_v1 = vld [vmem:[%s5814_s27 + $0x88] sm:$0xff] }
  0x19   :  { %v4402_v0 = vld [vmem:[%s5814_s27] sm:$0xff] }
  0x1c   :  { %3467 = vmatmul.msk.f32.gmra.mxu0 %vm123_vm0, %v84_v2  ;;  %3475 = vmatmul.msk.f32.gmra.mxu1 %vm123_vm0, %v84_v2  ;;  %v4412_v2 = vld [vmem:[%s5814_s27 + $0x50] sm:$0xff] }
  0x24   :  { %3468 = vmatmul.msk.f32.gmra.mxu0 %vm123_vm0, %v85_v3  ;;  %3476 = vmatmul.msk.f32.gmra.mxu1 %vm123_vm0, %v85_v3  ;;  %v4423_v3 = vld [vmem:[%s5814_s27 + $0x8] sm:$0xff] }
  0x2c   :  { %3469 = vmatmul.msk.f32.gmra.mxu0 %vm123_vm0, %v86_v4  ;;  %3477 = vmatmul.msk.f32.gmra.mxu1 %vm123_vm0, %v86_v4  ;;  %v4428_v4 = vld [vmem:[%s5814_s27 + $0x90] sm:$0xff] }
  0x34   :  { %3470 = vmatmul.msk.f32.gmra.mxu0 %vm123_vm0, %v4249_v5  ;;  %3478 = vmatmul.msk.f32.gmra.mxu1 %vm123_vm0, %v4249_v5  ;;  %v4437_v5 = vld [vmem:[%s5814_s27 + $0x10] sm:$0xff] }
  0x3c   :  { %3471 = vmatmul.msk.f32.gmra.mxu0 %vm123_vm0, %v4256_v6  ;;  %3479 = vmatmul.msk.f32.gmra.mxu1 %vm123_vm0, %v4256_v6  ;;  %v4442_v6 = vld [vmem:[%s5814_s27 + $0x98] sm:$0xff] }
  0x44   :  { %3472 = vmatmul.msk.f32.gmra.mxu0 %vm123_vm0, %v4263_v7  ;;  %3480 = vmatmul.msk.f32.gmra.mxu1 %vm123_vm0, %v4263_v7  ;;  %v4451_v7 = vld [vmem:[%s5814_s27 + $0x18] sm:$0xff] }
  0x4c   :  { %3473 = vmatmul.msk.f32.gmra.mxu0 %vm123_vm0, %v4270_v8  ;;  %3481 = vmatmul.msk.f32.gmra.mxu1 %vm123_vm0, %v4270_v8  ;;  %v4456_v8 = vld [vmem:[%s5814_s27 + $0xa0] sm:$0xff] }
  0x91   :  { %v165_v9 = vpop.f32.mrf.mxu0 }
  0x92   :  { %v4289_v20 = vadd.f32 %v165_v9, %v119_v13  ;;  %v4465_v9 = vld [vmem:[%s5814_s27 + $0x20] sm:$0xff] }
  0x99   :  { %v168_v10 = vpop.f32.mrf.mxu0 }
  0x9a   :  { %v4287_v18 = vadd.f32 %v168_v10, %v119_v13  ;;  %v4470_v10 = vld [vmem:[%s5814_s27 + $0xa8] sm:$0xff] }
  0x9c   :  { %v3702_v21 = vpack.i.bf16 %v4289_v20, %v4287_v18 }
  0xa1   :  { %v171_v11 = vpop.f32.mrf.mxu0 }
  0xa2   :  { %v4280_v15 = vadd.f32 %v171_v11, %v119_v13  ;;  %v4479_v11 = vld [vmem:[%s5814_s27 + $0x28] sm:$0xff] }
  0xa9   :  { %v174_v14 = vpop.f32.mrf.mxu0 }
  0xaa   :  { %v4282_v16 = vadd.f32 %v174_v14, %v119_v13  ;;  %v4493_v14 = vld [vmem:[%s5814_s27 + $0x30] sm:$0xff] }
  0xac   :  { %v3697_v17 = vpack.i.bf16 %v4280_v15, %v4282_v16 }
  0xae   :  { %3698 = vrot.lane.b32.xlu1 %v3697_v17, %s5798_s9 }
  0xb1   :  { %v177_v19 = vpop.f32.mrf.mxu0 }
  0xb2   :  { %v4307_v29 = vadd.f32 %v177_v19, %v119_v13  ;;  %v4507_v19 = vld [vmem:[%s5814_s27 + $0x38] sm:$0xff] }
  0xb6   :  { %3703 = vrot.lane.b32.xlu1 %v3702_v21, %s5798_s9 }
  0xb9   :  { %v180_v22 = vpop.f32.mrf.mxu0 }
  0xba   :  { %v4302_v28 = vadd.f32 %v180_v22, %v119_v13 }
  0xbc   :  { %v3712_v30 = vpack.i.bf16 %v4307_v29, %v4302_v28 }
  0xbe   :  { %3723 = vrot.lane.b32.xlu1 %v3702_v21, %s4083_s8  ;;  %v4511_v21 = vpop.f32.mrf.mxu1 }
  0xc1   :  { %v183_v23 = vpop.f32.mrf.mxu0 }
  0xc2   :  { %v4296_v25 = vadd.f32 %v183_v23, %v119_v13 }
  0xc6   :  { %494 = vrot.lane.b32.xlu1 %v4280_v15, %s4084_s15  ;;  %v4513_v22 = vpop.f32.mrf.mxu1 }
  0xc9   :  { %v186_v24 = vpop.f32.mrf.mxu0 }
  0xca   :  { %v4298_v26 = vadd.f32 %v186_v24, %v119_v13  ;;  %v4484_v13 = vld [vmem:[%s5814_s27 + $0xb0] sm:$0xff] }
  0xcc   :  { %v3707_v27 = vpack.i.bf16 %v4296_v25, %v4298_v26 }
  0xce   :  { %3708 = vrot.lane.b32.xlu2 %v3707_v27, %s4083_s8  ;;  %3688 = vrot.lane.b32.xlu0 %v3707_v27, %s5798_s9  ;;  %v4515_v23 = vpop.f32.mrf.mxu1 }
  0xcf   :  { %500 = vrot.lane.b32.xlu1 %v4302_v28, %s4084_s15 }
  0xd6   :  { %3713 = vrot.lane.b32.xlu2 %v3712_v30, %s4083_s8  ;;  %3693 = vrot.lane.b32.xlu0 %v3712_v30, %s5798_s9  ;;  %v4517_v24 = vpop.f32.mrf.mxu1 }
  0xde   :  { %3718 = vrot.lane.b32.xlu0 %v3697_v17, %s4083_s8  ;;  %490 = vrot.lane.b32.xlu2 %v4289_v20, %s4084_s15  ;;  %v4498_v17 = vld [vmem:[%s5814_s27 + $0xb8] sm:$0xff]  ;;  %v4519_v30 = vpop.f32.mrf.mxu1  ;;  %s5815_s27 = sld [smem:[#allocation7_spill]] }
  0xe6   :  { %492 = vrot.lane.b32.xlu0 %v4287_v18, %s4084_s15  ;;  %496 = vrot.lane.b32.xlu2 %v4282_v16, %s4084_s15 }
  0xee   :  { %498 = vrot.lane.b32.xlu0 %v4307_v29, %s4084_s15  ;;  %502 = vrot.lane.b32.xlu2 %v4296_v25, %s4084_s15 }
  0xf6   :  { %504 = vrot.lane.b32.xlu0 %v4298_v26, %s4084_s15 }
 0x120   :  { %v3699_v35 = vpop.permute.xlu1 %3698 }
 0x121   :  { %v3700_v40 = vunpack.i.l.bf16 %v3699_v35  ;;  %v3701_v42 = vunpack.i.h.bf16 %v3699_v35 }
 0x128   :  { %v3709_v39 = vpop.permute.xlu2 %3708  ;;  %v3704_v41 = vpop.permute.xlu1 %3703 }
 0x129   :  { %v3705_v43 = vunpack.i.l.bf16 %v3704_v41  ;;  %v3706_v44 = vunpack.i.h.bf16 %v3704_v41  ;;  %v3710_v46 = vunpack.i.l.bf16 %v3709_v39  ;;  %v3711_v49 = vunpack.i.h.bf16 %v3709_v39 }
 0x130   :  { %v3714_v48 = vpop.permute.xlu2 %3713  ;;  %v3724_v56 = vpop.permute.xlu1 %3723 }
 0x131   :  { %v3715_v50 = vunpack.i.l.bf16 %v3714_v48  ;;  %v3716_v52 = vunpack.i.h.bf16 %v3714_v48  ;;  %v3725_v59 = vunpack.i.l.bf16 %v3724_v56  ;;  %v3726_v60 = vunpack.i.h.bf16 %v3724_v56 }
 0x140   :  { %v3689_v32 = vpop.permute.xlu0 %3688 }
 0x141   :  { %v3690_v33 = vunpack.i.l.bf16 %v3689_v32  ;;  %v3691_v34 = vunpack.i.h.bf16 %v3689_v32 }
 0x143   :  { %295 = vmatpush.msrb.mxu0 %v3690_v33  ;;  %3653 = vmatpush.msrb.mxu1 %v3690_v33 }
 0x144   :  { %3654 = vmatpush.msra.mxu2 %v3690_v33  ;;  %3655 = vmatpush.msra.mxu3 %v3690_v33  ;;  %v531_v33 = vld [vmem:[%s5815_s27 + $0x8] sm:$0xff] }
 0x145   :  { %296 = vmatpush.msrb.mxu0 %v3691_v34  ;;  %3656 = vmatpush.msrb.mxu1 %v3691_v34 }
 0x146   :  { %3657 = vmatpush.msra.mxu2 %v3691_v34  ;;  %3658 = vmatpush.msra.mxu3 %v3691_v34  ;;  %v530_v34 = vld [vmem:[%s5815_s27] sm:$0xff] }
 0x148   :  { %v3694_v36 = vpop.permute.xlu0 %3693 }
 0x149   :  { %v3695_v37 = vunpack.i.l.bf16 %v3694_v36  ;;  %v3696_v38 = vunpack.i.h.bf16 %v3694_v36  ;;  %v4529_v36 = vpop.f32.mrf.mxu1 }
 0x14b   :  { %297 = vmatpush.msrb.mxu0 %v3695_v37  ;;  %3659 = vmatpush.msrb.mxu1 %v3695_v37 }
 0x14c   :  { %3660 = vmatpush.msra.mxu2 %v3695_v37  ;;  %3661 = vmatpush.msra.mxu3 %v3695_v37 }
 0x14d   :  { %298 = vmatpush.msrb.mxu0 %v3696_v38  ;;  %3662 = vmatpush.msrb.mxu1 %v3696_v38 }
 0x14e   :  { %3663 = vmatpush.msra.mxu2 %v3696_v38  ;;  %3664 = vmatpush.msra.mxu3 %v3696_v38 }
 0x14f   :  { %299 = vmatpush.msrb.mxu0 %v3700_v40  ;;  %3665 = vmatpush.msrb.mxu1 %v3700_v40 }
 0x150   :  { %3666 = vmatpush.msra.mxu2 %v3700_v40  ;;  %3667 = vmatpush.msra.mxu3 %v3700_v40  ;;  %v3719_v51 = vpop.permute.xlu0 %3718 }
 0x151   :  { %300 = vmatpush.msrb.mxu0 %v3701_v42  ;;  %3668 = vmatpush.msrb.mxu1 %v3701_v42  ;;  %v3720_v54 = vunpack.i.l.bf16 %v3719_v51  ;;  %v3721_v57 = vunpack.i.h.bf16 %v3719_v51  ;;  %v4533_v39 = vpop.f32.mrf.mxu1 }
 0x152   :  { %3669 = vmatpush.msra.mxu2 %v3701_v42  ;;  %3670 = vmatpush.msra.mxu3 %v3701_v42 }
 0x153   :  { %301 = vmatpush.msrb.mxu0 %v3705_v43  ;;  %3671 = vmatpush.msrb.mxu1 %v3705_v43 }
 0x154   :  { %3672 = vmatpush.msra.mxu2 %v3705_v43  ;;  %3673 = vmatpush.msra.mxu3 %v3705_v43 }
 0x155   :  { %302 = vmatpush.msrb.mxu0 %v3706_v44  ;;  %3674 = vmatpush.msrb.mxu1 %v3706_v44 }
 0x156   :  { %3675 = vmatpush.msra.mxu2 %v3706_v44  ;;  %3676 = vmatpush.msra.mxu3 %v3706_v44  ;;  %v491_v44 = vpop.permute.xlu2 %490 }
 0x157   :  { %3487 = vmatmul.msk.f32.vlgmr.msra.gmra.mxu3 %vm262_vm1, %v4332_v45  ;;  %449 = vmatpush.msra.mxu0 %v3710_v46 }
 0x158   :  { %360 = vmatpush.msrb.mxu3 %v4298_v26  ;;  %3482 = vmatmul.msk.f32.vlgmr.msrb.gmra.mxu0 %vm262_vm1, %v4337_v47 }
 0x159   :  { %450 = vmatpush.msra.mxu0 %v3711_v49  ;;  %3485 = vmatmul.msk.f32.vlgmr.msra.gmra.mxu2 %vm262_vm1, %v4364_v58  ;;  %v4535_v46 = vpop.f32.mrf.mxu1 }
 0x15a   :  { %361 = vmatpush.msrb.mxu3 %v4296_v25  ;;  %3484 = vmatmul.msk.f32.vlgmr.msrb.gmra.mxu1 %vm262_vm1, %v4412_v2 }
 0x15b   :  { %451 = vmatpush.msra.mxu0 %v3715_v50  ;;  %571 = vmatpush.msra.mxu1 %v531_v33 }
 0x15c   :  { %362 = vmatpush.msrb.mxu3 %v4302_v28 }
 0x15d   :  { %452 = vmatpush.msra.mxu0 %v3716_v52  ;;  %572 = vmatpush.msra.mxu1 %v530_v34 }
 0x15e   :  { %363 = vmatpush.msrb.mxu3 %v4307_v29 }
 0x15f   :  { %3488 = vmatmul.msk.f32.gmra.mxu3 %vm262_vm1, %v4351_v53  ;;  %453 = vmatpush.msra.mxu0 %v3720_v54  ;;  %v493_v54 = vpop.permute.xlu0 %492 }
 0x160   :  { %364 = vmatpush.msrb.mxu3 %v4282_v16  ;;  %3483 = vmatmul.msk.f32.gmra.mxu0 %vm262_vm1, %v4356_v55 }
 0x161   :  { %454 = vmatpush.msra.mxu0 %v3721_v57  ;;  %3486 = vmatmul.msk.f32.gmra.mxu2 %vm262_vm1, %v4391_v63 }
 0x162   :  { %365 = vmatpush.msrb.mxu3 %v4280_v15 }
 0x163   :  { %455 = vmatpush.msra.mxu0 %v3725_v59 }
 0x164   :  { %366 = vmatpush.msrb.mxu3 %v4287_v18 }
 0x165   :  { %456 = vmatpush.msra.mxu0 %v3726_v60 }
 0x166   :  { %367 = vmatpush.msrb.mxu3 %v4289_v20 }
 0x167   :  { %3489 = vmatmul.msk.f32.gmra.mxu3 %vm262_vm1, %v4378_v61 }
 0x168   :  { %3498 = vmatmul.msk.f32.vlgmr.msra.gmra.mxu0 %vm262_vm1, %v4383_v62 }
 0x16f   :  { %3490 = vmatmul.msk.f32.vlgmr.msrb.gmra.mxu3 %vm262_vm1, %v4402_v0 }
 0x170   :  { %3499 = vmatmul.msk.f32.gmra.mxu0 %vm262_vm1, %v4407_v1 }
 0x177   :  { %3491 = vmatmul.msk.f32.gmra.mxu3 %vm262_vm1, %v4423_v3 }
 0x178   :  { %3500 = vmatmul.msk.f32.gmra.mxu0 %vm262_vm1, %v4428_v4 }
 0x17f   :  { %3492 = vmatmul.msk.f32.gmra.mxu3 %vm262_vm1, %v4437_v5 }
 0x180   :  { %3501 = vmatmul.msk.f32.gmra.mxu0 %vm262_vm1, %v4442_v6 }
 0x187   :  { %3493 = vmatmul.msk.f32.gmra.mxu3 %vm262_vm1, %v4451_v7 }
 0x188   :  { %3502 = vmatmul.msk.f32.gmra.mxu0 %vm262_vm1, %v4456_v8 }
 0x18f   :  { %3494 = vmatmul.msk.f32.gmra.mxu3 %vm262_vm1, %v4465_v9 }
 0x190   :  { %3503 = vmatmul.msk.f32.gmra.mxu0 %vm262_vm1, %v4470_v10 }
 0x197   :  { %3495 = vmatmul.msk.f32.gmra.mxu3 %vm262_vm1, %v4479_v11 }
 0x198   :  { %3504 = vmatmul.msk.f32.gmra.mxu0 %vm262_vm1, %v4484_v13 }
 0x19f   :  { %3496 = vmatmul.msk.f32.gmra.mxu3 %vm262_vm1, %v4493_v14 }
 0x1a0   :  { %3505 = vmatmul.msk.f32.gmra.mxu0 %vm262_vm1, %v4498_v17 }
 0x1a7   :  { %3497 = vmatmul.msk.f32.gmra.mxu3 %vm262_vm1, %v4507_v19 }
 0x1d5   :  { %v304_v27 = vpop.f32.mrf.mxu0 }
 0x1d7   :  { %v310_v59 = vpop.f32.mrf.mxu1 }
 0x1da   :  { %v319_v31 = vpop.f32.mrf.mxu3 }
 0x1dd   :  { %v307_v32 = vpop.f32.mrf.mxu0 }
 0x1e2   :  { %v4527_v35 = vpop.f32.mrf.mxu3 }
 0x1e5   :  { %v458_v37 = vpop.f32.mrf.mxu0 }
 0x1ea   :  { %v4531_v38 = vpop.f32.mrf.mxu3 }
 0x1ed   :  { %v461_v40 = vpop.f32.mrf.mxu0 }
 0x1f2   :  { %v369_v41 = vpop.f32.mrf.mxu3 }
 0x1f3   :  { %v370_v42 = vadd.f32 %v369_v41, %v304_v27  ;;  %v313_v41 = vpop.f32.mrf.mxu2 }
 0x1f5   :  { %v482_v43 = vadd.f32 %v458_v37, %v370_v42  ;;  %v464_v49 = vpop.f32.mrf.mxu0  ;;  %v495_v37 = vpop.permute.xlu1 %494 }
 0x1f7   :  { %v514_v48 = vadd.f32 %v491_v44, %v482_v43 }
 0x1f9   :  { %3796 = vtanh.f32 %v514_v48 }
 0x1fa   :  { %v372_v50 = vpop.f32.mrf.mxu3 }
 0x1fb   :  { %v373_v51 = vadd.f32 %v372_v50, %v307_v32  ;;  %v497_v50 = vpop.permute.xlu2 %496 }
 0x1fd   :  { %v483_v52 = vadd.f32 %v461_v40, %v373_v51  ;;  %v467_v27 = vpop.f32.mrf.mxu0 }
 0x1ff   :  { %v3797_v56 = vpop.eup %3796  ;;  %v515_v57 = vadd.f32 %v493_v54, %v483_v52  ;;  %v316_v54 = vpop.f32.mrf.mxu2 }
 0x200   :  { %3506 = vmatmul.msk.f32.vlgmr.msra.gmra.mxu1 %vm532_vm2, %v3797_v56 }
 0x201   :  { %3798 = vtanh.f32 %v515_v57 }
 0x202   :  { %v375_v60 = vpop.f32.mrf.mxu3 }
 0x203   :  { %v376_v33 = vadd.f32 %v375_v60, %v310_v59  ;;  %v499_v59 = vpop.permute.xlu0 %498 }
 0x205   :  { %v484_v34 = vadd.f32 %v464_v49, %v376_v33  ;;  %v470_v44 = vpop.f32.mrf.mxu0 }
 0x207   :  { %v3799_v42 = vpop.eup %3798  ;;  %v516_v43 = vadd.f32 %v495_v37, %v484_v34 }
 0x208   :  { %3507 = vmatmul.msk.f32.gmra.mxu1 %vm532_vm2, %v3799_v42  ;;  %v501_v42 = vpop.permute.xlu1 %500 }
 0x209   :  { %3800 = vtanh.f32 %v516_v43 }
 0x20a   :  { %v378_v32 = vpop.f32.mrf.mxu3 }
 0x20b   :  { %v379_v40 = vadd.f32 %v378_v32, %v313_v41 }
 0x20d   :  { %v485_v48 = vadd.f32 %v467_v27, %v379_v40  ;;  %v473_v60 = vpop.f32.mrf.mxu0 }
 0x20f   :  { %v3801_v51 = vpop.eup %3800  ;;  %v517_v52 = vadd.f32 %v497_v50, %v485_v48 }
 0x210   :  { %3508 = vmatmul.msk.f32.gmra.mxu1 %vm532_vm2, %v3801_v51  ;;  %v503_v51 = vpop.permute.xlu2 %502 }
 0x211   :  { %3802 = vtanh.f32 %v517_v52 }
 0x212   :  { %v381_v56 = vpop.f32.mrf.mxu3 }
 0x213   :  { %v382_v49 = vadd.f32 %v381_v56, %v316_v54 }
 0x215   :  { %v486_v57 = vadd.f32 %v470_v44, %v382_v49  ;;  %v476_v40 = vpop.f32.mrf.mxu0 }
 0x217   :  { %v3803_v33 = vpop.eup %3802  ;;  %v518_v34 = vadd.f32 %v499_v59, %v486_v57  ;;  %v505_v59 = vpop.permute.xlu0 %504 }
 0x218   :  { %3509 = vmatmul.msk.f32.gmra.mxu1 %vm532_vm2, %v3803_v33 }
 0x219   :  { %3804 = vtanh.f32 %v518_v34 }
 0x21a   :  { %v384_v37 = vpop.f32.mrf.mxu3 }
 0x21b   :  { %v385_v41 = vadd.f32 %v384_v37, %v319_v31 }
 0x21d   :  { %v487_v27 = vadd.f32 %v473_v60, %v385_v41  ;;  %v479_v31 = vpop.f32.mrf.mxu0 }
 0x21f   :  { %v3805_v43 = vpop.eup %3804  ;;  %v519_v32 = vadd.f32 %v501_v42, %v487_v27 }
 0x220   :  { %3510 = vmatmul.msk.f32.gmra.mxu1 %vm532_vm2, %v3805_v43 }
 0x221   :  { %3806 = vtanh.f32 %v519_v32 }
 0x222   :  { %v387_v48 = vpop.f32.mrf.mxu3 }
 0x223   :  { %v388_v44 = vadd.f32 %v387_v48, %v4527_v35 }
 0x225   :  { %v488_v50 = vadd.f32 %v476_v40, %v388_v44  ;;  %v120_v44 = vperm.slane %v4277_v12, 1 }
 0x227   :  { %v3807_v52 = vpop.eup %3806  ;;  %v520_v54 = vadd.f32 %v503_v51, %v488_v50  ;;  %v4581_v50 = vadd.f32 %v4535_v46, %v120_v44 }
 0x228   :  { %3511 = vmatmul.msk.f32.gmra.mxu1 %vm532_vm2, %v3807_v52  ;;  %v4584_v52 = vadd.f32 %v4533_v39, %v120_v44 }
 0x229   :  { %3808 = vtanh.f32 %v520_v54 }
 0x22a   :  { %v390_v56 = vpop.f32.mrf.mxu3 }
 0x22b   :  { %v391_v49 = vadd.f32 %v390_v56, %v4531_v38 }
 0x22d   :  { %v489_v57 = vadd.f32 %v479_v31, %v391_v49  ;;  %v4590_v49 = vadd.f32 %v4529_v36, %v120_v44  ;;  %v4601_v36 = vadd.f32 %v4517_v24, %v120_v44 }
 0x22f   :  { %v3809_v60 = vpop.eup %3808  ;;  %v521_v33 = vadd.f32 %v505_v59, %v489_v57 }
 0x230   :  { %3512 = vmatmul.msk.f32.gmra.mxu1 %vm532_vm2, %v3809_v60 }
 0x231   :  { %3810 = vtanh.f32 %v521_v33 }
 0x237   :  { %v3811_v34 = vpop.eup %3810 }
 0x238   :  { %3513 = vmatmul.msk.f32.gmra.mxu1 %vm532_vm2, %v3811_v34 }
 0x27d   :  { %v4547_v35 = vpop.f32.mrf.mxu1 }
 0x285   :  { %v4549_v37 = vpop.f32.mrf.mxu1 }
 0x28d   :  { %v4551_v41 = vpop.f32.mrf.mxu1 }
 0x295   :  { %v4553_v27 = vpop.f32.mrf.mxu1 }
 0x29d   :  { %v4555_v42 = vpop.f32.mrf.mxu1 }
 0x2a5   :  { %v4557_v38 = vpop.f32.mrf.mxu1 }
 0x2a6   :  { %616 = vrot.lane.b32.xlu0 %v4557_v38, %s4085_s13 }
 0x2ad   :  { %v4561_v43 = vpop.f32.mrf.mxu1 }
 0x2ae   :  { %610 = vrot.lane.b32.xlu0 %v4551_v41, %s4085_s13  ;;  %618 = vrot.lane.b32.xlu2 %v4561_v43, %s4085_s13 }
 0x2b5   :  { %v4567_v32 = vpop.f32.mrf.mxu1 }
 0x2b6   :  { %612 = vrot.lane.b32.xlu2 %v4553_v27, %s4085_s13  ;;  %620 = vrot.lane.b32.xlu1 %v4567_v32, %s4085_s13 }
 0x2be   :  { %606 = vrot.lane.b32.xlu2 %v4547_v35, %s4085_s13  ;;  %614 = vrot.lane.b32.xlu1 %v4555_v42, %s4085_s13 }
 0x2c6   :  { %608 = vrot.lane.b32.xlu1 %v4549_v37, %s4085_s13 }
 0x308   :  { %v619_v40 = vpop.permute.xlu2 %618 }
 0x309   :  { %v642_v54 = vadd.f32 %v619_v40, %v4296_v25  ;;  %v643_v57 = vadd.f32 %v619_v40, %v4584_v52  ;;  %v4597_v25 = vadd.f32 %v4519_v30, %v120_v44 }
 0x310   :  { %v613_v59 = vpop.permute.xlu2 %612 }
 0x311   :  { %v636_v33 = vadd.f32 %v613_v59, %v4282_v16  ;;  %v637_v30 = vadd.f32 %v613_v59, %v4601_v36 }
 0x318   :  { %v617_v48 = vpop.permute.xlu0 %616  ;;  %v607_v16 = vpop.permute.xlu2 %606 }
 0x319   :  { %v641_v60 = vadd.f32 %v617_v48, %v4590_v49  ;;  %v640_v34 = vadd.f32 %v617_v48, %v4302_v28  ;;  %v4616_v28 = vadd.f32 %v4513_v22, %v120_v44  ;;  %v630_v48 = vadd.f32 %v607_v16, %v4289_v20 }
 0x320   :  { %v611_v46 = vpop.permute.xlu0 %610 }
 0x328   :  { %v621_v51 = vpop.permute.xlu1 %620 }
 0x329   :  { %v644_v56 = vadd.f32 %v621_v51, %v4298_v26  ;;  %v645_v31 = vadd.f32 %v621_v51, %v4581_v50  ;;  %v634_v26 = vadd.f32 %v611_v46, %v4280_v15 }
 0x32b   :  { %792 = vmatpush.msrb.mxu0 %v645_v31  ;;  %v3742_v12 = vpack.i.bf16 %v642_v54, %v644_v56  ;;  %v4608_v54 = vadd.f32 %v4515_v23, %v120_v44  ;;  %v3747_v15 = vpack.i.bf16 %v634_v26, %v636_v33  ;;  %v4619_v23 = vadd.f32 %v4511_v21, %v120_v44  ;;  %v4689_v33 = vld [vmem:[%s5816_s30 + $0x10] sm:$0xff] }
 0x32d   :  { %793 = vmatpush.msrb.mxu0 %v643_v57  ;;  %3743 = vrot.lane.b32.xlu1 %v3742_v12, %s4085_s13  ;;  %v635_v24 = vadd.f32 %v611_v46, %v4608_v54 }
 0x32e   :  { %3733 = vrot.lane.b32.xlu0 %v3742_v12, %s4086_s3  ;;  %v631_v12 = vadd.f32 %v607_v16, %v4619_v23 }
 0x32f   :  { %794 = vmatpush.msrb.mxu0 %v641_v60 }
 0x330   :  { %v615_v39 = vpop.permute.xlu1 %614 }
 0x331   :  { %v638_v40 = vadd.f32 %v615_v39, %v4307_v29  ;;  %v639_v51 = vadd.f32 %v615_v39, %v4597_v25  ;;  %v4679_v39 = vld [vmem:[%s5816_s30 + $0x18] sm:$0xff] }
 0x333   :  { %795 = vmatpush.msrb.mxu0 %v639_v51  ;;  %v3737_v56 = vpack.i.bf16 %v638_v40, %v640_v34  ;;  %v4695_v34 = vld [vmem:[%s5816_s30 + $0x8] sm:$0xff] }
 0x335   :  { %3748 = vrot.lane.b32.xlu1 %v3747_v15, %s4086_s3  ;;  %796 = vmatpush.msrb.mxu0 %v637_v30 }
 0x336   :  { %3738 = vrot.lane.b32.xlu0 %v3737_v56, %s4085_s13  ;;  %3728 = vrot.lane.b32.xlu2 %v3737_v56, %s4086_s3 }
 0x337   :  { %797 = vmatpush.msrb.mxu0 %v635_v24 }
 0x338   :  { %v609_v29 = vpop.permute.xlu1 %608 }
 0x339   :  { %v632_v31 = vadd.f32 %v609_v29, %v4287_v18  ;;  %v633_v57 = vadd.f32 %v609_v29, %v4616_v28 }
 0x33b   :  { %798 = vmatpush.msrb.mxu0 %v633_v57  ;;  %v3762_v59 = vpack.i.bf16 %v630_v48, %v632_v31 }
 0x33d   :  { %799 = vmatpush.msrb.mxu0 %v631_v12  ;;  %3763 = vrot.lane.b32.xlu1 %v3762_v59, %s4085_s13 }
 0x33e   :  { %3753 = vrot.lane.b32.xlu2 %v3747_v15, %s4085_s13  ;;  %3758 = vrot.lane.b32.xlu0 %v3762_v59, %s4086_s3  ;;  %v4772_v15 = vld [vmem:[%s5820_s28] ss:$0 sm:$0xff] }
 0x33f   :  { %3530 = vmatmul.msk.f32.vlgmr.msrb.gmra.mxu0 %vm262_vm1, %v4383_v62 }
 0x340   :  { %1478 = vmatpush.msra.mxu0 %v4679_v39 }
 0x342   :  { %1479 = vmatpush.msra.mxu0 %v4689_v33 }
 0x344   :  { %1480 = vmatpush.msra.mxu0 %v4695_v34 }
 0x345   :  { %843 = vrot.lane.b32.xlu1 %v4616_v28, %s4083_s8 }
 0x346   :  { %841 = vrot.lane.b32.xlu2 %v4619_v23, %s4083_s8  ;;  %873 = vrot.lane.b32.xlu0 %v4547_v35, %s4086_s3 }
 0x347   :  { %3531 = vmatmul.msk.f32.gmra.mxu0 %vm262_vm1, %v4407_v1 }
 0x34d   :  { %877 = vrot.lane.b32.xlu1 %v4551_v41, %s4086_s3 }
 0x34e   :  { %875 = vrot.lane.b32.xlu2 %v4549_v37, %s4086_s3  ;;  %845 = vrot.lane.b32.xlu0 %v4608_v54, %s4083_s8 }
 0x34f   :  { %3532 = vmatmul.msk.f32.gmra.mxu0 %vm262_vm1, %v4428_v4 }
 0x355   :  { %849 = vrot.lane.b32.xlu1 %v4597_v25, %s4083_s8 }
 0x356   :  { %847 = vrot.lane.b32.xlu2 %v4601_v36, %s4083_s8  ;;  %879 = vrot.lane.b32.xlu0 %v4553_v27, %s4086_s3 }
 0x357   :  { %3533 = vmatmul.msk.f32.gmra.mxu0 %vm262_vm1, %v4442_v6 }
 0x35d   :  { %883 = vrot.lane.b32.xlu1 %v4557_v38, %s4086_s3 }
 0x35e   :  { %881 = vrot.lane.b32.xlu2 %v4555_v42, %s4086_s3  ;;  %851 = vrot.lane.b32.xlu0 %v4590_v49, %s4083_s8 }
 0x35f   :  { %3534 = vmatmul.msk.f32.gmra.mxu0 %vm262_vm1, %v4456_v8 }
 0x365   :  { %855 = vrot.lane.b32.xlu1 %v4581_v50, %s4083_s8 }
 0x366   :  { %853 = vrot.lane.b32.xlu2 %v4584_v52, %s4083_s8  ;;  %885 = vrot.lane.b32.xlu0 %v4561_v43, %s4086_s3 }
 0x367   :  { %3535 = vmatmul.msk.f32.gmra.mxu0 %vm262_vm1, %v4470_v10 }
 0x36e   :  { %887 = vrot.lane.b32.xlu2 %v4567_v32, %s4086_s3 }
 0x36f   :  { %3536 = vmatmul.msk.f32.gmra.mxu0 %vm262_vm1, %v4484_v13 }
 0x377   :  { %3537 = vmatmul.msk.f32.gmra.mxu0 %vm262_vm1, %v4498_v17 }
 0x390   :  { %v3729_v20 = vpop.permute.xlu2 %3728 }
 0x391   :  { %v3730_v10 = vunpack.i.l.bf16 %v3729_v20  ;;  %v3731_v22 = vunpack.i.h.bf16 %v3729_v20 }
 0x398   :  { %v3754_v17 = vpop.permute.xlu2 %3753 }
 0x399   :  { %v3755_v42 = vunpack.i.l.bf16 %v3754_v17  ;;  %v3756_v38 = vunpack.i.h.bf16 %v3754_v17 }
 0x39f   :  { %v3744_v18 = vpop.permute.xlu1 %3743 }
 0x3a0   :  { %v3734_v62 = vpop.permute.xlu0 %3733  ;;  %v3745_v1 = vunpack.i.l.bf16 %v3744_v18  ;;  %v3746_v6 = vunpack.i.h.bf16 %v3744_v18  ;;  %v842_v29 = vpop.permute.xlu2 %841 }
 0x3a1   :  { %v3735_v4 = vunpack.i.l.bf16 %v3734_v62  ;;  %v3736_v8 = vunpack.i.h.bf16 %v3734_v62 }
 0x3a2   :  { %751 = vmatpush.msra.mxu3 %v3745_v1 }
 0x3a3   :  { %686 = vmatpush.msrb.mxu2 %v3735_v4 }
 0x3a4   :  { %752 = vmatpush.msra.mxu3 %v3746_v6 }
 0x3a5   :  { %687 = vmatpush.msrb.mxu2 %v3736_v8 }
 0x3a7   :  { %688 = vmatpush.msrb.mxu2 %v3730_v10  ;;  %v3749_v21 = vpop.permute.xlu1 %3748 }
 0x3a8   :  { %v3739_v35 = vpop.permute.xlu0 %3738  ;;  %v3750_v13 = vunpack.i.l.bf16 %v3749_v21  ;;  %v3751_v27 = vunpack.i.h.bf16 %v3749_v21  ;;  %v876_v6 = vpop.permute.xlu2 %875 }
 0x3a9   :  { %v3740_v37 = vunpack.i.l.bf16 %v3739_v35  ;;  %689 = vmatpush.msrb.mxu2 %v3731_v22  ;;  %v3741_v41 = vunpack.i.h.bf16 %v3739_v35 }
 0x3ab   :  { %690 = vmatpush.msrb.mxu2 %v3750_v13  ;;  %753 = vmatpush.msra.mxu3 %v3740_v37 }
 0x3ad   :  { %691 = vmatpush.msrb.mxu2 %v3751_v27  ;;  %754 = vmatpush.msra.mxu3 %v3741_v41 }
 0x3af   :  { %755 = vmatpush.msra.mxu3 %v3755_v42  ;;  %v3764_v43 = vpop.permute.xlu1 %3763 }
 0x3b0   :  { %v3759_v32 = vpop.permute.xlu0 %3758  ;;  %v3765_v44 = vunpack.i.l.bf16 %v3764_v43  ;;  %v3766_v60 = vunpack.i.h.bf16 %v3764_v43 }
 0x3b1   :  { %756 = vmatpush.msra.mxu3 %v3756_v38  ;;  %v3760_v46 = vunpack.i.l.bf16 %v3759_v32  ;;  %v3761_v26 = vunpack.i.h.bf16 %v3759_v32 }
 0x3b3   :  { %692 = vmatpush.msrb.mxu2 %v3760_v46  ;;  %757 = vmatpush.msra.mxu3 %v3765_v44  ;;  %v848_v46 = vpop.permute.xlu2 %847 }
 0x3b5   :  { %693 = vmatpush.msrb.mxu2 %v3761_v26  ;;  %758 = vmatpush.msra.mxu3 %v3766_v60 }
 0x3b6   :  { %3514 = vmatmul.msk.f32.vlgmr.msrb.gmra.mxu2 %vm262_vm1, %v4337_v47  ;;  %3522 = vmatmul.msk.f32.vlgmr.msra.gmra.mxu3 %vm262_vm1, %v4402_v0  ;;  %v4701_v47 = vld [vmem:[%s5816_s30] sm:$0xff]  ;;  %v4087_v0 = vmov 0.0  }
 0x3b7   :  { %1481 = vmatpush.msra.mxu0 %v4701_v47  ;;  %v844_v1 = vpop.permute.xlu1 %843 }
 0x3b8   :  { %1482 = vmatmul.f32.vlgmr.msra.gmra.mxu0 %v4087_v0  ;;  %v874_v57 = vpop.permute.xlu0 %873 }
 0x3b9   :  { %1606 = vmatpush.msrb.mxu0 %v4679_v39 }
 0x3bb   :  { %1607 = vmatpush.msrb.mxu0 %v4689_v33 }
 0x3bd   :  { %1608 = vmatpush.msrb.mxu0 %v4695_v34 }
 0x3be   :  { %3515 = vmatmul.msk.f32.gmra.mxu2 %vm262_vm1, %v4356_v55  ;;  %3523 = vmatmul.msk.f32.gmra.mxu3 %vm262_vm1, %v4423_v3  ;;  %v916_v55 = vld [vmem:[%s5817_s29 + $0x18] sm:$0xff] }
 0x3bf   :  { %1609 = vmatpush.msrb.mxu0 %v4701_v47  ;;  %954 = vmatpush.msrb.mxu1 %v916_v55  ;;  %v878_v41 = vpop.permute.xlu1 %877 }
 0x3c0   :  { %v846_v37 = vpop.permute.xlu0 %845 }
 0x3c1   :  { %1734 = vmatpush.msra.mxu0 %v4679_v39 }
 0x3c3   :  { %1735 = vmatpush.msra.mxu0 %v4689_v33 }
 0x3c5   :  { %1736 = vmatpush.msra.mxu0 %v4695_v34 }
 0x3c6   :  { %3516 = vmatmul.msk.f32.gmra.mxu2 %vm262_vm1, %v4412_v2  ;;  %3524 = vmatmul.msk.f32.gmra.mxu3 %vm262_vm1, %v4437_v5 }
 0x3c7   :  { %1737 = vmatpush.msra.mxu0 %v4701_v47 }
 0x3c8   :  { %v880_v26 = vpop.permute.xlu0 %879 }
 0x3ce   :  { %3517 = vmatmul.msk.f32.gmra.mxu2 %vm262_vm1, %v4364_v58  ;;  %3525 = vmatmul.msk.f32.gmra.mxu3 %vm262_vm1, %v4451_v7  ;;  %v801_v58 = vpop.f32.mrf.mxu0 }
 0x3d6   :  { %3518 = vmatmul.msk.f32.gmra.mxu2 %vm262_vm1, %v4391_v63  ;;  %3526 = vmatmul.msk.f32.gmra.mxu3 %vm262_vm1, %v4465_v9  ;;  %v804_v63 = vpop.f32.mrf.mxu0  ;;  %v915_v9 = vld [vmem:[%s5817_s29 + $0x10] sm:$0xff] }
 0x3d7   :  { %955 = vmatpush.msrb.mxu1 %v915_v9 }
 0x3de   :  { %3519 = vmatmul.msk.f32.gmra.mxu2 %vm262_vm1, %v4332_v45  ;;  %3527 = vmatmul.msk.f32.gmra.mxu3 %vm262_vm1, %v4479_v11  ;;  %v1324_v45 = vld [vmem:[%s5818_s14 + $0x10] sm:$0xff]  ;;  %v807_v2 = vpop.f32.mrf.mxu0  ;;  %v914_v11 = vld [vmem:[%s5817_s29 + $0x8] sm:$0xff] }
 0x3df   :  { %1376 = vmatpush.msra.mxu2 %v1324_v45  ;;  %956 = vmatpush.msrb.mxu1 %v914_v11  ;;  %v882_v11 = vpop.permute.xlu2 %881 }
 0x3e6   :  { %3520 = vmatmul.msk.f32.gmra.mxu2 %vm262_vm1, %v4351_v53  ;;  %3528 = vmatmul.msk.f32.gmra.mxu3 %vm262_vm1, %v4493_v14  ;;  %v1322_v53 = vld [vmem:[%s5818_s14] sm:$0xff]  ;;  %v810_v3 = vpop.f32.mrf.mxu0 }
 0x3e7   :  { %1377 = vmatpush.msra.mxu2 %v1322_v53  ;;  %v913_v14 = vld [vmem:[%s5817_s29] sm:$0xff] }
 0x3e8   :  { %957 = vmatpush.msrb.mxu1 %v913_v14 }
 0x3ee   :  { %3521 = vmatmul.msk.f32.gmra.mxu2 %vm262_vm1, %v4378_v61  ;;  %3529 = vmatmul.msk.f32.gmra.mxu3 %vm262_vm1, %v4507_v19  ;;  %v1312_v61 = vld [vmem:[%s5819_s1] sm:$0xff]  ;;  %v813_v5 = vpop.f32.mrf.mxu0 }
 0x3f6   :  { %3556 = vmatmul.msk.f32.vlgmr.msra.gmra.mxu2 %vm532_vm2, %v1312_v61  ;;  %v4754_v7 = vpop.f32.mrf.mxu0  ;;  %v850_v61 = vpop.permute.xlu1 %849 }
 0x3fe   :  { %v4765_v19 = vpop.f32.mrf.mxu0 }
 0x406   :  { %v4767_v40 = vpop.f32.mrf.mxu0 }
 0x435   :  { %v1483_v16 = vpop.f32.mrf.mxu0 }
 0x436   :  { %v4775_v48 = vadd.f32 %v4772_v15, %v1483_v16  ;;  %v852_v16 = vpop.permute.xlu0 %851 }
 0x438   :  { %1507 = vrot.lane.b32.xlu0 %v4775_v48, %s4085_s13 }
 0x439   :  { %v695_v51 = vpop.f32.mrf.mxu2  ;;  %v760_v30 = vpop.f32.mrf.mxu3 }
 0x43a   :  { %v761_v56 = vadd.f32 %v760_v30, %v695_v51 }
 0x43c   :  { %v825_v24 = vadd.f32 %v801_v58, %v761_v56 }
 0x43e   :  { %v865_v31 = vadd.f32 %v842_v29, %v825_v24 }
 0x440   :  { %v897_v12 = vadd.f32 %v874_v57, %v865_v31  ;;  %v884_v31 = vpop.permute.xlu1 %883 }
 0x441   :  { %v698_v59 = vpop.f32.mrf.mxu2  ;;  %v763_v18 = vpop.f32.mrf.mxu3 }
 0x442   :  { %3812 = vtanh.f32 %v897_v12  ;;  %v764_v20 = vadd.f32 %v763_v18, %v698_v59 }
 0x444   :  { %v826_v62 = vadd.f32 %v804_v63, %v764_v20 }
 0x446   :  { %v866_v4 = vadd.f32 %v844_v1, %v826_v62  ;;  %v854_v62 = vpop.permute.xlu2 %853 }
 0x448   :  { %v3813_v8 = vpop.eup %3812  ;;  %v898_v10 = vadd.f32 %v876_v6, %v866_v4  ;;  %v886_v4 = vpop.permute.xlu0 %885 }
 0x449   :  { %v701_v21 = vpop.f32.mrf.mxu2  ;;  %v766_v22 = vpop.f32.mrf.mxu3  ;;  %3538 = vmatmul.msk.f32.vlgmr.msrb.gmra.mxu1 %vm917_vm3, %v3813_v8 }
 0x44a   :  { %3814 = vtanh.f32 %v898_v10  ;;  %v767_v35 = vadd.f32 %v766_v22, %v701_v21 }
 0x44c   :  { %v827_v13 = vadd.f32 %v807_v2, %v767_v35  ;;  %v856_v35 = vpop.permute.xlu1 %855 }
 0x44e   :  { %v867_v17 = vadd.f32 %v846_v37, %v827_v13  ;;  %v888_v37 = vpop.permute.xlu2 %887 }
 0x450   :  { %v3815_v27 = vpop.eup %3814  ;;  %v899_v42 = vadd.f32 %v878_v41, %v867_v17 }
 0x451   :  { %v704_v38 = vpop.f32.mrf.mxu2  ;;  %v769_v43 = vpop.f32.mrf.mxu3  ;;  %3539 = vmatmul.msk.f32.gmra.mxu1 %vm917_vm3, %v3815_v27  ;;  %v1326_v27 = vld [vmem:[%s5821_s7] sm:$0x3] }
 0x452   :  { %3816 = vtanh.f32 %v899_v42  ;;  %v770_v32 = vadd.f32 %v769_v43, %v704_v38  ;;  %v4793_v42 = vperm.slane %v1326_v27, 0 }
 0x454   :  { %v828_v44 = vadd.f32 %v810_v3, %v770_v32 }
 0x456   :  { %v868_v60 = vadd.f32 %v848_v46, %v828_v44 }
 0x458   :  { %v3817_v55 = vpop.eup %3816  ;;  %v900_v58 = vadd.f32 %v880_v26, %v868_v60 }
 0x459   :  { %v707_v63 = vpop.f32.mrf.mxu2  ;;  %v772_v45 = vpop.f32.mrf.mxu3  ;;  %3540 = vmatmul.msk.f32.gmra.mxu1 %vm917_vm3, %v3817_v55 }
 0x45a   :  { %3818 = vtanh.f32 %v900_v58  ;;  %v773_v2 = vadd.f32 %v772_v45, %v707_v63 }
 0x45c   :  { %v829_v53 = vadd.f32 %v813_v5, %v773_v2 }
 0x45e   :  { %v869_v9 = vadd.f32 %v850_v61, %v829_v53 }
 0x460   :  { %v3819_v14 = vpop.eup %3818  ;;  %v901_v51 = vadd.f32 %v882_v11, %v869_v9 }
 0x461   :  { %v710_v30 = vpop.f32.mrf.mxu2  ;;  %v775_v56 = vpop.f32.mrf.mxu3  ;;  %3541 = vmatmul.msk.f32.gmra.mxu1 %vm917_vm3, %v3819_v14 }
 0x462   :  { %3820 = vtanh.f32 %v901_v51  ;;  %v776_v3 = vadd.f32 %v775_v56, %v710_v30 }
 0x464   :  { %v830_v24 = vadd.f32 %v4754_v7, %v776_v3 }
 0x466   :  { %v870_v29 = vadd.f32 %v852_v16, %v830_v24 }
 0x468   :  { %v3821_v57 = vpop.eup %3820  ;;  %v902_v12 = vadd.f32 %v884_v31, %v870_v29 }
 0x469   :  { %v713_v59 = vpop.f32.mrf.mxu2  ;;  %v778_v5 = vpop.f32.mrf.mxu3  ;;  %3542 = vmatmul.msk.f32.gmra.mxu1 %vm917_vm3, %v3821_v57 }
 0x46a   :  { %3822 = vtanh.f32 %v902_v12  ;;  %v779_v18 = vadd.f32 %v778_v5, %v713_v59 }
 0x46c   :  { %v831_v20 = vadd.f32 %v4765_v19, %v779_v18 }
 0x46e   :  { %v871_v1 = vadd.f32 %v854_v62, %v831_v20 }
 0x470   :  { %v3823_v6 = vpop.eup %3822  ;;  %v903_v8 = vadd.f32 %v886_v4, %v871_v1 }
 0x471   :  { %v716_v10 = vpop.f32.mrf.mxu2  ;;  %v781_v7 = vpop.f32.mrf.mxu3  ;;  %3543 = vmatmul.msk.f32.gmra.mxu1 %vm917_vm3, %v3823_v6 }
 0x472   :  { %3824 = vtanh.f32 %v903_v8  ;;  %v782_v21 = vadd.f32 %v781_v7, %v716_v10 }
 0x474   :  { %v832_v22 = vadd.f32 %v4767_v40, %v782_v21 }
 0x476   :  { %v872_v13 = vadd.f32 %v856_v35, %v832_v22 }
 0x478   :  { %v3825_v17 = vpop.eup %3824  ;;  %v904_v41 = vadd.f32 %v888_v37, %v872_v13 }
 0x479   :  { %3544 = vmatmul.msk.f32.gmra.mxu1 %vm917_vm3, %v3825_v17  ;;  %v1379_v38 = vpop.f32.mrf.mxu2 }
 0x47a   :  { %3826 = vtanh.f32 %v904_v41  ;;  %v4796_v40 = vadd.f32 %v1379_v38, %v4793_v42 }
 0x47c   :  { %v1486_v32 = vadd.f32 %v4775_v48, %v4796_v40 }
 0x47e   :  { %v3576_v44 = vmul.f32 -1.442695, %v1486_v32 }
 0x480   :  { %v3827_v19 = vpop.eup %3826  ;;  %3828 = vpow2.f32 %v3576_v44 }
 0x481   :  { %3545 = vmatmul.msk.f32.gmra.mxu1 %vm917_vm3, %v3827_v19 }
 0x486   :  { %v3829_v26 = vpop.eup %3828 }
 0x487   :  { %v1490_v55 = vadd.f32 1.0, %v3829_v26 }
 0x489   :  { %3830 = vrcp.f32 %v1490_v55  ;;  %vm1496_vm4 = vweird.f32 %v1490_v55  ;;  %v1502_v11 = vand.u32 2147483648, %v1490_v55  ;;  %v1500_v14 = vand.u32 2147483647, %v1490_v55 }
 0x48b   :  { %v1503_v30 = vor.u32 1.1754944e-38, %v1502_v11  ;;  %vm1501_vm7 = vcmp.eq.f32.partialorder %v1500_v14, 8.507059e+37 }
 0x48f   :  { %v3831_v63 = vpop.eup %3830 }
 0x490   :  { %v1492_v2 = vmul.f32 %v3831_v63, %v1490_v55  ;;  %vm1497_vm5 = vweird.f32 %v3831_v63 }
 0x491   :  { %vm1498_vm6 = vmor %vm1496_vm4, %vm1497_vm5 }
 0x492   :  { %v1493_v53 = vsub.f32 1.0, %v1492_v2 }
 0x494   :  { %v1494_v9 = vmul.f32 %v3831_v63, %v1493_v53 }
 0x496   :  { %v1495_v48 = vadd.f32 %v3831_v63, %v1494_v9 }
 0x498   :  { %v1499_v56 = vsel %vm1498_vm6, %v3831_v63, %v1495_v48 }
 0x499   :  { %v4803_v24 = vsel %vm1501_vm7, %v1503_v30, %v1499_v56 }
 0x4aa   :  { %v1508_v3 = vpop.permute.xlu0 %1507 }
 0x4ab   :  { %v1510_v16 = vmul.f32 %v1508_v3, %v4803_v24 }
 0x4c6   :  { %v959_v43 = vpop.f32.mrf.mxu1 }
 0x4ce   :  { %v962_v46 = vpop.f32.mrf.mxu1 }
 0x4d6   :  { %v965_v60 = vpop.f32.mrf.mxu1 }
 0x4de   :  { %v968_v58 = vpop.f32.mrf.mxu1 }
 0x4e6   :  { %v971_v45 = vpop.f32.mrf.mxu1 }
 0x4ee   :  { %v974_v61 = vpop.f32.mrf.mxu1 }
 0x4ef   :  { %1001 = vrot.lane.b32.xlu0 %v974_v61, %s4085_s13 }
 0x4f6   :  { %v977_v51 = vpop.f32.mrf.mxu1 }
 0x4f7   :  { %995 = vrot.lane.b32.xlu0 %v965_v60, %s4085_s13  ;;  %1003 = vrot.lane.b32.xlu2 %v977_v51, %s4085_s13 }
 0x4fe   :  { %v980_v29 = vpop.f32.mrf.mxu1 }
 0x4ff   :  { %1512 = vrot.lane.b32.xlu0 %v1510_v16, %s4085_s13  ;;  %997 = vrot.lane.b32.xlu2 %v968_v58, %s4085_s13 }
 0x500   :  { %1005 = vrot.lane.b32.xlu1 %v980_v29, %s4085_s13 }
 0x507   :  { %991 = vrot.lane.b32.xlu2 %v959_v43, %s4085_s13 }
 0x508   :  { %999 = vrot.lane.b32.xlu1 %v971_v45, %s4085_s13 }
 0x510   :  { %993 = vrot.lane.b32.xlu1 %v962_v46, %s4085_s13 }
 0x551   :  { %v1004_v31 = vpop.permute.xlu2 %1003 }
 0x552   :  { %v1021_v57 = vadd.f32 %v1004_v31, %v4584_v52 }
 0x554   :  { %3832 = vtanh.f32 %v1021_v57 }
 0x559   :  { %v998_v12 = vpop.permute.xlu2 %997 }
 0x55a   :  { %v3833_v59 = vpop.eup %3832  ;;  %v1018_v5 = vadd.f32 %v998_v12, %v4601_v36 }
 0x55b   :  { %1203 = vrot.lane.b32.xlu2 %v3833_v59, %s4083_s8 }
 0x55c   :  { %3834 = vtanh.f32 %v1018_v5  ;;  %v3549_v19 = vmul.f32 -1.442695, %v1018_v5 }
 0x561   :  { %v1002_v18 = vpop.permute.xlu0 %1001  ;;  %v992_v20 = vpop.permute.xlu2 %991 }
 0x562   :  { %v3835_v62 = vpop.eup %3834  ;;  %v1020_v1 = vadd.f32 %v1002_v18, %v4590_v49  ;;  %v1015_v4 = vadd.f32 %v992_v20, %v4619_v23 }
 0x563   :  { %1197 = vrot.lane.b32.xlu2 %v3835_v62, %s4083_s8 }
 0x564   :  { %3836 = vtanh.f32 %v1020_v1  ;;  %v3546_v53 = vmul.f32 -1.442695, %v1015_v4 }
 0x565   :  { %3838 = vtanh.f32 %v1015_v4 }
 0x569   :  { %v996_v52 = vpop.permute.xlu0 %995 }
 0x56a   :  { %v3837_v6 = vpop.eup %3836  ;;  %v1017_v8 = vadd.f32 %v996_v52, %v4608_v54 }
 0x56b   :  { %v3839_v10 = vpop.eup %3838  ;;  %1201 = vrot.lane.b32.xlu0 %v3837_v6, %s4083_s8 }
 0x56c   :  { %3840 = vtanh.f32 %v1017_v8  ;;  %1191 = vrot.lane.b32.xlu2 %v3839_v10, %s4083_s8  ;;  %v3548_v27 = vmul.f32 -1.442695, %v1017_v8 }
 0x571   :  { %v1513_v36 = vpop.permute.xlu0 %1512 }
 0x572   :  { %v3841_v7 = vpop.eup %3840  ;;  %v1515_v49 = vadd.f32 %v1513_v36, %v4796_v40  ;;  %v1006_v21 = vpop.permute.xlu1 %1005 }
 0x573   :  { %v1022_v23 = vadd.f32 %v1006_v21, %v4581_v50  ;;  %1195 = vrot.lane.b32.xlu0 %v3841_v7, %s4083_s8 }
 0x574   :  { %3842 = vtanh.f32 %v1515_v49 }
 0x575   :  { %3844 = vtanh.f32 %v1022_v23  ;;  %v3553_v43 = vmul.f32 -1.442695, %v1022_v23 }
 0x57a   :  { %v3843_v22 = vpop.eup %3842  ;;  %v1000_v35 = vpop.permute.xlu1 %999 }
 0x57b   :  { %v3845_v54 = vpop.eup %3844  ;;  %v1019_v13 = vadd.f32 %v1000_v35, %v4597_v25  ;;  %1519 = vrot.lane.b32.xlu0 %v3843_v22, %s4083_s8  ;;  %v3552_v25 = vmul.f32 -1.442695, %v1021_v57 }
 0x57c   :  { %1205 = vrot.lane.b32.xlu1 %v3845_v54, %s4083_s8 }
 0x57d   :  { %3846 = vtanh.f32 %v1019_v13  ;;  %v3550_v26 = vmul.f32 -1.442695, %v1019_v13 }
 0x582   :  { %v994_v37 = vpop.permute.xlu1 %993 }
 0x583   :  { %v3847_v17 = vpop.eup %3846  ;;  %v1016_v41 = vadd.f32 %v994_v37, %v4616_v28  ;;  %v3551_v28 = vmul.f32 -1.442695, %v1020_v1 }
 0x584   :  { %1199 = vrot.lane.b32.xlu1 %v3847_v17, %s4083_s8 }
 0x585   :  { %3848 = vtanh.f32 %v1016_v41  ;;  %v3547_v61 = vmul.f32 -1.442695, %v1016_v41 }
 0x586   :  { %3850 = vpow2.f32 %v3549_v19 }
 0x587   :  { %3852 = vpow2.f32 %v3548_v27 }
 0x588   :  { %3854 = vpow2.f32 %v3552_v25 }
 0x589   :  { %3856 = vpow2.f32 %v3553_v43 }
 0x58b   :  { %v3849_v50 = vpop.eup %3848 }
 0x58c   :  { %1193 = vrot.lane.b32.xlu1 %v3849_v50, %s4083_s8  ;;  %v3851_v38 = vpop.eup %3850 }
 0x58d   :  { %v3853_v32 = vpop.eup %3852  ;;  %v4830_v44 = vadd.f32 1.0, %v3851_v38 }
 0x58e   :  { %v4832_v46 = vadd.f32 1.0, %v3853_v32  ;;  %v3855_v60 = vpop.eup %3854 }
 0x58f   :  { %3858 = vrcp.f32 %v4830_v44  ;;  %v3857_v55 = vpop.eup %3856  ;;  %v4836_v58 = vadd.f32 1.0, %v3855_v60  ;;  %vm1105_vm10 = vweird.f32 %v4830_v44  ;;  %v1111_v36 = vand.u32 2147483648, %v4830_v44 }
 0x590   :  { %3860 = vrcp.f32 %v4832_v46  ;;  %v4840_v45 = vadd.f32 1.0, %v3857_v55  ;;  %v1096_v7 = vand.u32 2147483648, %v4832_v46  ;;  %v1109_v22 = vand.u32 2147483647, %v4830_v44 }
 0x591   :  { %3862 = vpow2.f32 %v3551_v28  ;;  %vm1090_vm12 = vweird.f32 %v4832_v46  ;;  %v1094_v35 = vand.u32 2147483647, %v4832_v46  ;;  %v1112_v41 = vor.u32 1.1754944e-38, %v1111_v36 }
 0x592   :  { %3864 = vpow2.f32 %v3550_v26  ;;  %v1097_v19 = vor.u32 1.1754944e-38, %v1096_v7  ;;  %vm1110_vm14 = vcmp.eq.f32.partialorder %v1109_v22, 8.507059e+37  ;;  %v1156_v55 = vand.u32 2147483648, %v4836_v58 }
 0x593   :  { %3866 = vrcp.f32 %v4836_v58  ;;  %vm1095_vm15 = vcmp.eq.f32.partialorder %v1094_v35, 8.507059e+37  ;;  %vm1150_vm5 = vweird.f32 %v4836_v58  ;;  %vm1165_vm7 = vweird.f32 %v4840_v45 }
 0x594   :  { %3868 = vrcp.f32 %v4840_v45 }
 0x595   :  { %v4838_v63 = vpop.eup %3858  ;;  %3870 = vpow2.f32 %v3546_v53 }
 0x596   :  { %v3861_v2 = vpop.eup %3860  ;;  %v1101_v11 = vmul.f32 %v4838_v63, %v4830_v44  ;;  %3872 = vpow2.f32 %v3547_v61  ;;  %vm1106_vm8 = vweird.f32 %v4838_v63  ;;  %v1154_v61 = vand.u32 2147483647, %v4836_v58 }
 0x597   :  { %v3863_v9 = vpop.eup %3862  ;;  %v1086_v48 = vmul.f32 %v3861_v2, %v4832_v46  ;;  %vm1091_vm9 = vweird.f32 %v3861_v2  ;;  %vm4879_vm11 = vmor %vm1105_vm10, %vm1106_vm8 }
 0x598   :  { %v3865_v14 = vpop.eup %3864  ;;  %v4847_v51 = vadd.f32 1.0, %v3863_v9  ;;  %v1102_v3 = vsub.f32 1.0, %v1101_v11  ;;  %vm1092_vm13 = vmor %vm1090_vm12, %vm1091_vm9  ;;  %v1171_v11 = vand.u32 2147483648, %v4840_v45  ;;  %vm1155_vm9 = vcmp.eq.f32.partialorder %v1154_v61, 8.507059e+37 }
 0x599   :  { %v4849_v30 = vpop.eup %3866  ;;  %v4851_v56 = vadd.f32 1.0, %v3865_v14  ;;  %v1087_v16 = vsub.f32 1.0, %v1086_v48  ;;  %v1169_v48 = vand.u32 2147483647, %v4840_v45 }
 0x59a   :  { %v4853_v29 = vpop.eup %3868  ;;  %3874 = vrcp.f32 %v4847_v51  ;;  %v1146_v31 = vmul.f32 %v4849_v30, %v4836_v58  ;;  %v1103_v59 = vmul.f32 %v4838_v63, %v1102_v3  ;;  %vm1151_vm0 = vweird.f32 %v4849_v30 }
 0x59b   :  { %v3871_v12 = vpop.eup %3870  ;;  %3876 = vrcp.f32 %v4851_v56  ;;  %v1088_v5 = vmul.f32 %v3861_v2, %v1087_v16  ;;  %v1161_v20 = vmul.f32 %v4853_v29, %v4840_v45  ;;  %vm1166_vm4 = vweird.f32 %v4853_v29  ;;  %vm1152_vm6 = vmor %vm1150_vm5, %vm1151_vm0 }
 0x59c   :  { %v3873_v18 = vpop.eup %3872  ;;  %v4864_v62 = vadd.f32 1.0, %v3871_v12  ;;  %v1147_v1 = vsub.f32 1.0, %v1146_v31  ;;  %v1104_v6 = vadd.f32 %v4838_v63, %v1103_v59  ;;  %vm1167_vm8 = vmor %vm1165_vm7, %vm1166_vm4  ;;  %v1157_v58 = vor.u32 1.1754944e-38, %v1156_v55 }
 0x59d   :  { %v4869_v52 = vadd.f32 1.0, %v3873_v18  ;;  %v1089_v8 = vadd.f32 %v3861_v2, %v1088_v5  ;;  %v1162_v49 = vsub.f32 1.0, %v1161_v20  ;;  %v1172_v45 = vor.u32 1.1754944e-38, %v1171_v11 }
 0x59e   :  { %3878 = vrcp.f32 %v4864_v62  ;;  %v1148_v54 = vmul.f32 %v4849_v30, %v1147_v1  ;;  %v1108_v13 = vsel %vm4879_vm11, %v4838_v63, %v1104_v6  ;;  %vm1170_vm11 = vcmp.eq.f32.partialorder %v1169_v48, 8.507059e+37 }
 0x59f   :  { %3880 = vrcp.f32 %v4869_v52  ;;  %v1093_v17 = vsel %vm1092_vm13, %v3861_v2, %v1089_v8  ;;  %v1163_v27 = vmul.f32 %v4853_v29, %v1162_v49  ;;  %v1113_v38 = vsel %vm1110_vm14, %v1112_v41, %v1108_v13 }
 0x5a0   :  { %v4872_v10 = vpop.eup %3874  ;;  %v1098_v43 = vsel %vm1095_vm15, %v1097_v19, %v1093_v17  ;;  %v1149_v44 = vadd.f32 %v4849_v30, %v1148_v54  ;;  %vm1135_vm13 = vweird.f32 %v4847_v51  ;;  %v1141_v7 = vand.u32 2147483648, %v4847_v51 }
 0x5a1   :  { %v4877_v21 = vpop.eup %3876  ;;  %v1131_v37 = vmul.f32 %v4872_v10, %v4847_v51  ;;  %v1164_v63 = vadd.f32 %v4853_v29, %v1163_v27  ;;  %vm1136_vm10 = vweird.f32 %v4872_v10  ;;  %v1126_v49 = vand.u32 2147483648, %v4851_v56 }
 0x5a2   :  { %v1116_v25 = vmul.f32 %v4877_v21, %v4851_v56  ;;  %v1153_v14 = vsel %vm1152_vm6, %v4849_v30, %v1149_v44  ;;  %vm1121_vm12 = vweird.f32 %v4877_v21  ;;  %vm4930_vm14 = vmor %vm1135_vm13, %vm1136_vm10  ;;  %v1139_v22 = vand.u32 2147483647, %v4847_v51 }
 0x5a3   :  { %v1132_v28 = vsub.f32 1.0, %v1131_v37  ;;  %v1168_v31 = vsel %vm1167_vm8, %v4853_v29, %v1164_v63  ;;  %v1158_v5 = vsel %vm1155_vm9, %v1157_v58, %v1153_v14  ;;  %vm1120_vm15 = vweird.f32 %v4851_v56 }
 0x5a4   :  { %v4899_v26 = vpop.eup %3878  ;;  %v1117_v2 = vsub.f32 1.0, %v1116_v25  ;;  %v1173_v20 = vsel %vm1170_vm11, %v1172_v45, %v1168_v31  ;;  %vm1122_vm0 = vmor %vm1120_vm15, %vm1121_vm12  ;;  %v1142_v41 = vor.u32 1.1754944e-38, %v1141_v7  ;;  %v1127_v51 = vor.u32 1.1754944e-38, %v1126_v49  ;;  %v1283_v7 = vld [vmem:[%s5773_s11 + $0x18] sm:$0xff]  ;;  %v1282_v49 = vld [vmem:[%s5773_s11 + $0x10] sm:$0xff] }
 0x5a5   :  { %v4904_v53 = vpop.eup %3880  ;;  %v1056_v3 = vmul.f32 %v4899_v26, %v4864_v62  ;;  %v1133_v16 = vmul.f32 %v4872_v10, %v1132_v28  ;;  %vm1140_vm4 = vcmp.eq.f32.partialorder %v1139_v22, 8.507059e+37  ;;  %vm1061_vm6 = vweird.f32 %v4899_v26  ;;  %1303 = vmatpush.msrb.mxu3 %v1283_v7 }
 0x5a6   :  { %v1118_v12 = vmul.f32 %v4877_v21, %v1117_v2  ;;  %v1071_v59 = vmul.f32 %v4904_v53, %v4869_v52  ;;  %vm1076_vm7 = vweird.f32 %v4904_v53  ;;  %vm1060_vm8 = vweird.f32 %v4864_v62 }
 0x5a7   :  { %v1057_v30 = vsub.f32 1.0, %v1056_v3  ;;  %v1134_v18 = vadd.f32 %v4872_v10, %v1133_v16  ;;  %vm4952_vm9 = vmor %vm1060_vm8, %vm1061_vm6  ;;  %v1064_v44 = vand.u32 2147483647, %v4864_v62  ;;  %vm1075_vm10 = vweird.f32 %v4869_v52  ;;  %1304 = vmatpush.msrb.mxu3 %v1282_v49 }
 0x5a8   :  { %v1119_v8 = vadd.f32 %v4877_v21, %v1118_v12  ;;  %v1072_v36 = vsub.f32 1.0, %v1071_v59  ;;  %vm1077_vm11 = vmor %vm1075_vm10, %vm1076_vm7  ;;  %v1517_v55 = vsub.f32 1.0, %v4803_v24  ;;  %v1523_v3 = vmul.f32 0.0, %v4803_v24 }
 0x5a9   :  { %v1058_v54 = vmul.f32 %v4899_v26, %v1057_v30  ;;  %v1138_v13 = vsel %vm4930_vm14, %v4872_v10, %v1134_v18  ;;  %vm1065_vm12 = vcmp.eq.f32.partialorder %v1064_v44, 8.507059e+37 }
 0x5aa   :  { %v1123_v37 = vsel %vm1122_vm0, %v4877_v21, %v1119_v8  ;;  %v1073_v17 = vmul.f32 %v4904_v53, %v1072_v36  ;;  %v1066_v21 = vand.u32 2147483648, %v4864_v62  ;;  %v1223_v8 = vld [vmem:[%s5772_s2] sm:$0xff]  ;;  %s4088_s2 = smov 16  }
 0x5ac   :  { %v1067_v2 = vor.u32 1.1754944e-38, %v1066_v21 }
 0x5b5   :  { %v4858_v57 = vpop.permute.xlu2 %1203 }
 0x5b6   :  { %v1221_v29 = vmul.f32 %v4858_v57, %v1158_v5  ;;  %v1124_v57 = vand.u32 2147483647, %v4851_v56  ;;  %v1143_v56 = vsel %vm1140_vm4, %v1142_v41, %v1138_v13 }
 0x5b8   :  { %vm1125_vm5 = vcmp.eq.f32.partialorder %v1124_v57, 8.507059e+37 }
 0x5b9   :  { %v1128_v19 = vsel %vm1125_vm5, %v1127_v51, %v1123_v37 }
 0x5bd   :  { %v1198_v50 = vpop.permute.xlu2 %1197 }
 0x5be   :  { %v1218_v46 = vmul.f32 %v1198_v50, %v1113_v38  ;;  %v1059_v50 = vadd.f32 %v4899_v26, %v1058_v54  ;;  %v1074_v38 = vadd.f32 %v4904_v53, %v1073_v17 }
 0x5c0   :  { %v1078_v63 = vsel %vm1077_vm11, %v4904_v53, %v1074_v38  ;;  %v4974_v53 = vld [vmem:[%s5819_s1 + $0x8] sm:$0xff] }
 0x5c1   :  { %3557 = vmatmul.msk.f32.gmra.mxu2 %vm532_vm2, %v4974_v53 }
 0x5c6   :  { %v1192_v61 = vpop.permute.xlu2 %1191 }
 0x5dd   :  { %v4867_v4 = vpop.permute.xlu0 %1201 }
 0x5de   :  { %v1220_v25 = vmul.f32 %v4867_v4, %v1143_v56  ;;  %v1079_v4 = vand.u32 2147483647, %v4869_v52 }
 0x5e0   :  { %vm1080_vm13 = vcmp.eq.f32.partialorder %v1079_v4, 8.507059e+37 }
 0x5e5   :  { %v1196_v32 = vpop.permute.xlu0 %1195 }
 0x5e6   :  { %v1217_v60 = vmul.f32 %v1196_v32, %v1098_v43  ;;  %v1081_v43 = vand.u32 2147483648, %v4869_v52 }
 0x5e8   :  { %v3777_v9 = vpack.i.bf16 %v1217_v60, %v1218_v46  ;;  %v1063_v60 = vsel %vm4952_vm9, %v4899_v26, %v1059_v50  ;;  %v1082_v62 = vor.u32 1.1754944e-38, %v1081_v43 }
 0x5e9   :  { %v1068_v11 = vsel %vm1065_vm12, %v1067_v2, %v1063_v60 }
 0x5ea   :  { %3778 = vrot.lane.b32.xlu0 %v3777_v9, %s4085_s13  ;;  %v1083_v52 = vsel %vm1080_vm13, %v1082_v62, %v1078_v63  ;;  %v1215_v14 = vmul.f32 %v1192_v61, %v1068_v11  ;;  %v5036_v11 = vld [vmem:[%s5816_s30 + $0x10] sm:$0xff] }
 0x5ed   :  { %v1520_v28 = vpop.permute.xlu0 %1519 }
 0x5ee   :  { %v1206_v1 = vpop.permute.xlu1 %1205  ;;  %v1522_v9 = vmul.f32 %v1520_v28, %v1517_v55  ;;  %v5020_v28 = vld [vmem:[%s5819_s1 + $0x10] sm:$0xff] }
 0x5ef   :  { %v1222_v6 = vmul.f32 %v1206_v1, %v1173_v20  ;;  %3558 = vmatmul.msk.f32.gmra.mxu2 %vm532_vm2, %v5020_v28 }
 0x5f0   :  { %v4966_v26 = vadd.f32 %v1523_v3, %v1522_v9  ;;  %v5030_v9 = vld [vmem:[%s5816_s30 + $0x18] sm:$0xff] }
 0x5f1   :  { %v3767_v35 = vpack.i.bf16 %v1221_v29, %v1222_v6 }
 0x5f3   :  { %3768 = vrot.lane.b32.xlu1 %v3767_v35, %s4085_s13 }
 0x5f6   :  { %v1200_v27 = vpop.permute.xlu1 %1199 }
 0x5f7   :  { %v1219_v10 = vmul.f32 %v1200_v27, %v1128_v19 }
 0x5f9   :  { %v3772_v46 = vpack.i.bf16 %v1219_v10, %v1220_v25 }
 0x5fb   :  { %3773 = vrot.lane.b32.xlu2 %v3772_v46, %s4085_s13 }
 0x5fe   :  { %v1194_v48 = vpop.permute.xlu1 %1193 }
 0x5ff   :  { %v1216_v16 = vmul.f32 %v1194_v48, %v1083_v52  ;;  %v5042_v52 = vld [vmem:[%s5816_s30 + $0x8] sm:$0xff]  ;;  %v5048_v48 = vld [vmem:[%s5816_s30] sm:$0xff] }
 0x601   :  { %v3782_v58 = vpack.i.bf16 %v1215_v14, %v1216_v16 }
 0x603   :  { %1526 = vrot.lane.b32.xlu2 %v4966_v26, %s4083_s8  ;;  %3783 = vrot.lane.b32.xlu1 %v3782_v58, %s4085_s13 }
 0x644   :  { %v1382_v35 = vpop.f32.mrf.mxu2 }
 0x645   :  { %v5011_v57 = vadd.f32 %v1382_v35, %v4793_v42 }
 0x655   :  { %v3774_v24 = vpop.permute.xlu2 %3773 }
 0x656   :  { %v3775_v45 = vunpack.i.l.bf16 %v3774_v24  ;;  %v3776_v30 = vunpack.i.h.bf16 %v3774_v24 }
 0x65c   :  { %v3779_v5 = vpop.permute.xlu0 %3778 }
 0x65d   :  { %v3780_v18 = vunpack.i.l.bf16 %v3779_v5  ;;  %v3781_v20 = vunpack.i.h.bf16 %v3779_v5  ;;  %v1527_v36 = vpop.permute.xlu2 %1526 }
 0x665   :  { %v3769_v31 = vpop.permute.xlu1 %3768 }
 0x666   :  { %v3770_v12 = vunpack.i.l.bf16 %v3769_v31  ;;  %v3771_v59 = vunpack.i.h.bf16 %v3769_v31 }
 0x668   :  { %1267 = vmatpush.msra.mxu1 %v3770_v12 }
 0x66a   :  { %1268 = vmatpush.msra.mxu1 %v3771_v59 }
 0x66c   :  { %1269 = vmatpush.msra.mxu1 %v3775_v45 }
 0x66e   :  { %1270 = vmatpush.msra.mxu1 %v3776_v30 }
 0x670   :  { %1271 = vmatpush.msra.mxu1 %v3780_v18 }
 0x672   :  { %1272 = vmatpush.msra.mxu1 %v3781_v20  ;;  %v1385_v16 = vpop.f32.mrf.mxu2 }
 0x675   :  { %v3784_v1 = vpop.permute.xlu1 %3783 }
 0x676   :  { %v3785_v29 = vunpack.i.l.bf16 %v3784_v1  ;;  %v3786_v6 = vunpack.i.h.bf16 %v3784_v1 }
 0x678   :  { %1273 = vmatpush.msra.mxu1 %v3785_v29 }
 0x67a   :  { %1274 = vmatpush.msra.mxu1 %v3786_v6 }
 0x67b   :  { %3554 = vmatmul.msk.f32.vlgmr.msra.gmra.mxu1 %vm262_vm1, %v1223_v8 }
 0x67c   :  { %1542 = vmatpush.msrb.mxu1 %v4679_v39 }
 0x67e   :  { %1543 = vmatpush.msrb.mxu1 %v4689_v33 }
 0x680   :  { %1544 = vmatpush.msrb.mxu1 %v4695_v34 }
 0x682   :  { %1545 = vmatpush.msrb.mxu1 %v4701_v47 }
 0x683   :  { %3577 = vmatmul.msk.f32.vlgmr.msrb.gmra.mxu1 %vm917_vm3, %v1527_v36 }
 0x684   :  { %1670 = vmatpush.msra.mxu1 %v4679_v39 }
 0x686   :  { %1671 = vmatpush.msra.mxu1 %v4689_v33 }
 0x688   :  { %1672 = vmatpush.msra.mxu1 %v4695_v34 }
 0x68a   :  { %1673 = vmatpush.msra.mxu1 %v4701_v47 }
 0x68c   :  { %1798 = vmatpush.msrb.mxu1 %v4679_v39  ;;  %v1281_v39 = vld [vmem:[%s5773_s11 + $0x8] sm:$0xff] }
 0x68d   :  { %1305 = vmatpush.msrb.mxu3 %v1281_v39 }
 0x68e   :  { %1799 = vmatpush.msrb.mxu1 %v4689_v33  ;;  %v1280_v33 = vld [vmem:[%s5773_s11] sm:$0xff] }
 0x68f   :  { %1306 = vmatpush.msrb.mxu3 %v1280_v33 }
 0x690   :  { %1800 = vmatpush.msrb.mxu1 %v4695_v34 }
 0x692   :  { %1801 = vmatpush.msrb.mxu1 %v4701_v47 }
 0x6f8   :  { %v1276_v34 = vpop.f32.mrf.mxu1 }
 0x6f9   :  { %3882 = vtanh.f32 %v1276_v34  ;;  %v5063_v34 = vld [vmem:[%s5819_s1 + $0x18] sm:$0xff] }
 0x6fa   :  { %3559 = vmatmul.msk.f32.gmra.mxu2 %vm532_vm2, %v5063_v34 }
 0x6ff   :  { %v3883_v47 = vpop.eup %3882 }
 0x700   :  { %v1547_v23 = vpop.f32.mrf.mxu1  ;;  %3555 = vmatmul.msk.f32.vlgmr.msrb.gmra.mxu3 %vm917_vm3, %v3883_v47 }
 0x701   :  { %v1548_v22 = vadd.f32 %v4772_v15, %v1547_v23 }
 0x703   :  { %1571 = vrot.lane.b32.xlu0 %v1548_v22, %s4085_s13  ;;  %v1550_v54 = vadd.f32 %v1548_v22, %v5011_v57 }
 0x705   :  { %v3578_v13 = vmul.f32 -1.442695, %v1550_v54 }
 0x707   :  { %3884 = vpow2.f32 %v3578_v13 }
 0x70d   :  { %v3885_v37 = vpop.eup %3884 }
 0x70e   :  { %v1554_v17 = vadd.f32 1.0, %v3885_v37 }
 0x710   :  { %3886 = vrcp.f32 %v1554_v17  ;;  %v1566_v27 = vand.u32 2147483648, %v1554_v17  ;;  %vm1560_vm15 = vweird.f32 %v1554_v17  ;;  %v1564_v25 = vand.u32 2147483647, %v1554_v17 }
 0x712   :  { %v1567_v38 = vor.u32 1.1754944e-38, %v1566_v27  ;;  %vm1565_vm4 = vcmp.eq.f32.partialorder %v1564_v25, 8.507059e+37 }
 0x716   :  { %v3887_v41 = vpop.eup %3886 }
 0x717   :  { %v1556_v51 = vmul.f32 %v3887_v41, %v1554_v17  ;;  %vm1561_vm14 = vweird.f32 %v3887_v41 }
 0x718   :  { %vm1562_vm0 = vmor %vm1560_vm15, %vm1561_vm14 }
 0x719   :  { %v1557_v50 = vsub.f32 1.0, %v1556_v51 }
 0x71b   :  { %v1558_v56 = vmul.f32 %v3887_v41, %v1557_v50 }
 0x71d   :  { %v1559_v19 = vadd.f32 %v3887_v41, %v1558_v56 }
 0x71f   :  { %v1563_v10 = vsel %vm1562_vm0, %v3887_v41, %v1559_v19 }
 0x720   :  { %v1568_v43 = vsel %vm1565_vm4, %v1567_v38, %v1563_v10 }
 0x721   :  { %v1581_v60 = vsub.f32 1.0, %v1568_v43  ;;  %v1587_v63 = vmul.f32 %v1568_v43, %v4966_v26  ;;  %v5054_v26 = vadd.f32 %v1385_v16, %v4793_v42 }
 0x775   :  { %v1572_v21 = vpop.permute.xlu0 %1571 }
 0x776   :  { %v1574_v32 = vmul.f32 %v1572_v21, %v1568_v43 }
 0x778   :  { %1576 = vrot.lane.b32.xlu1 %v1574_v32, %s4085_s13 }
 0x77d   :  { %v1388_v41 = vpop.f32.mrf.mxu2 }
 0x77e   :  { %v5076_v51 = vadd.f32 %v1388_v41, %v4793_v42  ;;  %v5112_v41 = vld [vmem:[%s5819_s1 + $0x28] sm:$0xff] }
 0x7ea   :  { %v1577_v44 = vpop.permute.xlu1 %1576 }
 0x7eb   :  { %v1579_v46 = vadd.f32 %v1577_v44, %v5011_v57 }
 0x7ed   :  { %3888 = vtanh.f32 %v1579_v46 }
 0x7f3   :  { %v3889_v4 = vpop.eup %3888 }
 0x7f4   :  { %1583 = vrot.lane.b32.xlu2 %v3889_v4, %s4083_s8 }
 0x84e   :  { %v1584_v55 = vpop.permute.xlu2 %1583 }
 0x84f   :  { %v1586_v2 = vmul.f32 %v1584_v55, %v1581_v60 }
 0x851   :  { %v1588_v61 = vadd.f32 %v1587_v63, %v1586_v2 }
 0x853   :  { %1590 = vrot.lane.b32.xlu0 %v1588_v61, %s4083_s8 }
 0x8c5   :  { %v1591_v62 = vpop.permute.xlu0 %1590 }
 0x8c6   :  { %3579 = vmatmul.msk.f32.vlgmr.msrb.gmra.mxu0 %vm917_vm3, %v1591_v62  ;;  %v5085_v62 = vld [vmem:[%s5819_s1 + $0x20] sm:$0xff] }
 0x8c7   :  { %1862 = vmatpush.msrb.mxu0 %v5030_v9  ;;  %3560 = vmatmul.msk.f32.gmra.mxu2 %vm532_vm2, %v5085_v62 }
 0x8c9   :  { %1863 = vmatpush.msrb.mxu0 %v5036_v11 }
 0x8cb   :  { %1864 = vmatpush.msrb.mxu0 %v5042_v52 }
 0x8cd   :  { %1865 = vmatpush.msrb.mxu0 %v5048_v48 }
 0x8cf   :  { %3561 = vmatmul.msk.f32.gmra.mxu2 %vm532_vm2, %v5112_v41 }
 0x943   :  { %v1611_v14 = vpop.f32.mrf.mxu0 }
 0x944   :  { %v1612_v3 = vadd.f32 %v4772_v15, %v1611_v14 }
 0x946   :  { %1635 = vrot.lane.b32.xlu1 %v1612_v3, %s4085_s13  ;;  %v1614_v58 = vadd.f32 %v1612_v3, %v5054_v26 }
 0x948   :  { %v3580_v31 = vmul.f32 -1.442695, %v1614_v58 }
 0x94a   :  { %3890 = vpow2.f32 %v3580_v31 }
 0x950   :  { %v3891_v12 = vpop.eup %3890 }
 0x951   :  { %v1618_v24 = vadd.f32 1.0, %v3891_v12 }
 0x953   :  { %3892 = vrcp.f32 %v1618_v24  ;;  %v1630_v20 = vand.u32 2147483648, %v1618_v24  ;;  %vm1624_vm6 = vweird.f32 %v1618_v24  ;;  %v1628_v1 = vand.u32 2147483647, %v1618_v24 }
 0x955   :  { %v1631_v6 = vor.u32 1.1754944e-38, %v1630_v20  ;;  %vm1629_vm8 = vcmp.eq.f32.partialorder %v1628_v1, 8.507059e+37 }
 0x959   :  { %v3893_v59 = vpop.eup %3892 }
 0x95a   :  { %v1620_v45 = vmul.f32 %v3893_v59, %v1618_v24  ;;  %vm1625_vm5 = vweird.f32 %v3893_v59 }
 0x95b   :  { %vm1626_vm7 = vmor %vm1624_vm6, %vm1625_vm5 }
 0x95c   :  { %v1621_v5 = vsub.f32 1.0, %v1620_v45 }
 0x95e   :  { %v1622_v30 = vmul.f32 %v3893_v59, %v1621_v5  ;;  %v1391_v5 = vpop.f32.mrf.mxu2 }
 0x960   :  { %v1623_v18 = vadd.f32 %v3893_v59, %v1622_v30  ;;  %v5103_v30 = vadd.f32 %v1391_v5, %v4793_v42 }
 0x962   :  { %v1627_v29 = vsel %vm1626_vm7, %v3893_v59, %v1623_v18  ;;  %v5098_v59 = vld [vmem:[%s5820_s28] ss:$0 sm:$0xff] }
 0x963   :  { %v1632_v36 = vsel %vm1629_vm8, %v1631_v6, %v1627_v29 }
 0x964   :  { %v1645_v47 = vsub.f32 1.0, %v1632_v36  ;;  %v1651_v22 = vmul.f32 %v1632_v36, %v1588_v61 }
 0x9b8   :  { %v1636_v8 = vpop.permute.xlu1 %1635 }
 0x9b9   :  { %v1638_v7 = vmul.f32 %v1636_v8, %v1632_v36 }
 0x9bb   :  { %1640 = vrot.lane.b32.xlu2 %v1638_v7, %s4085_s13 }
 0xa15   :  { %v1641_v49 = vpop.permute.xlu2 %1640 }
 0xa16   :  { %v1643_v39 = vadd.f32 %v1641_v49, %v5054_v26 }
 0xa18   :  { %3894 = vtanh.f32 %v1643_v39 }
 0xa1e   :  { %v3895_v33 = vpop.eup %3894 }
 0xa1f   :  { %1647 = vrot.lane.b32.xlu0 %v3895_v33, %s4083_s8 }
 0xa91   :  { %v1648_v23 = vpop.permute.xlu0 %1647 }
 0xa92   :  { %v1650_v35 = vmul.f32 %v1648_v23, %v1645_v47 }
 0xa94   :  { %v1652_v54 = vadd.f32 %v1651_v22, %v1650_v35 }
 0xa96   :  { %1654 = vrot.lane.b32.xlu1 %v1652_v54, %s4083_s8 }
 0xb08   :  { %v1655_v13 = vpop.permute.xlu1 %1654 }
 0xb09   :  { %3581 = vmatmul.msk.f32.vlgmr.msra.gmra.mxu1 %vm917_vm3, %v1655_v13 }
 0xb0a   :  { %1926 = vmatpush.msra.mxu1 %v5030_v9 }
 0xb0c   :  { %1927 = vmatpush.msra.mxu1 %v5036_v11 }
 0xb0e   :  { %1928 = vmatpush.msra.mxu1 %v5042_v52 }
 0xb10   :  { %1929 = vmatpush.msra.mxu1 %v5048_v48 }
 0xb86   :  { %v1675_v37 = vpop.f32.mrf.mxu1 }
 0xb87   :  { %v1676_v17 = vadd.f32 %v4772_v15, %v1675_v37 }
 0xb89   :  { %1699 = vrot.lane.b32.xlu2 %v1676_v17, %s4085_s13  ;;  %v1678_v50 = vadd.f32 %v1676_v17, %v5076_v51 }
 0xb8b   :  { %v3582_v56 = vmul.f32 -1.442695, %v1678_v50 }
 0xb8d   :  { %3896 = vpow2.f32 %v3582_v56 }
 0xb93   :  { %v3897_v19 = vpop.eup %3896 }
 0xb94   :  { %v1682_v27 = vadd.f32 1.0, %v3897_v19 }
 0xb96   :  { %3898 = vrcp.f32 %v1682_v27  ;;  %v1694_v15 = vand.u32 2147483648, %v1682_v27  ;;  %vm1688_vm10 = vweird.f32 %v1682_v27  ;;  %v1692_v32 = vand.u32 2147483647, %v1682_v27 }
 0xb98   :  { %v1695_v46 = vor.u32 1.1754944e-38, %v1694_v15  ;;  %vm1693_vm12 = vcmp.eq.f32.partialorder %v1692_v32, 8.507059e+37 }
 0xb9c   :  { %v3899_v25 = vpop.eup %3898 }
 0xb9d   :  { %v1684_v10 = vmul.f32 %v3899_v25, %v1682_v27  ;;  %vm1689_vm9 = vweird.f32 %v3899_v25 }
 0xb9e   :  { %vm1690_vm11 = vmor %vm1688_vm10, %vm1689_vm9 }
 0xb9f   :  { %v1685_v38 = vsub.f32 1.0, %v1684_v10 }
 0xba1   :  { %v1686_v21 = vmul.f32 %v3899_v25, %v1685_v38 }
 0xba3   :  { %v1687_v43 = vadd.f32 %v3899_v25, %v1686_v21 }
 0xba5   :  { %v1691_v44 = vsel %vm1690_vm11, %v3899_v25, %v1687_v43  ;;  %v1394_v43 = vpop.f32.mrf.mxu2 }
 0xba6   :  { %v1696_v60 = vsel %vm1693_vm12, %v1695_v46, %v1691_v44  ;;  %v5125_v15 = vadd.f32 %v1394_v43, %v4793_v42  ;;  %v5152_v43 = vld [vmem:[%s5819_s1 + $0x38] sm:$0xff] }
 0xba7   :  { %v1709_v14 = vsub.f32 1.0, %v1696_v60  ;;  %v1715_v16 = vmul.f32 %v1696_v60, %v1652_v54 }
 0xbe3   :  { %v1700_v4 = vpop.permute.xlu2 %1699 }
 0xbe4   :  { %v1702_v55 = vmul.f32 %v1700_v4, %v1696_v60 }
 0xbe6   :  { %1704 = vrot.lane.b32.xlu0 %v1702_v55, %s4085_s13 }
 0xc58   :  { %v1705_v63 = vpop.permute.xlu0 %1704 }
 0xc59   :  { %v1707_v2 = vadd.f32 %v1705_v63, %v5076_v51 }
 0xc5b   :  { %3900 = vtanh.f32 %v1707_v2 }
 0xc61   :  { %v3901_v61 = vpop.eup %3900 }
 0xc62   :  { %1711 = vrot.lane.b32.xlu1 %v3901_v61, %s4083_s8 }
 0xcd4   :  { %v1712_v3 = vpop.permute.xlu1 %1711 }
 0xcd5   :  { %v1714_v58 = vmul.f32 %v1712_v3, %v1709_v14 }
 0xcd7   :  { %v1716_v31 = vadd.f32 %v1715_v16, %v1714_v58 }
 0xcd9   :  { %1718 = vrot.lane.b32.xlu2 %v1716_v31, %s4083_s8 }
 0xd33   :  { %v1719_v12 = vpop.permute.xlu2 %1718 }
 0xd34   :  { %3583 = vmatmul.msk.f32.vlgmr.msra.gmra.mxu0 %vm917_vm3, %v1719_v12 }
 0xd35   :  { %1990 = vmatpush.msra.mxu0 %v5030_v9 }
 0xd37   :  { %1991 = vmatpush.msra.mxu0 %v5036_v11 }
 0xd39   :  { %1992 = vmatpush.msra.mxu0 %v5042_v52 }
 0xd3b   :  { %1993 = vmatpush.msra.mxu0 %v5048_v48 }
 0xdb1   :  { %v1739_v24 = vpop.f32.mrf.mxu0 }
 0xdb2   :  { %v1740_v45 = vadd.f32 %v5098_v59, %v1739_v24  ;;  %v5134_v24 = vld [vmem:[%s5819_s1 + $0x30] sm:$0xff] }
 0xdb3   :  { %3562 = vmatmul.msk.f32.gmra.mxu2 %vm532_vm2, %v5134_v24 }
 0xdb4   :  { %1763 = vrot.lane.b32.xlu0 %v1740_v45, %s4085_s13  ;;  %v1742_v18 = vadd.f32 %v1740_v45, %v5103_v30 }
 0xdb6   :  { %v3584_v20 = vmul.f32 -1.442695, %v1742_v18 }
 0xdb8   :  { %3902 = vpow2.f32 %v3584_v20 }
 0xdbb   :  { %3563 = vmatmul.msk.f32.gmra.mxu2 %vm532_vm2, %v5152_v43 }
 0xdbe   :  { %v3903_v1 = vpop.eup %3902 }
 0xdbf   :  { %v1746_v29 = vadd.f32 1.0, %v3903_v1 }
 0xdc1   :  { %3904 = vrcp.f32 %v1746_v29  ;;  %v1758_v39 = vand.u32 2147483648, %v1746_v29  ;;  %vm1752_vm14 = vweird.f32 %v1746_v29  ;;  %v1756_v33 = vand.u32 2147483647, %v1746_v29 }
 0xdc3   :  { %v1759_v23 = vor.u32 1.1754944e-38, %v1758_v39  ;;  %vm1757_vm0 = vcmp.eq.f32.partialorder %v1756_v33, 8.507059e+37 }
 0xdc7   :  { %v3905_v6 = vpop.eup %3904 }
 0xdc8   :  { %v1748_v8 = vmul.f32 %v3905_v6, %v1746_v29  ;;  %vm1753_vm13 = vweird.f32 %v3905_v6 }
 0xdc9   :  { %vm1754_vm15 = vmor %vm1752_vm14, %vm1753_vm13 }
 0xdca   :  { %v1749_v36 = vsub.f32 1.0, %v1748_v8 }
 0xdcc   :  { %v1750_v7 = vmul.f32 %v3905_v6, %v1749_v36 }
 0xdce   :  { %v1751_v49 = vadd.f32 %v3905_v6, %v1750_v7 }
 0xdd0   :  { %v1755_v47 = vsel %vm1754_vm15, %v3905_v6, %v1751_v49 }
 0xdd1   :  { %v1760_v35 = vsel %vm1757_vm0, %v1759_v23, %v1755_v47 }
 0xdd2   :  { %v1773_v50 = vsub.f32 1.0, %v1760_v35  ;;  %v1779_v19 = vmul.f32 %v1760_v35, %v1716_v31 }
 0xe26   :  { %v1764_v22 = vpop.permute.xlu0 %1763 }
 0xe27   :  { %v1766_v54 = vmul.f32 %v1764_v22, %v1760_v35 }
 0xe29   :  { %1768 = vrot.lane.b32.xlu1 %v1766_v54, %s4085_s13 }
 0xe36   :  { %v1397_v36 = vpop.f32.mrf.mxu2 }
 0xe37   :  { %v5143_v7 = vadd.f32 %v1397_v36, %v4793_v42 }
 0xe9b   :  { %v1769_v13 = vpop.permute.xlu1 %1768 }
 0xe9c   :  { %v1771_v37 = vadd.f32 %v1769_v13, %v5103_v30 }
 0xe9e   :  { %3906 = vtanh.f32 %v1771_v37 }
 0xea4   :  { %v3907_v17 = vpop.eup %3906 }
 0xea5   :  { %1775 = vrot.lane.b32.xlu2 %v3907_v17, %s4083_s8 }
 0xeff   :  { %v1776_v56 = vpop.permute.xlu2 %1775 }
 0xf00   :  { %v1778_v27 = vmul.f32 %v1776_v56, %v1773_v50 }
 0xf02   :  { %v1780_v25 = vadd.f32 %v1779_v19, %v1778_v27 }
 0xf04   :  { %1782 = vrot.lane.b32.xlu0 %v1780_v25, %s4083_s8 }
 0xf76   :  { %v1783_v10 = vpop.permute.xlu0 %1782 }
 0xf77   :  { %3585 = vmatmul.msk.f32.vlgmr.msrb.gmra.mxu1 %vm917_vm3, %v1783_v10 }
 0xf78   :  { %2054 = vmatpush.msrb.mxu1 %v5030_v9 }
 0xf7a   :  { %2055 = vmatpush.msrb.mxu1 %v5036_v11 }
 0xf7c   :  { %2056 = vmatpush.msrb.mxu1 %v5042_v52 }
 0xf7e   :  { %2057 = vmatpush.msrb.mxu1 %v5048_v48 }
 0xff4   :  { %v1803_v38 = vpop.f32.mrf.mxu1 }
 0xff5   :  { %v1804_v21 = vadd.f32 %v5098_v59, %v1803_v38 }
 0xff7   :  { %1827 = vrot.lane.b32.xlu1 %v1804_v21, %s4085_s13  ;;  %v1806_v32 = vadd.f32 %v1804_v21, %v5125_v15 }
 0xff9   :  { %v3586_v44 = vmul.f32 -1.442695, %v1806_v32 }
 0xffb   :  { %3908 = vpow2.f32 %v3586_v44 }
0x1001   :  { %v3909_v9 = vpop.eup %3908 }
0x1002   :  { %v1810_v46 = vadd.f32 1.0, %v3909_v9 }
0x1004   :  { %3910 = vrcp.f32 %v1810_v46  ;;  %v1822_v55 = vand.u32 2147483648, %v1810_v46  ;;  %vm1816_vm5 = vweird.f32 %v1810_v46  ;;  %v1820_v63 = vand.u32 2147483647, %v1810_v46 }
0x1006   :  { %v1823_v61 = vor.u32 1.1754944e-38, %v1822_v55  ;;  %vm1821_vm7 = vcmp.eq.f32.partialorder %v1820_v63, 8.507059e+37 }
0x100a   :  { %v3911_v11 = vpop.eup %3910 }
0x100b   :  { %v1812_v52 = vmul.f32 %v3911_v11, %v1810_v46  ;;  %vm1817_vm4 = vweird.f32 %v3911_v11 }
0x100c   :  { %vm1818_vm6 = vmor %vm1816_vm5, %vm1817_vm4 }
0x100d   :  { %v1813_v4 = vsub.f32 1.0, %v1812_v52 }
0x100f   :  { %v1814_v48 = vmul.f32 %v3911_v11, %v1813_v4 }
0x1011   :  { %v1815_v60 = vadd.f32 %v3911_v11, %v1814_v48 }
0x1013   :  { %v1819_v2 = vsel %vm1818_vm6, %v3911_v11, %v1815_v60  ;;  %v1400_v60 = vpop.f32.mrf.mxu2 }
0x1014   :  { %v1824_v3 = vsel %vm1821_vm7, %v1823_v61, %v1819_v2  ;;  %v5161_v55 = vadd.f32 %v1400_v60, %v4793_v42 }
0x1015   :  { %v1837_v45 = vsub.f32 1.0, %v1824_v3  ;;  %v1843_v18 = vmul.f32 %v1824_v3, %v1780_v25 }
0x1069   :  { %v1828_v14 = vpop.permute.xlu1 %1827 }
0x106a   :  { %v1830_v16 = vmul.f32 %v1828_v14, %v1824_v3 }
0x106c   :  { %1832 = vrot.lane.b32.xlu2 %v1830_v16, %s4085_s13 }
0x10c6   :  { %v1833_v58 = vpop.permute.xlu2 %1832 }
0x10c7   :  { %v1835_v31 = vadd.f32 %v1833_v58, %v5125_v15 }
0x10c9   :  { %3912 = vtanh.f32 %v1835_v31 }
0x10cf   :  { %v3913_v12 = vpop.eup %3912 }
0x10d0   :  { %1839 = vrot.lane.b32.xlu0 %v3913_v12, %s4083_s8 }
0x1142   :  { %v1840_v5 = vpop.permute.xlu0 %1839 }
0x1143   :  { %v1842_v20 = vmul.f32 %v1840_v5, %v1837_v45 }
0x1145   :  { %v1844_v1 = vadd.f32 %v1843_v18, %v1842_v20 }
0x1147   :  { %1846 = vrot.lane.b32.xlu1 %v1844_v1, %s4083_s8 }
0x11b9   :  { %v1847_v29 = vpop.permute.xlu1 %1846 }
0x11ba   :  { %3587 = vmatmul.msk.f32.vlgmr.msrb.gmra.mxu0 %vm917_vm3, %v1847_v29 }
0x1237   :  { %v1867_v6 = vpop.f32.mrf.mxu0 }
0x1238   :  { %v1868_v8 = vadd.f32 %v5098_v59, %v1867_v6 }
0x123a   :  { %1891 = vrot.lane.b32.xlu2 %v1868_v8, %s4085_s13  ;;  %v1870_v49 = vadd.f32 %v1868_v8, %v5143_v7 }
0x123c   :  { %v3588_v39 = vmul.f32 -1.442695, %v1870_v49 }
0x123e   :  { %3914 = vpow2.f32 %v3588_v39  ;;  %v5170_v39 = vld [vmem:[%s5819_s1 + $0x40] sm:$0xff] }
0x123f   :  { %3564 = vmatmul.msk.f32.gmra.mxu2 %vm532_vm2, %v5170_v39 }
0x1244   :  { %v3915_v33 = vpop.eup %3914 }
0x1245   :  { %v1874_v47 = vadd.f32 1.0, %v3915_v33 }
0x1247   :  { %3916 = vrcp.f32 %v1874_v47  ;;  %v1886_v37 = vand.u32 2147483648, %v1874_v47  ;;  %vm1880_vm9 = vweird.f32 %v1874_v47  ;;  %v1884_v17 = vand.u32 2147483647, %v1874_v47 }
0x1249   :  { %v1887_v56 = vor.u32 1.1754944e-38, %v1886_v37  ;;  %vm1885_vm11 = vcmp.eq.f32.partialorder %v1884_v17, 8.507059e+37 }
0x124d   :  { %v3917_v23 = vpop.eup %3916 }
0x124e   :  { %v1876_v22 = vmul.f32 %v3917_v23, %v1874_v47  ;;  %vm1881_vm8 = vweird.f32 %v3917_v23 }
0x124f   :  { %vm1882_vm10 = vmor %vm1880_vm9, %vm1881_vm8 }
0x1250   :  { %v1877_v35 = vsub.f32 1.0, %v1876_v22 }
0x1252   :  { %v1878_v54 = vmul.f32 %v3917_v23, %v1877_v35 }
0x1254   :  { %v1879_v13 = vadd.f32 %v3917_v23, %v1878_v54 }
0x1256   :  { %v1883_v50 = vsel %vm1882_vm10, %v3917_v23, %v1879_v13 }
0x1257   :  { %v1888_v27 = vsel %vm1885_vm11, %v1887_v56, %v1883_v50 }
0x1258   :  { %v1901_v32 = vsub.f32 1.0, %v1888_v27  ;;  %v1907_v9 = vmul.f32 %v1888_v27, %v1844_v1 }
0x1294   :  { %v1892_v19 = vpop.permute.xlu2 %1891 }
0x1295   :  { %v1894_v25 = vmul.f32 %v1892_v19, %v1888_v27 }
0x1297   :  { %1896 = vrot.lane.b32.xlu0 %v1894_v25, %s4085_s13 }
0x12c2   :  { %v1403_v17 = vpop.f32.mrf.mxu2 }
0x12c3   :  { %v5179_v50 = vadd.f32 %v1403_v17, %v4793_v42 }
0x1309   :  { %v1897_v10 = vpop.permute.xlu0 %1896 }
0x130a   :  { %v1899_v38 = vadd.f32 %v1897_v10, %v5143_v7 }
0x130c   :  { %3918 = vtanh.f32 %v1899_v38 }
0x1312   :  { %v3919_v21 = vpop.eup %3918 }
0x1313   :  { %1903 = vrot.lane.b32.xlu1 %v3919_v21, %s4083_s8 }
0x1385   :  { %v1904_v44 = vpop.permute.xlu1 %1903 }
0x1386   :  { %v1906_v46 = vmul.f32 %v1904_v44, %v1901_v32 }
0x1388   :  { %v1908_v11 = vadd.f32 %v1907_v9, %v1906_v46 }
0x138a   :  { %1910 = vrot.lane.b32.xlu2 %v1908_v11, %s4083_s8 }
0x13e4   :  { %v1911_v52 = vpop.permute.xlu2 %1910 }
0x13e5   :  { %3589 = vmatmul.msk.f32.vlgmr.msra.gmra.mxu1 %vm917_vm3, %v1911_v52 }
0x1462   :  { %v1931_v4 = vpop.f32.mrf.mxu1 }
0x1463   :  { %v1932_v48 = vadd.f32 %v5098_v59, %v1931_v4 }
0x1465   :  { %1955 = vrot.lane.b32.xlu0 %v1932_v48, %s4085_s13  ;;  %v1934_v63 = vadd.f32 %v1932_v48, %v5161_v55 }
0x1467   :  { %v3590_v2 = vmul.f32 -1.442695, %v1934_v63 }
0x1469   :  { %3920 = vpow2.f32 %v3590_v2 }
0x146f   :  { %v3921_v61 = vpop.eup %3920 }
0x1470   :  { %v1938_v14 = vadd.f32 1.0, %v3921_v61 }
0x1472   :  { %3922 = vrcp.f32 %v1938_v14  ;;  %v1950_v45 = vand.u32 2147483648, %v1938_v14  ;;  %vm1944_vm13 = vweird.f32 %v1938_v14  ;;  %v1948_v5 = vand.u32 2147483647, %v1938_v14 }
0x1474   :  { %v1951_v20 = vor.u32 1.1754944e-38, %v1950_v45  ;;  %vm1949_vm15 = vcmp.eq.f32.partialorder %v1948_v5, 8.507059e+37 }
0x1478   :  { %v3923_v3 = vpop.eup %3922 }
0x1479   :  { %v1940_v16 = vmul.f32 %v3923_v3, %v1938_v14  ;;  %vm1945_vm12 = vweird.f32 %v3923_v3  ;;  %v5188_v14 = vld [vmem:[%s5819_s1 + $0x48] sm:$0xff] }
0x147a   :  { %vm1946_vm14 = vmor %vm1944_vm13, %vm1945_vm12  ;;  %3565 = vmatmul.msk.f32.gmra.mxu2 %vm532_vm2, %v5188_v14 }
0x147b   :  { %v1941_v58 = vsub.f32 1.0, %v1940_v16 }
0x147d   :  { %v1942_v31 = vmul.f32 %v3923_v3, %v1941_v58 }
0x147f   :  { %v1943_v12 = vadd.f32 %v3923_v3, %v1942_v31 }
0x1481   :  { %v1947_v18 = vsel %vm1946_vm14, %v3923_v3, %v1943_v12 }
0x1482   :  { %v1952_v29 = vsel %vm1949_vm15, %v1951_v20, %v1947_v18 }
0x1483   :  { %v1965_v33 = vsub.f32 1.0, %v1952_v29  ;;  %v1971_v23 = vmul.f32 %v1952_v29, %v1908_v11 }
0x14d7   :  { %v1956_v1 = vpop.permute.xlu0 %1955 }
0x14d8   :  { %v1958_v6 = vmul.f32 %v1956_v1, %v1952_v29 }
0x14da   :  { %1960 = vrot.lane.b32.xlu1 %v1958_v6, %s4085_s13 }
0x14fd   :  { %v1406_v20 = vpop.f32.mrf.mxu2 }
0x14fe   :  { %v1407_v1 = vadd.f32 %v1406_v20, %v4793_v42  ;;  %v1308_v42 = vpop.f32.mrf.mxu3  ;;  %v2196_v20 = vld [vmem:[%s5778_s19 + $0x8] sm:$0xff] }
0x154c   :  { %v1961_v8 = vpop.permute.xlu1 %1960 }
0x154d   :  { %v1963_v36 = vadd.f32 %v1961_v8, %v5161_v55 }
0x154f   :  { %3924 = vtanh.f32 %v1963_v36 }
0x1555   :  { %v3925_v49 = vpop.eup %3924 }
0x1556   :  { %1967 = vrot.lane.b32.xlu2 %v3925_v49, %s4083_s8 }
0x15b0   :  { %v1968_v47 = vpop.permute.xlu2 %1967 }
0x15b1   :  { %v1970_v22 = vmul.f32 %v1968_v47, %v1965_v33 }
0x15b3   :  { %v1972_v35 = vadd.f32 %v1971_v23, %v1970_v22 }
0x15b5   :  { %1974 = vrot.lane.b32.xlu0 %v1972_v35, %s4083_s8 }
0x1627   :  { %v1975_v54 = vpop.permute.xlu0 %1974 }
0x1628   :  { %3591 = vmatmul.msk.f32.vlgmr.msra.gmra.mxu0 %vm917_vm3, %v1975_v54  ;;  %v3791_v54 = vld [vmem:[%s5774_s12] ss:$0 sm:$0xff] }
0x1629   :  { %v1309_v17 = vadd.f32 %v3791_v54, %v1308_v42 }
0x16a5   :  { %v1995_v13 = vpop.f32.mrf.mxu0 }
0x16a6   :  { %v1996_v37 = vadd.f32 %v5098_v59, %v1995_v13 }
0x16a8   :  { %2019 = vrot.lane.b32.xlu1 %v1996_v37, %s4085_s13  ;;  %v1998_v56 = vadd.f32 %v1996_v37, %v5179_v50 }
0x16aa   :  { %v3592_v19 = vmul.f32 -1.442695, %v1998_v56 }
0x16ac   :  { %3926 = vpow2.f32 %v3592_v19 }
0x16b2   :  { %v3927_v27 = vpop.eup %3926 }
0x16b3   :  { %v2002_v25 = vadd.f32 1.0, %v3927_v27 }
0x16b5   :  { %3928 = vrcp.f32 %v2002_v25  ;;  %v2014_v9 = vand.u32 2147483648, %v2002_v25  ;;  %vm2008_vm4 = vweird.f32 %v2002_v25  ;;  %v2012_v46 = vand.u32 2147483647, %v2002_v25 }
0x16b7   :  { %v2015_v52 = vor.u32 1.1754944e-38, %v2014_v9  ;;  %vm2013_vm6 = vcmp.eq.f32.partialorder %v2012_v46, 8.507059e+37  ;;  %v2115_v9 = vld [vmem:[%s5776_s17 + $0x28] sm:$0xff]  ;;  %v2114_v46 = vld [vmem:[%s5776_s17 + $0x20] sm:$0xff] }
0x16bb   :  { %v3929_v10 = vpop.eup %3928 }
0x16bc   :  { %v2004_v38 = vmul.f32 %v3929_v10, %v2002_v25  ;;  %vm2009_vm0 = vweird.f32 %v3929_v10 }
0x16bd   :  { %vm2010_vm5 = vmor %vm2008_vm4, %vm2009_vm0 }
0x16be   :  { %v2005_v21 = vsub.f32 1.0, %v2004_v38 }
0x16c0   :  { %v2006_v32 = vmul.f32 %v3929_v10, %v2005_v21 }
0x16c2   :  { %v2007_v44 = vadd.f32 %v3929_v10, %v2006_v32  ;;  %v2117_v32 = vld [vmem:[%s5776_s17 + $0x38] sm:$0xff] }
0x16c3   :  { %2133 = vmatpush.msrb.mxu2 %v2117_v32  ;;  %v2249_v32 = vld [vmem:[%s5781_s22 + $0x18] sm:$0xff] }
0x16c4   :  { %v2011_v11 = vsel %vm2010_vm5, %v3929_v10, %v2007_v44  ;;  %v2116_v44 = vld [vmem:[%s5776_s17 + $0x30] sm:$0xff]  ;;  %2275 = vmatpush.msra.mxu1 %v2249_v32 }
0x16c5   :  { %v2016_v48 = vsel %vm2013_vm6, %v2015_v52, %v2011_v11  ;;  %2134 = vmatpush.msrb.mxu2 %v2116_v44  ;;  %v2113_v11 = vld [vmem:[%s5776_s17 + $0x18] sm:$0xff]  ;;  %v2112_v52 = vld [vmem:[%s5776_s17 + $0x10] sm:$0xff] }
0x16c6   :  { %v2029_v3 = vsub.f32 1.0, %v2016_v48  ;;  %v2035_v58 = vmul.f32 %v2016_v48, %v1972_v35  ;;  %v2248_v44 = vld [vmem:[%s5781_s22 + $0x10] sm:$0xff] }
0x16c7   :  { %2135 = vmatpush.msrb.mxu2 %v2115_v9  ;;  %2276 = vmatpush.msra.mxu1 %v2248_v44  ;;  %v2247_v9 = vld [vmem:[%s5781_s22 + $0x8] sm:$0xff] }
0x16c9   :  { %2136 = vmatpush.msrb.mxu2 %v2114_v46  ;;  %v2246_v46 = vld [vmem:[%s5781_s22] sm:$0xff]  ;;  %2277 = vmatpush.msra.mxu1 %v2247_v9 }
0x16cb   :  { %2137 = vmatpush.msrb.mxu2 %v2113_v11  ;;  %2278 = vmatpush.msra.mxu1 %v2246_v46 }
0x16cd   :  { %2138 = vmatpush.msrb.mxu2 %v2112_v52  ;;  %v3793_v52 = vld [vmem:[%s5780_s20] ss:$0 sm:$0xff] }
0x171a   :  { %v2020_v4 = vpop.permute.xlu1 %2019 }
0x171b   :  { %v2022_v60 = vmul.f32 %v2020_v4, %v2016_v48  ;;  %v2111_v4 = vld [vmem:[%s5776_s17 + $0x8] sm:$0xff] }
0x171c   :  { %2139 = vmatpush.msrb.mxu2 %v2111_v4 }
0x171d   :  { %2024 = vrot.lane.b32.xlu2 %v2022_v60, %s4085_s13 }
0x1777   :  { %v2025_v63 = vpop.permute.xlu2 %2024 }
0x1778   :  { %v2027_v2 = vadd.f32 %v2025_v63, %v5179_v50 }
0x177a   :  { %3930 = vtanh.f32 %v2027_v2 }
0x1780   :  { %v3931_v61 = vpop.eup %3930 }
0x1781   :  { %2031 = vrot.lane.b32.xlu0 %v3931_v61, %s4083_s8 }
0x17f3   :  { %v2032_v16 = vpop.permute.xlu0 %2031 }
0x17f4   :  { %v2034_v31 = vmul.f32 %v2032_v16, %v2029_v3  ;;  %v2110_v3 = vld [vmem:[%s5776_s17] sm:$0xff] }
0x17f5   :  { %2140 = vmatpush.msrb.mxu2 %v2110_v3  ;;  %v2148_v16 = vld [vmem:[%s5777_s4] sm:$0xff] }
0x17f6   :  { %v2036_v12 = vadd.f32 %v2035_v58, %v2034_v31 }
0x17f7   :  { %2363 = vmatpush.msra.mxu2 %v2249_v32 }
0x17f8   :  { %2038 = vrot.lane.b32.xlu1 %v2036_v12, %s4083_s8 }
0x17f9   :  { %2364 = vmatpush.msra.mxu2 %v2248_v44 }
0x17fb   :  { %2365 = vmatpush.msra.mxu2 %v2247_v9 }
0x17fd   :  { %2366 = vmatpush.msra.mxu2 %v2246_v46 }
0x186a   :  { %v2039_v45 = vpop.permute.xlu1 %2038 }
0x186b   :  { %3593 = vmatmul.msk.f32.vlgmr.msrb.gmra.mxu1 %vm917_vm3, %v2039_v45  ;;  %v1325_v45 = vld [vmem:[%s5818_s14 + $0x18] sm:$0xff] }
0x186c   :  { %1423 = vmatpush.msra.mxu3 %v1325_v45  ;;  %2627 = vmatpush.msrb.mxu1 %v2249_v32 }
0x186e   :  { %2628 = vmatpush.msrb.mxu1 %v2248_v44 }
0x1870   :  { %2629 = vmatpush.msrb.mxu1 %v2247_v9 }
0x1872   :  { %2630 = vmatpush.msrb.mxu1 %v2246_v46 }
0x18e8   :  { %v2059_v5 = vpop.f32.mrf.mxu1 }
0x18e9   :  { %v2060_v18 = vadd.f32 %v5098_v59, %v2059_v5  ;;  %v1323_v5 = vld [vmem:[%s5818_s14 + $0x8] sm:$0xff]  ;;  %s5828_s14 = smov 112  }
0x18ea   :  { %1424 = vmatpush.msra.mxu3 %v1323_v5 }
0x18eb   :  { %2083 = vrot.lane.b32.xlu2 %v2060_v18, %s4085_s13  ;;  %v2062_v29 = vadd.f32 %v2060_v18, %v1407_v1  ;;  %v4079_v18 = vld [vmem:[%s5819_s1] sm:$0xff] }
0x18ec   :  { %3566 = vmatmul.msk.f32.vlgmr.msra.gmra.mxu3 %vm532_vm2, %v4079_v18 }
0x18ed   :  { %v3594_v6 = vmul.f32 -1.442695, %v2062_v29  ;;  %2218 = vmatpush.msrb.mxu3 %v2196_v20 }
0x18ef   :  { %3932 = vpow2.f32 %v3594_v6 }
0x18f4   :  { %3567 = vmatmul.msk.f32.gmra.mxu3 %vm532_vm2, %v4974_v53 }
0x18f5   :  { %v3933_v8 = vpop.eup %3932 }
0x18f6   :  { %v2066_v36 = vadd.f32 1.0, %v3933_v8 }
0x18f8   :  { %3934 = vrcp.f32 %v2066_v36  ;;  %v2078_v35 = vand.u32 2147483648, %v2066_v36  ;;  %vm2072_vm8 = vweird.f32 %v2066_v36  ;;  %v2076_v59 = vand.u32 2147483647, %v2066_v36 }
0x18f9   :  { %3936 = vtanh.f32 %v1309_v17 }
0x18fa   :  { %v2079_v37 = vor.u32 1.1754944e-38, %v2078_v35  ;;  %vm2077_vm10 = vcmp.eq.f32.partialorder %v2076_v59, 8.507059e+37 }
0x18fc   :  { %3568 = vmatmul.msk.f32.gmra.mxu3 %vm532_vm2, %v5020_v28  ;;  %v2225_v28 = vld [vmem:[%s5779_s21 + $0x8] sm:$0xff] }
0x18fd   :  { %2240 = vmatpush.msrb.mxu0 %v2225_v28 }
0x18fe   :  { %v3935_v49 = vpop.eup %3934 }
0x18ff   :  { %v2068_v33 = vmul.f32 %v3935_v49, %v2066_v36  ;;  %vm2073_vm7 = vweird.f32 %v3935_v49  ;;  %v3937_v25 = vpop.eup %3936 }
0x1900   :  { %vm2074_vm9 = vmor %vm2072_vm8, %vm2073_vm7 }
0x1901   :  { %v2069_v47 = vsub.f32 1.0, %v2068_v33 }
0x1903   :  { %v2070_v23 = vmul.f32 %v3935_v49, %v2069_v47 }
0x1904   :  { %3569 = vmatmul.msk.f32.gmra.mxu3 %vm532_vm2, %v5063_v34  ;;  %v2195_v34 = vld [vmem:[%s5778_s19] sm:$0xff] }
0x1905   :  { %v2071_v22 = vadd.f32 %v3935_v49, %v2070_v23  ;;  %2219 = vmatpush.msrb.mxu3 %v2195_v34 }
0x1907   :  { %v2075_v13 = vsel %vm2074_vm9, %v3935_v49, %v2071_v22  ;;  %2451 = vmatpush.msra.mxu3 %v2249_v32 }
0x1908   :  { %v2080_v19 = vsel %vm2077_vm10, %v2079_v37, %v2075_v13 }
0x1909   :  { %v2093_v48 = vsub.f32 1.0, %v2080_v19  ;;  %v2099_v63 = vmul.f32 %v2080_v19, %v2036_v12  ;;  %2452 = vmatpush.msra.mxu3 %v2248_v44 }
0x190b   :  { %2453 = vmatpush.msra.mxu3 %v2247_v9 }
0x190c   :  { %3570 = vmatmul.msk.f32.gmra.mxu3 %vm532_vm2, %v5085_v62  ;;  %v2224_v62 = vld [vmem:[%s5779_s21] sm:$0xff] }
0x190d   :  { %2241 = vmatpush.msrb.mxu0 %v2224_v62  ;;  %2454 = vmatpush.msra.mxu3 %v2246_v46 }
0x190f   :  { %2539 = vmatpush.msra.mxu0 %v2249_v32 }
0x1911   :  { %2540 = vmatpush.msra.mxu0 %v2248_v44 }
0x1913   :  { %2541 = vmatpush.msra.mxu0 %v2247_v9 }
0x1914   :  { %3571 = vmatmul.msk.f32.gmra.mxu3 %vm532_vm2, %v5112_v41 }
0x1915   :  { %2542 = vmatpush.msra.mxu0 %v2246_v46 }
0x191c   :  { %3572 = vmatmul.msk.f32.gmra.mxu3 %vm532_vm2, %v5134_v24 }
0x1924   :  { %3573 = vmatmul.msk.f32.gmra.mxu3 %vm532_vm2, %v5152_v43 }
0x192c   :  { %3574 = vmatmul.msk.f32.gmra.mxu3 %vm532_vm2, %v5170_v39  ;;  %v4080_v39 = vld [vmem:[%s5821_s7] sm:$0x3] }
0x1934   :  { %3575 = vmatmul.msk.f32.gmra.mxu3 %vm532_vm2, %v5188_v14  ;;  %v5289_v14 = vperm.slane %v4080_v39, 1 }
0x1945   :  { %v2084_v56 = vpop.permute.xlu2 %2083 }
0x1946   :  { %v2086_v27 = vmul.f32 %v2084_v56, %v2080_v19 }
0x1948   :  { %2088 = vrot.lane.b32.xlu0 %v2086_v27, %s4085_s13 }
0x1950   :  { %2106 = vrot.lane.b32.xlu0 %v3937_v25, %s4086_s3 }
0x196f   :  { %v5284_v43 = vpop.f32.mrf.mxu3 }
0x1970   :  { %v1427_v34 = vadd.f32 %v5284_v43, %v5289_v14 }
0x1977   :  { %v1429_v47 = vpop.f32.mrf.mxu3 }
0x1978   :  { %v5292_v23 = vadd.f32 %v1429_v47, %v5289_v14 }
0x197f   :  { %v1432_v22 = vpop.f32.mrf.mxu3 }
0x1980   :  { %v5295_v35 = vadd.f32 %v1432_v22, %v5289_v14 }
0x1987   :  { %v1435_v59 = vpop.f32.mrf.mxu3 }
0x1988   :  { %v5298_v54 = vadd.f32 %v1435_v59, %v5289_v14 }
0x198f   :  { %v1438_v42 = vpop.f32.mrf.mxu3 }
0x1990   :  { %v5301_v13 = vadd.f32 %v1438_v42, %v5289_v14 }
0x1997   :  { %v1441_v37 = vpop.f32.mrf.mxu3 }
0x1998   :  { %v5304_v17 = vadd.f32 %v1441_v37, %v5289_v14 }
0x199f   :  { %v1444_v56 = vpop.f32.mrf.mxu3 }
0x19a0   :  { %v5307_v19 = vadd.f32 %v1444_v56, %v5289_v14 }
0x19a7   :  { %v1447_v27 = vpop.f32.mrf.mxu3 }
0x19a8   :  { %v5310_v25 = vadd.f32 %v1447_v27, %v5289_v14 }
0x19ba   :  { %v2089_v10 = vpop.permute.xlu0 %2088 }
0x19bb   :  { %v2091_v38 = vadd.f32 %v2089_v10, %v1407_v1  ;;  %v3792_v1 = vld [vmem:[%s5775_s18] ss:$0 sm:$0xff]  ;;  %v1450_v10 = vpop.f32.mrf.mxu3 }
0x19bd   :  { %3938 = vtanh.f32 %v2091_v38  ;;  %v5313_v38 = vadd.f32 %v1450_v10, %v5289_v14 }
0x19c2   :  { %v2107_v58 = vpop.permute.xlu0 %2106 }
0x19c3   :  { %v3939_v21 = vpop.eup %3938 }
0x19c4   :  { %2095 = vrot.lane.b32.xlu1 %v3939_v21, %s4083_s8  ;;  %v1453_v21 = vpop.f32.mrf.mxu3 }
0x19cc   :  { %2150 = vrot.lane.b32.xlu1 %v2148_v16, %s4088_s2 }
0x1a36   :  { %v2096_v60 = vpop.permute.xlu1 %2095 }
0x1a37   :  { %v2098_v2 = vmul.f32 %v2096_v60, %v2093_v48  ;;  %v5338_v60 = vld [vmem:[%s5782_s23] ss:$0 sm:$0xff] }
0x1a39   :  { %v2100_v61 = vadd.f32 %v2099_v63, %v2098_v2 }
0x1a3b   :  { %2102 = vrot.lane.b32.xlu2 %v2100_v61, %s4083_s8 }
0x1a3e   :  { %v2151_v53 = vpop.permute.xlu1 %2150 }
0x1a95   :  { %v2103_v31 = vpop.permute.xlu2 %2102 }
0x1a96   :  { %v2109_v12 = vsel %vm917_vm3, %v2103_v31, %v2107_v58 }
0x1a97   :  { %3595 = vmatmul.msk.f32.vlgmr.msrb.gmra.mxu2 %vm262_vm1, %v2109_v12 }
0x1a98   :  { %2715 = vmatpush.msrb.mxu2 %v2249_v32 }
0x1a9a   :  { %2716 = vmatpush.msrb.mxu2 %v2248_v44 }
0x1a9c   :  { %2717 = vmatpush.msrb.mxu2 %v2247_v9 }
0x1a9e   :  { %2718 = vmatpush.msrb.mxu2 %v2246_v46 }
0x1b1a   :  { %v2142_v29 = vpop.f32.mrf.mxu2 }
0x1b1b   :  { %v5252_v6 = vadd.f32 %v3792_v1, %v2142_v29 }
0x1b1d   :  { %v2145_v8 = vmul.f32 0.5, %v5252_v6 }
0x1b1f   :  { %v2146_v36 = vmul.f32 1.442695, %v2145_v8 }
0x1b21   :  { %3940 = vpow2.f32 %v2146_v36 }
0x1b27   :  { %v3941_v49 = vpop.eup %3940 }
0x1b28   :  { %v2153_v33 = vmul.f32 %v3941_v49, %v2151_v53 }
0x1b2a   :  { %2155 = vrot.lane.b32.xlu2 %v2153_v33, %s5828_s14 }
0x1b84   :  { %v2156_v41 = vpop.permute.xlu2 %2155 }
0x1b85   :  { %v2158_v24 = vadd.f32 %v2156_v41, %v5252_v6 }
0x1b87   :  { %3597 = vmatmul.msk.f32.vlgmr.msrb.gmra.mxu3 %vm532_vm2, %v2158_v24  ;;  %3598 = vmatmul.msk.f32.vlgmr.msrb.gmra.mxu0 %vm532_vm2, %v2158_v24 }
0x1b88   :  { %2803 = vmatpush.msrb.mxu3 %v2249_v32  ;;  %2891 = vmatpush.msrb.mxu0 %v2249_v32 }
0x1b8a   :  { %2804 = vmatpush.msrb.mxu3 %v2248_v44  ;;  %2892 = vmatpush.msrb.mxu0 %v2248_v44 }
0x1b8c   :  { %2805 = vmatpush.msrb.mxu3 %v2247_v9  ;;  %2893 = vmatpush.msrb.mxu0 %v2247_v9 }
0x1b8e   :  { %2806 = vmatpush.msrb.mxu3 %v2246_v46  ;;  %2894 = vmatpush.msrb.mxu0 %v2246_v46 }
0x1c04   :  { %v2243_v11 = vpop.f32.mrf.mxu0 }
0x1c05   :  { %2252 = vrot.lane.b32.xlu0 %v2243_v11, %s4083_s8 }
0x1c0a   :  { %v2221_v4 = vpop.f32.mrf.mxu3 }
0x1c0b   :  { %v5331_v48 = vadd.f32 %v3793_v52, %v2221_v4 }
0x1c0d   :  { %3599 = vmatmul.msk.f32.vlgmr.msra.gmra.mxu1 %vm917_vm3, %v5331_v48 }
0x1c0e   :  { %2979 = vmatpush.msra.mxu1 %v2249_v32 }
0x1c10   :  { %2980 = vmatpush.msra.mxu1 %v2248_v44 }
0x1c12   :  { %2981 = vmatpush.msra.mxu1 %v2247_v9 }
0x1c14   :  { %2982 = vmatpush.msra.mxu1 %v2246_v46 }
0x1c77   :  { %v5343_v61 = vpop.permute.xlu0 %2252 }
0x1c78   :  { %v2255_v3 = vadd.f32 %v5343_v61, %v4796_v40  ;;  %v2256_v62 = vadd.f32 %v5343_v61, %v1427_v34 }
0x1c8a   :  { %v2280_v63 = vpop.f32.mrf.mxu1 }
0x1c8b   :  { %v2281_v2 = vadd.f32 %v5338_v60, %v2280_v63 }
0x1c8d   :  { %2327 = vrot.lane.b32.xlu2 %v2281_v2, %s4086_s3  ;;  %2284 = vrot.lane.b32.xlu1 %v2281_v2, %s4083_s8 }
0x1ce7   :  { %v2328_v40 = vpop.permute.xlu2 %2327 }
0x1cff   :  { %v2285_v16 = vpop.permute.xlu1 %2284 }
0x1d00   :  { %v2287_v58 = vadd.f32 %v2285_v16, %v2255_v3  ;;  %v2288_v47 = vadd.f32 %v2285_v16, %v2256_v62  ;;  %v2346_v16 = vadd.f32 %v5343_v61, %v5011_v57 }
0x1d02   :  { %v3600_v31 = vmul.f32 -1.442695, %v2287_v58  ;;  %v3601_v22 = vmul.f32 -1.442695, %v2288_v47 }
0x1d04   :  { %3942 = vpow2.f32 %v3600_v31 }
0x1d0a   :  { %v3943_v12 = vpop.eup %3942 }
0x1d0b   :  { %v2295_v45 = vadd.f32 1.0, %v3943_v12 }
0x1d0d   :  { %3944 = vrcp.f32 %v2295_v45  ;;  %v2308_v1 = vand.u32 2147483648, %v2295_v45  ;;  %v2306_v8 = vand.u32 2147483647, %v2295_v45  ;;  %vm2302_vm11 = vweird.f32 %v2295_v45 }
0x1d0f   :  { %v2309_v53 = vor.u32 1.1754944e-38, %v2308_v1  ;;  %vm2307_vm13 = vcmp.eq.f32.partialorder %v2306_v8, 8.507059e+37 }
0x1d13   :  { %v3945_v5 = vpop.eup %3944 }
0x1d14   :  { %v2298_v18 = vmul.f32 %v3945_v5, %v2295_v45  ;;  %vm2303_vm1 = vweird.f32 %v3945_v5 }
0x1d15   :  { %vm2304_vm12 = vmor %vm2302_vm11, %vm2303_vm1 }
0x1d16   :  { %v2299_v20 = vsub.f32 1.0, %v2298_v18 }
0x1d18   :  { %v2300_v29 = vmul.f32 %v3945_v5, %v2299_v20 }
0x1d1a   :  { %v2301_v36 = vadd.f32 %v3945_v5, %v2300_v29 }
0x1d1c   :  { %v2305_v49 = vsel %vm2304_vm12, %v3945_v5, %v2301_v36 }
0x1d1d   :  { %v2310_v33 = vsel %vm2307_vm13, %v2309_v53, %v2305_v49 }
0x1d1e   :  { %v2330_v28 = vmul.f32 %v2328_v40, %v2310_v33 }
0x1d20   :  { %2332 = vrot.lane.b32.xlu0 %v2330_v28, %s4085_s13  ;;  %v2347_v28 = vadd.f32 %v5343_v61, %v5292_v23 }
0x1d92   :  { %v2333_v41 = vpop.permute.xlu0 %2332 }
0x1d93   :  { %v2335_v24 = vadd.f32 %v2333_v41, %v2256_v62 }
0x1d95   :  { %3946 = vtanh.f32 %v2335_v24 }
0x1d96   :  { %3948 = vpow2.f32 %v3601_v22 }
0x1d9b   :  { %v3947_v39 = vpop.eup %3946 }
0x1d9c   :  { %2339 = vrot.lane.b32.xlu1 %v3947_v39, %s4083_s8  ;;  %v3949_v59 = vpop.eup %3948 }
0x1d9d   :  { %v2296_v42 = vadd.f32 1.0, %v3949_v59 }
0x1d9f   :  { %3950 = vrcp.f32 %v2296_v42  ;;  %v2323_v43 = vand.u32 2147483648, %v2296_v42  ;;  %vm2317_vm15 = vweird.f32 %v2296_v42  ;;  %v2321_v14 = vand.u32 2147483647, %v2296_v42 }
0x1da1   :  { %v2324_v44 = vor.u32 1.1754944e-38, %v2323_v43  ;;  %vm2322_vm4 = vcmp.eq.f32.partialorder %v2321_v14, 8.507059e+37 }
0x1da5   :  { %v3951_v37 = vpop.eup %3950 }
0x1da6   :  { %v2313_v56 = vmul.f32 %v3951_v37, %v2296_v42  ;;  %vm2318_vm14 = vweird.f32 %v3951_v37 }
0x1da7   :  { %vm2319_vm0 = vmor %vm2317_vm15, %vm2318_vm14 }
0x1da8   :  { %v2314_v27 = vsub.f32 1.0, %v2313_v56 }
0x1daa   :  { %v2315_v10 = vmul.f32 %v3951_v37, %v2314_v27 }
0x1dac   :  { %v2316_v21 = vadd.f32 %v3951_v37, %v2315_v10 }
0x1dae   :  { %v2320_v32 = vsel %vm2319_vm0, %v3951_v37, %v2316_v21 }
0x1daf   :  { %v2325_v9 = vsel %vm2322_vm4, %v2324_v44, %v2320_v32 }
0x1db0   :  { %v2337_v46 = vsub.f32 1.0, %v2325_v9  ;;  %v2343_v52 = vmul.f32 %v2325_v9, %v5331_v48 }
0x1e0e   :  { %v2340_v11 = vpop.permute.xlu1 %2339 }
0x1e0f   :  { %v2342_v4 = vmul.f32 %v2340_v11, %v2337_v46 }
0x1e11   :  { %v2344_v63 = vadd.f32 %v2343_v52, %v2342_v4 }
0x1e13   :  { %2345 = vst.msk [vmem:[#allocation2] sm:$0xff] %vm917_vm3, %v2344_v63  ;;  %3602 = vmatmul.msk.f32.vlgmr.msra.gmra.mxu2 %vm917_vm3, %v2344_v63 }
0x1e96   :  { %v2368_v2 = vpop.f32.mrf.mxu2 }
0x1e97   :  { %v2369_v3 = vadd.f32 %v5338_v60, %v2368_v2  ;;  %v2434_v2 = vadd.f32 %v5343_v61, %v5054_v26 }
0x1e99   :  { %2415 = vrot.lane.b32.xlu0 %v2369_v3, %s4086_s3  ;;  %2372 = vrot.lane.b32.xlu2 %v2369_v3, %s4083_s8 }
0x1ef3   :  { %v2373_v58 = vpop.permute.xlu2 %2372 }
0x1ef4   :  { %v2375_v31 = vadd.f32 %v2373_v58, %v2346_v16  ;;  %v2376_v24 = vadd.f32 %v2373_v58, %v2347_v28 }
0x1ef6   :  { %v3603_v12 = vmul.f32 -1.442695, %v2375_v31  ;;  %v3604_v39 = vmul.f32 -1.442695, %v2376_v24 }
0x1ef8   :  { %3952 = vpow2.f32 %v3603_v12 }
0x1efe   :  { %v3953_v48 = vpop.eup %3952 }
0x1eff   :  { %v2383_v45 = vadd.f32 1.0, %v3953_v48 }
0x1f01   :  { %3954 = vrcp.f32 %v2383_v45  ;;  %v2396_v1 = vand.u32 2147483648, %v2383_v45  ;;  %v2394_v8 = vand.u32 2147483647, %v2383_v45  ;;  %vm2390_vm6 = vweird.f32 %v2383_v45 }
0x1f03   :  { %v2397_v53 = vor.u32 1.1754944e-38, %v2396_v1  ;;  %vm2395_vm8 = vcmp.eq.f32.partialorder %v2394_v8, 8.507059e+37 }
0x1f07   :  { %v3955_v5 = vpop.eup %3954 }
0x1f08   :  { %v2386_v18 = vmul.f32 %v3955_v5, %v2383_v45  ;;  %vm2391_vm5 = vweird.f32 %v3955_v5 }
0x1f09   :  { %vm2392_vm7 = vmor %vm2390_vm6, %vm2391_vm5 }
0x1f0a   :  { %v2387_v20 = vsub.f32 1.0, %v2386_v18 }
0x1f0b   :  { %v2416_v57 = vpop.permute.xlu0 %2415 }
0x1f0c   :  { %v2388_v29 = vmul.f32 %v3955_v5, %v2387_v20 }
0x1f0e   :  { %v2389_v36 = vadd.f32 %v3955_v5, %v2388_v29 }
0x1f10   :  { %v2393_v49 = vsel %vm2392_vm7, %v3955_v5, %v2389_v36 }
0x1f11   :  { %v2398_v40 = vsel %vm2395_vm8, %v2397_v53, %v2393_v49  ;;  %v2435_v49 = vadd.f32 %v5343_v61, %v5295_v35 }
0x1f12   :  { %v2418_v33 = vmul.f32 %v2416_v57, %v2398_v40 }
0x1f14   :  { %2420 = vrot.lane.b32.xlu1 %v2418_v33, %s4085_s13 }
0x1f86   :  { %v2421_v34 = vpop.permute.xlu1 %2420 }
0x1f87   :  { %v2423_v62 = vadd.f32 %v2421_v34, %v2347_v28 }
0x1f89   :  { %3956 = vtanh.f32 %v2423_v62 }
0x1f8a   :  { %3958 = vpow2.f32 %v3604_v39 }
0x1f8f   :  { %v3957_v41 = vpop.eup %3956 }
0x1f90   :  { %2427 = vrot.lane.b32.xlu2 %v3957_v41, %s4083_s8  ;;  %v3959_v47 = vpop.eup %3958 }
0x1f91   :  { %v2384_v22 = vadd.f32 1.0, %v3959_v47 }
0x1f93   :  { %3960 = vrcp.f32 %v2384_v22  ;;  %v2411_v10 = vand.u32 2147483648, %v2384_v22  ;;  %vm2405_vm10 = vweird.f32 %v2384_v22  ;;  %v2409_v23 = vand.u32 2147483647, %v2384_v22 }
0x1f95   :  { %v2412_v43 = vor.u32 1.1754944e-38, %v2411_v10  ;;  %vm2410_vm11 = vcmp.eq.f32.partialorder %v2409_v23, 8.507059e+37 }
0x1f99   :  { %v3961_v59 = vpop.eup %3960 }
0x1f9a   :  { %v2401_v42 = vmul.f32 %v3961_v59, %v2384_v22  ;;  %vm2406_vm9 = vweird.f32 %v3961_v59 }
0x1f9b   :  { %vm2407_vm1 = vmor %vm2405_vm10, %vm2406_vm9 }
0x1f9c   :  { %v2402_v37 = vsub.f32 1.0, %v2401_v42 }
0x1f9e   :  { %v2403_v56 = vmul.f32 %v3961_v59, %v2402_v37 }
0x1fa0   :  { %v2404_v27 = vadd.f32 %v3961_v59, %v2403_v56 }
0x1fa2   :  { %v2408_v21 = vsel %vm2407_vm1, %v3961_v59, %v2404_v27 }
0x1fa3   :  { %v2413_v14 = vsel %vm2410_vm11, %v2412_v43, %v2408_v21 }
0x1fa4   :  { %v2425_v32 = vsub.f32 1.0, %v2413_v14  ;;  %v2431_v9 = vmul.f32 %v2413_v14, %v2344_v63 }
0x1fea   :  { %v2428_v44 = vpop.permute.xlu2 %2427 }
0x1feb   :  { %v2430_v46 = vmul.f32 %v2428_v44, %v2425_v32 }
0x1fed   :  { %v2432_v11 = vadd.f32 %v2431_v9, %v2430_v46  ;;  %v2522_v9 = vadd.f32 %v5343_v61, %v5076_v51 }
0x1fef   :  { %2433 = vst.msk [vmem:[#allocation2 + $0x8] sm:$0xff] %vm917_vm3, %v2432_v11  ;;  %3605 = vmatmul.msk.f32.vlgmr.msra.gmra.mxu3 %vm917_vm3, %v2432_v11 }
0x2072   :  { %v2456_v52 = vpop.f32.mrf.mxu3 }
0x2073   :  { %v2457_v4 = vadd.f32 %v5338_v60, %v2456_v52 }
0x2075   :  { %2503 = vrot.lane.b32.xlu1 %v2457_v4, %s4086_s3  ;;  %2460 = vrot.lane.b32.xlu0 %v2457_v4, %s4083_s8 }
0x20e7   :  { %v2461_v3 = vpop.permute.xlu0 %2460  ;;  %v2504_v26 = vpop.permute.xlu1 %2503 }
0x20e8   :  { %v2463_v16 = vadd.f32 %v2461_v3, %v2434_v2  ;;  %v2464_v28 = vadd.f32 %v2461_v3, %v2435_v49 }
0x20ea   :  { %v3606_v58 = vmul.f32 -1.442695, %v2463_v16  ;;  %v3607_v34 = vmul.f32 -1.442695, %v2464_v28 }
0x20ec   :  { %3962 = vpow2.f32 %v3606_v58 }
0x20f2   :  { %v3963_v63 = vpop.eup %3962 }
0x20f3   :  { %v2471_v31 = vadd.f32 1.0, %v3963_v63 }
0x20f5   :  { %3964 = vrcp.f32 %v2471_v31  ;;  %v2484_v5 = vand.u32 2147483648, %v2471_v31  ;;  %v2482_v20 = vand.u32 2147483647, %v2471_v31  ;;  %vm2478_vm13 = vweird.f32 %v2471_v31 }
0x20f7   :  { %v2485_v29 = vor.u32 1.1754944e-38, %v2484_v5  ;;  %vm2483_vm15 = vcmp.eq.f32.partialorder %v2482_v20, 8.507059e+37 }
0x20fb   :  { %v3965_v12 = vpop.eup %3964 }
0x20fc   :  { %v2474_v48 = vmul.f32 %v3965_v12, %v2471_v31  ;;  %vm2479_vm12 = vweird.f32 %v3965_v12 }
0x20fd   :  { %vm2480_vm14 = vmor %vm2478_vm13, %vm2479_vm12 }
0x20fe   :  { %v2475_v45 = vsub.f32 1.0, %v2474_v48 }
0x2100   :  { %v2476_v18 = vmul.f32 %v3965_v12, %v2475_v45 }
0x2102   :  { %v2477_v1 = vadd.f32 %v3965_v12, %v2476_v18 }
0x2104   :  { %v2481_v8 = vsel %vm2480_vm14, %v3965_v12, %v2477_v1  ;;  %v2523_v1 = vadd.f32 %v5343_v61, %v5298_v54 }
0x2105   :  { %v2486_v36 = vsel %vm2483_vm15, %v2485_v29, %v2481_v8 }
0x2106   :  { %v2506_v53 = vmul.f32 %v2504_v26, %v2486_v36 }
0x2108   :  { %2508 = vrot.lane.b32.xlu2 %v2506_v53, %s4085_s13 }
0x2162   :  { %v2509_v57 = vpop.permute.xlu2 %2508 }
0x2163   :  { %v2511_v40 = vadd.f32 %v2509_v57, %v2435_v49 }
0x2165   :  { %3966 = vtanh.f32 %v2511_v40 }
0x2166   :  { %3968 = vpow2.f32 %v3607_v34 }
0x216b   :  { %v3967_v33 = vpop.eup %3966 }
0x216c   :  { %2515 = vrot.lane.b32.xlu0 %v3967_v33, %s4083_s8  ;;  %v3969_v62 = vpop.eup %3968 }
0x216d   :  { %v2472_v41 = vadd.f32 1.0, %v3969_v62 }
0x216f   :  { %3970 = vrcp.f32 %v2472_v41  ;;  %v2499_v42 = vand.u32 2147483648, %v2472_v41  ;;  %vm2493_vm4 = vweird.f32 %v2472_v41  ;;  %v2497_v35 = vand.u32 2147483647, %v2472_v41 }
0x2171   :  { %v2500_v56 = vor.u32 1.1754944e-38, %v2499_v42  ;;  %vm2498_vm6 = vcmp.eq.f32.partialorder %v2497_v35, 8.507059e+37 }
0x2175   :  { %v3971_v24 = vpop.eup %3970 }
0x2176   :  { %v2489_v39 = vmul.f32 %v3971_v24, %v2472_v41  ;;  %vm2494_vm0 = vweird.f32 %v3971_v24 }
0x2177   :  { %vm2495_vm5 = vmor %vm2493_vm4, %vm2494_vm0 }
0x2178   :  { %v2490_v47 = vsub.f32 1.0, %v2489_v39 }
0x217a   :  { %v2491_v22 = vmul.f32 %v3971_v24, %v2490_v47 }
0x217c   :  { %v2492_v59 = vadd.f32 %v3971_v24, %v2491_v22 }
0x217e   :  { %v2496_v37 = vsel %vm2495_vm5, %v3971_v24, %v2492_v59 }
0x217f   :  { %v2501_v27 = vsel %vm2498_vm6, %v2500_v56, %v2496_v37 }
0x2180   :  { %v2513_v10 = vsub.f32 1.0, %v2501_v27  ;;  %v2519_v21 = vmul.f32 %v2501_v27, %v2432_v11 }
0x21de   :  { %v2516_v23 = vpop.permute.xlu0 %2515 }
0x21df   :  { %v2518_v43 = vmul.f32 %v2516_v23, %v2513_v10  ;;  %v2610_v10 = vadd.f32 %v5343_v61, %v5103_v30 }
0x21e1   :  { %v2520_v14 = vadd.f32 %v2519_v21, %v2518_v43 }
0x21e3   :  { %2521 = vst.msk [vmem:[#allocation2 + $0x10] sm:$0xff] %vm917_vm3, %v2520_v14  ;;  %3608 = vmatmul.msk.f32.vlgmr.msra.gmra.mxu0 %vm917_vm3, %v2520_v14 }
0x2260   :  { %v2544_v32 = vpop.f32.mrf.mxu0 }
0x2261   :  { %v2545_v44 = vadd.f32 %v5338_v60, %v2544_v32 }
0x2263   :  { %2591 = vrot.lane.b32.xlu2 %v2545_v44, %s4086_s3  ;;  %2548 = vrot.lane.b32.xlu1 %v2545_v44, %s4083_s8 }
0x22bd   :  { %v2592_v51 = vpop.permute.xlu2 %2591 }
0x22d5   :  { %v2549_v46 = vpop.permute.xlu1 %2548 }
0x22d6   :  { %v2551_v52 = vadd.f32 %v2549_v46, %v2522_v9  ;;  %v2552_v36 = vadd.f32 %v2549_v46, %v2523_v1 }
0x22d8   :  { %v3609_v4 = vmul.f32 -1.442695, %v2551_v52  ;;  %v3610_v53 = vmul.f32 -1.442695, %v2552_v36  ;;  %v3059_v36 = vld [vmem:[%s5783_s24] sm:$0xff] }
0x22da   :  { %3972 = vpow2.f32 %v3609_v4 }
0x22e0   :  { %v3973_v11 = vpop.eup %3972 }
0x22e1   :  { %v2559_v2 = vadd.f32 1.0, %v3973_v11 }
0x22e3   :  { %3974 = vrcp.f32 %v2559_v2  ;;  %v2572_v63 = vand.u32 2147483648, %v2559_v2  ;;  %v2570_v12 = vand.u32 2147483647, %v2559_v2  ;;  %vm2566_vm8 = vweird.f32 %v2559_v2 }
0x22e5   :  { %v2573_v45 = vor.u32 1.1754944e-38, %v2572_v63  ;;  %vm2571_vm10 = vcmp.eq.f32.partialorder %v2570_v12, 8.507059e+37 }
0x22e9   :  { %v3975_v3 = vpop.eup %3974 }
0x22ea   :  { %v2562_v16 = vmul.f32 %v3975_v3, %v2559_v2  ;;  %vm2567_vm7 = vweird.f32 %v3975_v3 }
0x22eb   :  { %vm2568_vm9 = vmor %vm2566_vm8, %vm2567_vm7 }
0x22ec   :  { %v2563_v58 = vsub.f32 1.0, %v2562_v16 }
0x22ee   :  { %v2564_v31 = vmul.f32 %v3975_v3, %v2563_v58 }
0x22f0   :  { %v2565_v48 = vadd.f32 %v3975_v3, %v2564_v31  ;;  %v2611_v31 = vadd.f32 %v5343_v61, %v5301_v13  ;;  %v3061_v13 = vld [vmem:[%s5783_s24 + $0x10] sm:$0xff] }
0x22f2   :  { %v2569_v5 = vsel %vm2568_vm9, %v3975_v3, %v2565_v48 }
0x22f3   :  { %v2574_v18 = vsel %vm2571_vm10, %v2573_v45, %v2569_v5 }
0x22f4   :  { %v2594_v20 = vmul.f32 %v2592_v51, %v2574_v18 }
0x22f6   :  { %2596 = vrot.lane.b32.xlu0 %v2594_v20, %s4085_s13 }
0x2368   :  { %v2597_v29 = vpop.permute.xlu0 %2596 }
0x2369   :  { %v2599_v8 = vadd.f32 %v2597_v29, %v2523_v1  ;;  %v3062_v1 = vld [vmem:[%s5783_s24 + $0x18] sm:$0xff] }
0x236a   :  { %3106 = vmatpush.msra.mxu2 %v3062_v1 }
0x236b   :  { %3976 = vtanh.f32 %v2599_v8  ;;  %v3060_v8 = vld [vmem:[%s5783_s24 + $0x8] sm:$0xff] }
0x236c   :  { %3978 = vpow2.f32 %v3610_v53  ;;  %3107 = vmatpush.msra.mxu2 %v3061_v13 }
0x236e   :  { %3108 = vmatpush.msra.mxu2 %v3060_v8 }
0x2370   :  { %3109 = vmatpush.msra.mxu2 %v3059_v36 }
0x2371   :  { %v3977_v26 = vpop.eup %3976 }
0x2372   :  { %2603 = vrot.lane.b32.xlu1 %v3977_v26, %s4083_s8  ;;  %v3979_v49 = vpop.eup %3978 }
0x2373   :  { %v2560_v57 = vadd.f32 1.0, %v3979_v49 }
0x2375   :  { %3980 = vrcp.f32 %v2560_v57  ;;  %v2587_v41 = vand.u32 2147483648, %v2560_v57  ;;  %vm2581_vm11 = vweird.f32 %v2560_v57  ;;  %v2585_v54 = vand.u32 2147483647, %v2560_v57 }
0x2377   :  { %v2588_v39 = vor.u32 1.1754944e-38, %v2587_v41  ;;  %vm2586_vm13 = vcmp.eq.f32.partialorder %v2585_v54, 8.507059e+37 }
0x237b   :  { %v3981_v40 = vpop.eup %3980 }
0x237c   :  { %v2577_v33 = vmul.f32 %v3981_v40, %v2560_v57  ;;  %vm2582_vm1 = vweird.f32 %v3981_v40 }
0x237d   :  { %vm2583_vm12 = vmor %vm2581_vm11, %vm2582_vm1 }
0x237e   :  { %v2578_v28 = vsub.f32 1.0, %v2577_v33 }
0x2380   :  { %v2579_v34 = vmul.f32 %v3981_v40, %v2578_v28 }
0x2382   :  { %v2580_v62 = vadd.f32 %v3981_v40, %v2579_v34 }
0x2384   :  { %v2584_v24 = vsel %vm2583_vm12, %v3981_v40, %v2580_v62 }
0x2385   :  { %v2589_v47 = vsel %vm2586_vm13, %v2588_v39, %v2584_v24 }
0x2386   :  { %v2601_v22 = vsub.f32 1.0, %v2589_v47  ;;  %v2607_v42 = vmul.f32 %v2589_v47, %v2520_v14 }
0x23e4   :  { %v2604_v59 = vpop.permute.xlu1 %2603 }
0x23e5   :  { %v2606_v35 = vmul.f32 %v2604_v59, %v2601_v22  ;;  %v3050_v22 = vld [vmem:[#allocation2] sm:$0xff]  ;;  %v3051_v59 = vld [vmem:[#allocation2 + $0x8] sm:$0xff] }
0x23e7   :  { %v5386_v37 = vadd.f32 %v2607_v42, %v2606_v35  ;;  %v3052_v42 = vld [vmem:[#allocation2 + $0x10] sm:$0xff] }
0x23e9   :  { %2609 = vst.msk [vmem:[#allocation2 + $0x18] sm:$0xff] %vm917_vm3, %v5386_v37  ;;  %3611 = vmatmul.msk.f32.vlgmr.msrb.gmra.mxu1 %vm917_vm3, %v5386_v37 }
0x23f0   :  { %v3053_v35 = vld [vmem:[#allocation2 + $0x18] sm:$0xff] }
0x2466   :  { %v2632_v56 = vpop.f32.mrf.mxu1 }
0x2467   :  { %v2633_v27 = vadd.f32 %v5338_v60, %v2632_v56 }
0x2469   :  { %2679 = vrot.lane.b32.xlu0 %v2633_v27, %s4086_s3  ;;  %2636 = vrot.lane.b32.xlu2 %v2633_v27, %s4083_s8 }
0x24c3   :  { %v2637_v23 = vpop.permute.xlu2 %2636 }
0x24c4   :  { %v2639_v21 = vadd.f32 %v2637_v23, %v2610_v10  ;;  %v2640_v5 = vadd.f32 %v2637_v23, %v2611_v31  ;;  %v2698_v10 = vadd.f32 %v5343_v61, %v5125_v15 }
0x24c6   :  { %v3612_v43 = vmul.f32 -1.442695, %v2639_v21  ;;  %v3613_v51 = vmul.f32 -1.442695, %v2640_v5 }
0x24c8   :  { %3982 = vpow2.f32 %v3612_v43 }
0x24ce   :  { %v3983_v14 = vpop.eup %3982 }
0x24cf   :  { %v2647_v32 = vadd.f32 1.0, %v3983_v14 }
0x24d1   :  { %3984 = vrcp.f32 %v2647_v32  ;;  %v2660_v52 = vand.u32 2147483648, %v2647_v32  ;;  %v2658_v11 = vand.u32 2147483647, %v2647_v32  ;;  %vm2654_vm15 = vweird.f32 %v2647_v32 }
0x24d3   :  { %v2661_v3 = vor.u32 1.1754944e-38, %v2660_v52  ;;  %vm2659_vm4 = vcmp.eq.f32.partialorder %v2658_v11, 8.507059e+37 }
0x24d7   :  { %v3985_v44 = vpop.eup %3984 }
0x24d8   :  { %v2650_v9 = vmul.f32 %v3985_v44, %v2647_v32  ;;  %vm2655_vm14 = vweird.f32 %v3985_v44 }
0x24d9   :  { %vm2656_vm0 = vmor %vm2654_vm15, %vm2655_vm14 }
0x24da   :  { %v2651_v46 = vsub.f32 1.0, %v2650_v9 }
0x24db   :  { %v2680_v30 = vpop.permute.xlu0 %2679 }
0x24dc   :  { %v2652_v4 = vmul.f32 %v3985_v44, %v2651_v46 }
0x24de   :  { %v2653_v2 = vadd.f32 %v3985_v44, %v2652_v4 }
0x24e0   :  { %v2657_v16 = vsel %vm2656_vm0, %v3985_v44, %v2653_v2 }
0x24e1   :  { %v2662_v58 = vsel %vm2659_vm4, %v2661_v3, %v2657_v16 }
0x24e2   :  { %v2682_v63 = vmul.f32 %v2680_v30, %v2662_v58 }
0x24e4   :  { %2684 = vrot.lane.b32.xlu1 %v2682_v63, %s4085_s13  ;;  %v2699_v63 = vadd.f32 %v5343_v61, %v5304_v17 }
0x2556   :  { %v2685_v12 = vpop.permute.xlu1 %2684 }
0x2557   :  { %v2687_v48 = vadd.f32 %v2685_v12, %v2611_v31 }
0x2559   :  { %3986 = vtanh.f32 %v2687_v48 }
0x255a   :  { %3988 = vpow2.f32 %v3613_v51 }
0x255f   :  { %v3987_v45 = vpop.eup %3986 }
0x2560   :  { %2691 = vrot.lane.b32.xlu2 %v3987_v45, %s4083_s8  ;;  %v3989_v18 = vpop.eup %3988 }
0x2561   :  { %v2648_v20 = vadd.f32 1.0, %v3989_v18 }
0x2563   :  { %3990 = vrcp.f32 %v2648_v20  ;;  %v2675_v40 = vand.u32 2147483648, %v2648_v20  ;;  %vm2669_vm6 = vweird.f32 %v2648_v20  ;;  %v2673_v33 = vand.u32 2147483647, %v2648_v20 }
0x2565   :  { %v2676_v34 = vor.u32 1.1754944e-38, %v2675_v40  ;;  %vm2674_vm8 = vcmp.eq.f32.partialorder %v2673_v33, 8.507059e+37 }
0x2569   :  { %v3991_v29 = vpop.eup %3990 }
0x256a   :  { %v2665_v26 = vmul.f32 %v3991_v29, %v2648_v20  ;;  %vm2670_vm5 = vweird.f32 %v3991_v29 }
0x256b   :  { %vm2671_vm7 = vmor %vm2669_vm6, %vm2670_vm5 }
0x256c   :  { %v2666_v53 = vsub.f32 1.0, %v2665_v26 }
0x256e   :  { %v2667_v49 = vmul.f32 %v3991_v29, %v2666_v53 }
0x2570   :  { %v2668_v57 = vadd.f32 %v3991_v29, %v2667_v49 }
0x2572   :  { %v2672_v28 = vsel %vm2671_vm7, %v3991_v29, %v2668_v57 }
0x2573   :  { %v2677_v62 = vsel %vm2674_vm8, %v2676_v34, %v2672_v28 }
0x2574   :  { %v2689_v41 = vsub.f32 1.0, %v2677_v62  ;;  %v2695_v24 = vmul.f32 %v2677_v62, %v5386_v37 }
0x25ba   :  { %v2692_v54 = vpop.permute.xlu2 %2691 }
0x25bb   :  { %v2694_v39 = vmul.f32 %v2692_v54, %v2689_v41 }
0x25bd   :  { %v5414_v47 = vadd.f32 %v2695_v24, %v2694_v39  ;;  %v2786_v24 = vadd.f32 %v5343_v61, %v5143_v7 }
0x25bf   :  { %2697 = vst.msk [vmem:[#allocation2 + $0x20] sm:$0xff] %vm917_vm3, %v5414_v47  ;;  %3614 = vmatmul.msk.f32.vlgmr.msrb.gmra.mxu2 %vm917_vm3, %v5414_v47 }
0x25c6   :  { %v3054_v37 = vld [vmem:[#allocation2 + $0x20] sm:$0xff] }
0x25c7   :  { %3626 = vmatmul.msk.f32.vlgmr.msra.gmra.mxu2 %vm917_vm3, %v3050_v22 }
0x25cf   :  { %3627 = vmatmul.msk.f32.gmra.mxu2 %vm917_vm3, %v3051_v59 }
0x25d7   :  { %3628 = vmatmul.msk.f32.gmra.mxu2 %vm917_vm3, %v3052_v42 }
0x25df   :  { %3629 = vmatmul.msk.f32.gmra.mxu2 %vm917_vm3, %v3053_v35 }
0x25e7   :  { %3630 = vmatmul.msk.f32.gmra.mxu2 %vm917_vm3, %v3054_v37 }
0x2642   :  { %v2720_v56 = vpop.f32.mrf.mxu2 }
0x2643   :  { %v2721_v27 = vadd.f32 %v5338_v60, %v2720_v56 }
0x2645   :  { %2767 = vrot.lane.b32.xlu1 %v2721_v27, %s4086_s3  ;;  %2724 = vrot.lane.b32.xlu0 %v2721_v27, %s4083_s8 }
0x26b7   :  { %v2725_v23 = vpop.permute.xlu0 %2724  ;;  %v2768_v15 = vpop.permute.xlu1 %2767 }
0x26b8   :  { %v2727_v21 = vadd.f32 %v2725_v23, %v2698_v10  ;;  %v2728_v45 = vadd.f32 %v2725_v23, %v2699_v63 }
0x26ba   :  { %v3615_v43 = vmul.f32 -1.442695, %v2727_v21  ;;  %v3616_v5 = vmul.f32 -1.442695, %v2728_v45 }
0x26bc   :  { %3992 = vpow2.f32 %v3615_v43 }
0x26c2   :  { %v3993_v14 = vpop.eup %3992 }
0x26c3   :  { %v2735_v32 = vadd.f32 1.0, %v3993_v14 }
0x26c5   :  { %3994 = vrcp.f32 %v2735_v32  ;;  %v2748_v52 = vand.u32 2147483648, %v2735_v32  ;;  %v2746_v11 = vand.u32 2147483647, %v2735_v32  ;;  %vm2742_vm10 = vweird.f32 %v2735_v32 }
0x26c7   :  { %v2749_v3 = vor.u32 1.1754944e-38, %v2748_v52  ;;  %vm2747_vm11 = vcmp.eq.f32.partialorder %v2746_v11, 8.507059e+37 }
0x26cb   :  { %v3995_v44 = vpop.eup %3994 }
0x26cc   :  { %v2738_v9 = vmul.f32 %v3995_v44, %v2735_v32  ;;  %vm2743_vm9 = vweird.f32 %v3995_v44 }
0x26cd   :  { %vm2744_vm1 = vmor %vm2742_vm10, %vm2743_vm9 }
0x26ce   :  { %v2739_v46 = vsub.f32 1.0, %v2738_v9  ;;  %v2787_v9 = vadd.f32 %v5343_v61, %v5307_v19 }
0x26d0   :  { %v2740_v4 = vmul.f32 %v3995_v44, %v2739_v46 }
0x26d2   :  { %v2741_v2 = vadd.f32 %v3995_v44, %v2740_v4 }
0x26d4   :  { %v2745_v16 = vsel %vm2744_vm1, %v3995_v44, %v2741_v2 }
0x26d5   :  { %v2750_v30 = vsel %vm2747_vm11, %v2749_v3, %v2745_v16 }
0x26d6   :  { %v2770_v58 = vmul.f32 %v2768_v15, %v2750_v30 }
0x26d8   :  { %2772 = vrot.lane.b32.xlu2 %v2770_v58, %s4085_s13 }
0x2732   :  { %v2773_v31 = vpop.permute.xlu2 %2772 }
0x2733   :  { %v2775_v12 = vadd.f32 %v2773_v31, %v2699_v63 }
0x2735   :  { %3996 = vtanh.f32 %v2775_v12 }
0x2736   :  { %3998 = vpow2.f32 %v3616_v5 }
0x273b   :  { %v3997_v48 = vpop.eup %3996 }
0x273c   :  { %2779 = vrot.lane.b32.xlu0 %v3997_v48, %s4083_s8  ;;  %v3999_v51 = vpop.eup %3998 }
0x273d   :  { %v2736_v18 = vadd.f32 1.0, %v3999_v51 }
0x273f   :  { %4000 = vrcp.f32 %v2736_v18  ;;  %v2763_v26 = vand.u32 2147483648, %v2736_v18  ;;  %vm2757_vm13 = vweird.f32 %v2736_v18  ;;  %v2761_v17 = vand.u32 2147483647, %v2736_v18 }
0x2741   :  { %v2764_v53 = vor.u32 1.1754944e-38, %v2763_v26  ;;  %vm2762_vm15 = vcmp.eq.f32.partialorder %v2761_v17, 8.507059e+37  ;;  %v2874_v17 = vadd.f32 %v5343_v61, %v5161_v55 }
0x2745   :  { %v4001_v20 = vpop.eup %4000 }
0x2746   :  { %v2753_v1 = vmul.f32 %v4001_v20, %v2736_v18  ;;  %vm2758_vm12 = vweird.f32 %v4001_v20 }
0x2747   :  { %vm2759_vm14 = vmor %vm2757_vm13, %vm2758_vm12 }
0x2748   :  { %v2754_v13 = vsub.f32 1.0, %v2753_v1 }
0x274a   :  { %v2755_v29 = vmul.f32 %v4001_v20, %v2754_v13 }
0x274c   :  { %v2756_v8 = vadd.f32 %v4001_v20, %v2755_v29 }
0x274e   :  { %v2760_v36 = vsel %vm2759_vm14, %v4001_v20, %v2756_v8 }
0x274f   :  { %v2765_v49 = vsel %vm2762_vm15, %v2764_v53, %v2760_v36 }
0x2750   :  { %v2777_v57 = vsub.f32 1.0, %v2765_v49  ;;  %v2783_v33 = vmul.f32 %v2765_v49, %v5414_v47 }
0x27ae   :  { %v2780_v40 = vpop.permute.xlu0 %2779 }
0x27af   :  { %v2782_v28 = vmul.f32 %v2780_v40, %v2777_v57 }
0x27b1   :  { %v2784_v34 = vadd.f32 %v2783_v33, %v2782_v28 }
0x27b3   :  { %2785 = vst.msk [vmem:[#allocation2 + $0x28] sm:$0xff] %vm917_vm3, %v2784_v34  ;;  %3617 = vmatmul.msk.f32.vlgmr.msrb.gmra.mxu3 %vm917_vm3, %v2784_v34 }
0x27ba   :  { %v3055_v62 = vld [vmem:[#allocation2 + $0x28] sm:$0xff] }
0x27bb   :  { %3631 = vmatmul.msk.f32.gmra.mxu2 %vm917_vm3, %v3055_v62 }
0x2836   :  { %v2808_v41 = vpop.f32.mrf.mxu3 }
0x2837   :  { %v2809_v54 = vadd.f32 %v5338_v60, %v2808_v41 }
0x2839   :  { %2855 = vrot.lane.b32.xlu2 %v2809_v54, %s4086_s3  ;;  %2812 = vrot.lane.b32.xlu1 %v2809_v54, %s4083_s8 }
0x2893   :  { %v2856_v7 = vpop.permute.xlu2 %2855 }
0x28ab   :  { %v2813_v39 = vpop.permute.xlu1 %2812 }
0x28ac   :  { %v2815_v47 = vadd.f32 %v2813_v39, %v2786_v24  ;;  %v2816_v11 = vadd.f32 %v2813_v39, %v2787_v9 }
0x28ae   :  { %v3618_v22 = vmul.f32 -1.442695, %v2815_v47  ;;  %v3619_v2 = vmul.f32 -1.442695, %v2816_v11 }
0x28b0   :  { %4002 = vpow2.f32 %v3618_v22 }
0x28b6   :  { %v4003_v59 = vpop.eup %4002 }
0x28b7   :  { %v2823_v42 = vadd.f32 1.0, %v4003_v59  ;;  %v2875_v59 = vadd.f32 %v5343_v61, %v5310_v25 }
0x28b9   :  { %4004 = vrcp.f32 %v2823_v42  ;;  %v2836_v27 = vand.u32 2147483648, %v2823_v42  ;;  %v2834_v23 = vand.u32 2147483647, %v2823_v42  ;;  %vm2830_vm4 = vweird.f32 %v2823_v42 }
0x28bb   :  { %v2837_v43 = vor.u32 1.1754944e-38, %v2836_v27  ;;  %vm2835_vm6 = vcmp.eq.f32.partialorder %v2834_v23, 8.507059e+37 }
0x28bf   :  { %v4005_v35 = vpop.eup %4004 }
0x28c0   :  { %v2826_v37 = vmul.f32 %v4005_v35, %v2823_v42  ;;  %vm2831_vm0 = vweird.f32 %v4005_v35 }
0x28c1   :  { %vm2832_vm5 = vmor %vm2830_vm4, %vm2831_vm0 }
0x28c2   :  { %v2827_v56 = vsub.f32 1.0, %v2826_v37 }
0x28c4   :  { %v2828_v10 = vmul.f32 %v4005_v35, %v2827_v56 }
0x28c6   :  { %v2829_v21 = vadd.f32 %v4005_v35, %v2828_v10 }
0x28c8   :  { %v2833_v14 = vsel %vm2832_vm5, %v4005_v35, %v2829_v21  ;;  %vm3230_vm5 = vcmask 162816  }
0x28c9   :  { %v2838_v32 = vsel %vm2835_vm6, %v2837_v43, %v2833_v14 }
0x28ca   :  { %v2858_v44 = vmul.f32 %v2856_v7, %v2838_v32 }
0x28cc   :  { %2860 = vrot.lane.b32.xlu0 %v2858_v44, %s4085_s13 }
0x293e   :  { %v2861_v46 = vpop.permute.xlu0 %2860 }
0x293f   :  { %v2863_v52 = vadd.f32 %v2861_v46, %v2787_v9 }
0x2941   :  { %4006 = vtanh.f32 %v2863_v52 }
0x2942   :  { %4008 = vpow2.f32 %v3619_v2 }
0x2947   :  { %v4007_v4 = vpop.eup %4006 }
0x2948   :  { %2867 = vrot.lane.b32.xlu1 %v4007_v4, %s4083_s8  ;;  %v4009_v3 = vpop.eup %4008 }
0x2949   :  { %v2824_v16 = vadd.f32 1.0, %v4009_v3 }
0x294b   :  { %4010 = vrcp.f32 %v2824_v16  ;;  %v2851_v12 = vand.u32 2147483648, %v2824_v16  ;;  %vm2845_vm8 = vweird.f32 %v2824_v16  ;;  %v2849_v19 = vand.u32 2147483647, %v2824_v16 }
0x294d   :  { %v2852_v45 = vor.u32 1.1754944e-38, %v2851_v12  ;;  %vm2850_vm10 = vcmp.eq.f32.partialorder %v2849_v19, 8.507059e+37 }
0x2951   :  { %v4011_v15 = vpop.eup %4010 }
0x2952   :  { %v2841_v30 = vmul.f32 %v4011_v15, %v2824_v16  ;;  %vm2846_vm7 = vweird.f32 %v4011_v15 }
0x2953   :  { %vm2847_vm9 = vmor %vm2845_vm8, %vm2846_vm7 }
0x2954   :  { %v2842_v58 = vsub.f32 1.0, %v2841_v30  ;;  %v3111_v30 = vpop.f32.mrf.mxu2 }
0x2956   :  { %v2843_v63 = vmul.f32 %v4011_v15, %v2842_v58 }
0x2958   :  { %v2844_v31 = vadd.f32 %v4011_v15, %v2843_v63 }
0x295a   :  { %v2848_v48 = vsel %vm2847_vm9, %v4011_v15, %v2844_v31  ;;  %v4081_v31 = vld [vmem:[%s5782_s23] ss:$0 sm:$0xff] }
0x295b   :  { %v2853_v5 = vsel %vm2850_vm10, %v2852_v45, %v2848_v48 }
0x295c   :  { %v2865_v51 = vsub.f32 1.0, %v2853_v5  ;;  %v2871_v20 = vmul.f32 %v2853_v5, %v2784_v34  ;;  %v3114_v58 = vpop.f32.mrf.mxu2  ;;  %v4089_v5 = vmov 0  }
0x295d   :  { %3788 = vset.pattern.permute.xlu1 %v4089_v5  ;;  %3789 = vset.pattern.permute.xlu2 %v4089_v5 }
0x295e   :  { %3787 = vset.pattern.permute.xlu0 %v4089_v5 }
0x2964   :  { %v5471_v19 = vpop.f32.mrf.mxu2 }
0x296c   :  { %v3120_v48 = vpop.f32.mrf.mxu2 }
0x2974   :  { %v3123_v45 = vpop.f32.mrf.mxu2 }
0x29ba   :  { %v2868_v18 = vpop.permute.xlu1 %2867 }
0x29bb   :  { %v2870_v1 = vmul.f32 %v2868_v18, %v2865_v51  ;;  %v5476_v51 = vld [vmem:[%s5784_s25] ss:$0 sm:$0xff]  ;;  %v3126_v18 = vpop.f32.mrf.mxu2 }
0x29bd   :  { %v2872_v13 = vadd.f32 %v2871_v20, %v2870_v1  ;;  %v5479_v20 = vadd.f32 %v5476_v51, %v3111_v30 }
0x29bf   :  { %2873 = vst.msk [vmem:[#allocation2 + $0x30] sm:$0xff] %vm917_vm3, %v2872_v13  ;;  %3620 = vmatmul.msk.f32.vlgmr.msrb.gmra.mxu0 %vm917_vm3, %v2872_v13  ;;  %v3231_v1 = vsel %vm3230_vm5, %v5479_v20, -inf }
0x29c6   :  { %v3056_v29 = vld [vmem:[#allocation2 + $0x30] sm:$0xff] }
0x29c7   :  { %3632 = vmatmul.msk.f32.gmra.mxu2 %vm917_vm3, %v3056_v29  ;;  %v5486_v29 = vadd.f32 %v5476_v51, %v3123_v45  ;;  %v5580_v45 = vld [vmem:[%s5785_s5] sm:$0xff] }
0x2a3c   :  { %v2896_v8 = vpop.f32.mrf.mxu0 }
0x2a3d   :  { %v2897_v26 = vadd.f32 %v5338_v60, %v2896_v8  ;;  %v3243_v8 = vsel %vm3230_vm5, %v5486_v29, -inf }
0x2a3f   :  { %2943 = vrot.lane.b32.xlu0 %v2897_v26, %s4086_s3  ;;  %2900 = vrot.lane.b32.xlu2 %v2897_v26, %s4083_s8 }
0x2a99   :  { %v2901_v36 = vpop.permute.xlu2 %2900 }
0x2a9a   :  { %v2903_v53 = vadd.f32 %v2901_v36, %v2874_v17  ;;  %v2904_v56 = vadd.f32 %v2901_v36, %v2875_v59 }
0x2a9c   :  { %v3621_v49 = vmul.f32 -1.442695, %v2903_v53  ;;  %v3622_v27 = vmul.f32 -1.442695, %v2904_v56  ;;  %v5498_v53 = vld [vmem:[%s5785_s5 + $0x8] sm:$0xff] }
0x2a9e   :  { %4012 = vpow2.f32 %v3621_v49  ;;  %v5504_v49 = vld [vmem:[%s5785_s5 + $0x18] sm:$0xff] }
0x2aa4   :  { %v4013_v57 = vpop.eup %4012 }
0x2aa5   :  { %v2911_v40 = vadd.f32 1.0, %v4013_v57  ;;  %v5510_v57 = vld [vmem:[%s5785_s5 + $0x28] sm:$0xff] }
0x2aa7   :  { %4014 = vrcp.f32 %v2911_v40  ;;  %v2924_v62 = vand.u32 2147483648, %v2911_v40  ;;  %v2922_v60 = vand.u32 2147483647, %v2911_v40  ;;  %vm2918_vm11 = vweird.f32 %v2911_v40 }
0x2aa9   :  { %v2925_v24 = vor.u32 1.1754944e-38, %v2924_v62  ;;  %vm2923_vm13 = vcmp.eq.f32.partialorder %v2922_v60, 8.507059e+37 }
0x2aad   :  { %v4015_v33 = vpop.eup %4014 }
0x2aae   :  { %v2914_v28 = vmul.f32 %v4015_v33, %v2911_v40  ;;  %vm2919_vm1 = vweird.f32 %v4015_v33  ;;  %v2162_v40 = vmul.f32 %v5252_v6, %v5252_v6 }
0x2aaf   :  { %vm2920_vm12 = vmor %vm2918_vm11, %vm2919_vm1 }
0x2ab0   :  { %v2915_v34 = vsub.f32 1.0, %v2914_v28 }
0x2ab1   :  { %v2944_v55 = vpop.permute.xlu0 %2943 }
0x2ab2   :  { %v2916_v41 = vmul.f32 %v4015_v33, %v2915_v34 }
0x2ab4   :  { %v2917_v54 = vadd.f32 %v4015_v33, %v2916_v41 }
0x2ab6   :  { %v2921_v39 = vsel %vm2920_vm12, %v4015_v33, %v2917_v54  ;;  %v2962_v33 = vadd.f32 %v5343_v61, %v5179_v50 }
0x2ab7   :  { %v2926_v47 = vsel %vm2923_vm13, %v2925_v24, %v2921_v39 }
0x2ab8   :  { %v2946_v22 = vmul.f32 %v2944_v55, %v2926_v47 }
0x2aba   :  { %2948 = vrot.lane.b32.xlu1 %v2946_v22, %s4085_s13 }
0x2b2c   :  { %v2949_v42 = vpop.permute.xlu1 %2948 }
0x2b2d   :  { %v2951_v35 = vadd.f32 %v2949_v42, %v2875_v59 }
0x2b2f   :  { %4016 = vtanh.f32 %v2951_v35 }
0x2b30   :  { %4018 = vpow2.f32 %v3622_v27  ;;  %v5520_v27 = vadd.f32 %v5476_v51, %v3114_v58 }
0x2b35   :  { %v4017_v37 = vpop.eup %4016 }
0x2b36   :  { %2955 = vrot.lane.b32.xlu2 %v4017_v37, %s4083_s8  ;;  %v4019_v10 = vpop.eup %4018 }
0x2b37   :  { %v2912_v23 = vadd.f32 1.0, %v4019_v10  ;;  %v3234_v10 = vsel %vm3230_vm5, %v5520_v27, -inf }
0x2b39   :  { %4020 = vrcp.f32 %v2912_v23  ;;  %v2939_v44 = vand.u32 2147483648, %v2912_v23  ;;  %vm2933_vm15 = vweird.f32 %v2912_v23  ;;  %v2937_v25 = vand.u32 2147483647, %v2912_v23 }
0x2b3b   :  { %v2940_v46 = vor.u32 1.1754944e-38, %v2939_v44  ;;  %vm2938_vm4 = vcmp.eq.f32.partialorder %v2937_v25, 8.507059e+37  ;;  %v2963_v44 = vadd.f32 %v5343_v61, %v5313_v38 }
0x2b3f   :  { %v4021_v21 = vpop.eup %4020 }
0x2b40   :  { %v2929_v43 = vmul.f32 %v4021_v21, %v2912_v23  ;;  %vm2934_vm14 = vweird.f32 %v4021_v21  ;;  %v5525_v23 = vadd.f32 %v5476_v51, %v3120_v48 }
0x2b41   :  { %vm2935_vm0 = vmor %vm2933_vm15, %vm2934_vm14 }
0x2b42   :  { %v2930_v14 = vsub.f32 1.0, %v2929_v43  ;;  %v5530_v43 = vadd.f32 %v5476_v51, %v3126_v18 }
0x2b44   :  { %v2931_v7 = vmul.f32 %v4021_v21, %v2930_v14  ;;  %v3246_v14 = vsel %vm3230_vm5, %v5530_v43, -inf }
0x2b46   :  { %v2932_v32 = vadd.f32 %v4021_v21, %v2931_v7  ;;  %v5537_v7 = vld [vmem:[%s5785_s5 + $0x10] sm:$0xff] }
0x2b48   :  { %v2936_v9 = vsel %vm2935_vm0, %v4021_v21, %v2932_v32  ;;  %v3240_v21 = vsel %vm3230_vm5, %v5525_v23, -inf  ;;  %v5543_v32 = vld [vmem:[%s5785_s5 + $0x20] sm:$0xff] }
0x2b49   :  { %v2941_v52 = vsel %vm2938_vm4, %v2940_v46, %v2936_v9  ;;  %v5551_v46 = vld [vmem:[%s5785_s5 + $0x30] sm:$0xff] }
0x2b4a   :  { %v2953_v4 = vsub.f32 1.0, %v2941_v52  ;;  %v2959_v2 = vmul.f32 %v2941_v52, %v2872_v13  ;;  %v5483_v13 = vpop.f32.mrf.mxu2 }
0x2b4b   :  { %v5563_v61 = vadd.f32 %v5476_v51, %v5483_v13  ;;  %v5587_v13 = vld [vmem:[%s5785_s5 + $0x38] sm:$0xff] }
0x2b90   :  { %v2956_v11 = vpop.permute.xlu2 %2955 }
0x2b91   :  { %v2958_v3 = vmul.f32 %v2956_v11, %v2953_v4  ;;  %v5557_v4 = vadd.f32 %v5476_v51, %v5471_v19 }
0x2b93   :  { %v5459_v16 = vadd.f32 %v2959_v2, %v2958_v3  ;;  %v3237_v38 = vsel %vm3230_vm5, %v5557_v4, -inf  ;;  %v3249_v2 = vsel %vm3230_vm5, %v5563_v61, -inf }
0x2b95   :  { %2961 = vst.msk [vmem:[#allocation2 + $0x38] sm:$0xff] %vm917_vm3, %v5459_v16  ;;  %3623 = vmatmul.msk.f32.vlgmr.msra.gmra.mxu1 %vm917_vm3, %v5459_v16 }
0x2b9c   :  { %v3057_v15 = vld [vmem:[#allocation2 + $0x38] sm:$0xff] }
0x2b9d   :  { %3633 = vmatmul.msk.f32.gmra.mxu2 %vm917_vm3, %v3057_v15 }
0x2c12   :  { %v2984_v63 = vpop.f32.mrf.mxu1 }
0x2c13   :  { %v2985_v12 = vadd.f32 %v4081_v31, %v2984_v63 }
0x2c15   :  { %3031 = vrot.lane.b32.xlu1 %v2985_v12, %s4086_s3  ;;  %2988 = vrot.lane.b32.xlu0 %v2985_v12, %s4083_s8 }
0x2c20   :  { %v3132_v26 = vpop.f32.mrf.mxu2 }
0x2c21   :  { %v5491_v17 = vadd.f32 %v5476_v51, %v3132_v26 }
0x2c23   :  { %v3252_v36 = vsel %vm3230_vm5, %v5491_v17, -inf }
0x2c3f   :  { %3232 = vmax.xlane.f32.xlu1 %v3231_v1 }
0x2c47   :  { %3244 = vmax.xlane.f32.xlu1 %v3243_v8 }
0x2c4f   :  { %3253 = vmax.xlane.f32.xlu1 %v3252_v36 }
0x2c68   :  { %3153 = vperm.xlu1 %3788, %v5498_v53  }
0x2c70   :  { %3159 = vperm.xlu1 %3788, %v5504_v49  }
0x2c78   :  { %3165 = vperm.xlu1 %3788, %v5510_v57  }
0x2c80   :  { %2164 = vrot.lane.b32.xlu1 %v2162_v40, %s4088_s2 }
0x2c87   :  { %v2989_v28 = vpop.permute.xlu0 %2988  ;;  %v3032_v50 = vpop.permute.xlu1 %3031 }
0x2c88   :  { %v2991_v34 = vadd.f32 %v2989_v28, %v2962_v33  ;;  %v2992_v31 = vadd.f32 %v2989_v28, %v2963_v44 }
0x2c8a   :  { %v3624_v62 = vmul.f32 -1.442695, %v2991_v34  ;;  %v3625_v19 = vmul.f32 -1.442695, %v2992_v31 }
0x2c8c   :  { %4022 = vpow2.f32 %v3624_v62 }
0x2c92   :  { %v4023_v41 = vpop.eup %4022 }
0x2c93   :  { %v2999_v60 = vadd.f32 1.0, %v4023_v41 }
0x2c95   :  { %4024 = vrcp.f32 %v2999_v60  ;;  %v3012_v55 = vand.u32 2147483648, %v2999_v60  ;;  %v3010_v22 = vand.u32 2147483647, %v2999_v60  ;;  %vm3006_vm7 = vweird.f32 %v2999_v60 }
0x2c97   :  { %v3013_v42 = vor.u32 1.1754944e-38, %v3012_v55  ;;  %vm3011_vm9 = vcmp.eq.f32.partialorder %v3010_v22, 8.507059e+37 }
0x2c9b   :  { %v4025_v54 = vpop.eup %4024 }
0x2c9c   :  { %v3002_v24 = vmul.f32 %v4025_v54, %v2999_v60  ;;  %vm3007_vm6 = vweird.f32 %v4025_v54 }
0x2c9d   :  { %vm3008_vm8 = vmor %vm3006_vm7, %vm3007_vm6 }
0x2c9e   :  { %v3003_v39 = vsub.f32 1.0, %v3002_v24 }
0x2ca0   :  { %v3004_v47 = vmul.f32 %v4025_v54, %v3003_v39 }
0x2ca2   :  { %v3005_v59 = vadd.f32 %v4025_v54, %v3004_v47 }
0x2ca4   :  { %v3009_v35 = vsel %vm3008_vm8, %v4025_v54, %v3005_v59  ;;  %vm3203_vm8 = vcmp.ne.s32.totalorder %v5580_v45, 0 }
0x2ca5   :  { %v3014_v37 = vsel %vm3011_vm9, %v3013_v42, %v3009_v35  ;;  %vm3204_vm9 = vcmp.ne.s32.totalorder %v5498_v53, 0 }
0x2ca6   :  { %v3034_v56 = vmul.f32 %v3032_v50, %v3014_v37 }
0x2ca8   :  { %3036 = vrot.lane.b32.xlu2 %v3034_v56, %s4085_s13 }
0x2cb2   :  { %v5565_v11 = vpop.xlane.xlu1 %3232 }
0x2cb3   :  { %v3258_v34 = vsub.f32 %v5479_v20, %v5565_v11 }
0x2cb5   :  { %v3267_v54 = vmul.f32 1.442695, %v3258_v34 }
0x2cba   :  { %v5569_v3 = vpop.xlane.xlu1 %3244 }
0x2cbb   :  { %v3262_v58 = vsub.f32 %v5486_v29, %v5569_v3 }
0x2cbd   :  { %v3275_v12 = vmul.f32 1.442695, %v3262_v58 }
0x2cd1   :  { %3235 = vmax.xlane.f32.xlu2 %v3234_v10 }
0x2cd9   :  { %3241 = vmax.xlane.f32.xlu2 %v3240_v21 }
0x2ce1   :  { %3247 = vmax.xlane.f32.xlu2 %v3246_v14 }
0x2cf9   :  { %3156 = vperm.xlu2 %3789, %v5537_v7  }
0x2d01   :  { %3162 = vperm.xlu2 %3789, %v5543_v32  }
0x2d02   :  { %v3037_v25 = vpop.permute.xlu2 %3036 }
0x2d03   :  { %v3039_v9 = vadd.f32 %v3037_v25, %v2963_v44 }
0x2d05   :  { %4026 = vtanh.f32 %v3039_v9 }
0x2d09   :  { %3168 = vperm.xlu2 %3789, %v5551_v46  }
0x2d0b   :  { %v4027_v52 = vpop.eup %4026 }
0x2d0c   :  { %3043 = vrot.lane.b32.xlu0 %v4027_v52, %s4083_s8 }
0x2d36   :  { %3238 = vmax.xlane.f32.xlu0 %v3237_v38 }
0x2d3e   :  { %3250 = vmax.xlane.f32.xlu0 %v3249_v2 }
0x2d44   :  { %v5571_v15 = vpop.xlane.xlu2 %3235 }
0x2d45   :  { %v3259_v30 = vsub.f32 %v5520_v27, %v5571_v15 }
0x2d47   :  { %v3269_v63 = vmul.f32 1.442695, %v3259_v30 }
0x2d49   :  { %4028 = vpow2.f32 %v3269_v63 }
0x2d4a   :  { %4030 = vpow2.f32 %v3275_v12 }
0x2d4b   :  { %4032 = vpow2.f32 %v3625_v19 }
0x2d4c   :  { %v5593_v24 = vpop.xlane.xlu2 %3241 }
0x2d4d   :  { %v3261_v47 = vsub.f32 %v5525_v23, %v5593_v24 }
0x2d4f   :  { %v4029_v48 = vpop.eup %4028  ;;  %v3273_v42 = vmul.f32 1.442695, %v3261_v47 }
0x2d50   :  { %v3288_v5 = vsel %vm3230_vm5, %v4029_v48, 0.0  ;;  %v4031_v18 = vpop.eup %4030  ;;  %v3147_v48 = vlaneseq }
0x2d51   :  { %3289 = vadd.xlane.f32.xlu1 %v3288_v5  ;;  %v4033_v1 = vpop.eup %4032  ;;  %v3297_v8 = vsel %vm3230_vm5, %v4031_v18, 0.0 }
0x2d52   :  { %3150 = vperm.xlu0 %3787, %v5580_v45   ;;  %v3000_v26 = vadd.f32 1.0, %v4033_v1 }
0x2d54   :  { %4034 = vrcp.f32 %v3000_v26  ;;  %v3027_v41 = vand.u32 2147483648, %v3000_v26  ;;  %vm3021_vm1 = vweird.f32 %v3000_v26  ;;  %v3025_v60 = vand.u32 2147483647, %v3000_v26  ;;  %v5604_v52 = vpop.xlane.xlu2 %3247 }
0x2d55   :  { %4036 = vpow2.f32 %v3267_v54 }
0x2d56   :  { %v3028_v55 = vor.u32 1.1754944e-38, %v3027_v41  ;;  %vm3026_vm12 = vcmp.eq.f32.partialorder %v3025_v60, 8.507059e+37  ;;  %4038 = vpow2.f32 %v3273_v42 }
0x2d59   :  { %3298 = vadd.xlane.f32.xlu1 %v3297_v8  ;;  %v5617_v8 = vand.u32 127, %v3147_v48 }
0x2d5a   :  { %3171 = vperm.xlu0 %3787, %v5587_v13   ;;  %v4035_v36 = vpop.eup %4034 }
0x2d5b   :  { %v3017_v40 = vmul.f32 %v4035_v36, %v3000_v26  ;;  %vm3022_vm10 = vweird.f32 %v4035_v36  ;;  %v4037_v56 = vpop.eup %4036 }
0x2d5c   :  { %vm3023_vm11 = vmor %vm3021_vm1, %vm3022_vm10  ;;  %v3285_v21 = vsel %vm3230_vm5, %v4037_v56, 0.0  ;;  %v4039_v14 = vpop.eup %4038  ;;  %v3157_v58 = vpop.permute.xlu2 %3156  ;;  %vm3206_vm10 = vcmp.ne.s32.totalorder %v5504_v49, 0  ;;  %vm2178_vm1 = vcmask 7168  }
0x2d5d   :  { %v3018_v33 = vsub.f32 1.0, %v3017_v40  ;;  %v3294_v25 = vsel %vm3230_vm5, %v4039_v14, 0.0  ;;  %vm3178_vm14 = vcmp.eq.s32.totalorder %v5617_v8, %v3157_v58 }
0x2d5e   :  { %v3637_v54 = vsel %vm3178_vm14, 1.0, %v4087_v0 }
0x2d5f   :  { %v3019_v28 = vmul.f32 %v4035_v36, %v3018_v33 }
0x2d61   :  { %v3020_v62 = vadd.f32 %v4035_v36, %v3019_v28 }
0x2d63   :  { %v3024_v39 = vsel %vm3023_vm11, %v4035_v36, %v3020_v62  ;;  %vm3207_vm11 = vcmp.ne.s32.totalorder %v5543_v32, 0 }
0x2d64   :  { %v3029_v22 = vsel %vm3026_vm12, %v3028_v55, %v3024_v39  ;;  %v3163_v18 = vpop.permute.xlu2 %3162  ;;  %v3341_v39 = vmul.f32 %v3637_v54, %v5557_v4  ;;  %vm3209_vm12 = vcmp.ne.s32.totalorder %v5551_v46, 0 }
0x2d65   :  { %v3041_v59 = vsub.f32 1.0, %v3029_v22  ;;  %v3047_v50 = vmul.f32 %v3029_v22, %v5459_v16  ;;  %v5606_v16 = vpop.xlane.xlu1 %3253  ;;  %vm3180_vm0 = vcmp.eq.s32.totalorder %v5617_v8, %v3163_v18  ;;  %v3650_v32 = vsel %vm3209_vm12, 1.0, %v4087_v0 }
0x2d66   :  { %v3265_v30 = vsub.f32 %v5491_v17, %v5606_v16  ;;  %v3639_v22 = vsel %vm3180_vm0, 1.0, %v4087_v0 }
0x2d68   :  { %v3281_v12 = vmul.f32 1.442695, %v3265_v30 }
0x2d6c   :  { %v3169_v62 = vpop.permute.xlu2 %3168 }
0x2d6d   :  { %v5614_v31 = vpop.permute.xlu1 %3153  ;;  %vm3182_vm15 = vcmp.eq.s32.totalorder %v5617_v8, %v3169_v62  ;;  %v3263_v62 = vsub.f32 %v5530_v43, %v5604_v52 }
0x2d6e   :  { %v3641_v47 = vsel %vm3182_vm15, 1.0, %v4087_v0  ;;  %vm3177_vm6 = vcmp.eq.s32.totalorder %v5617_v8, %v5614_v31 }
0x2d75   :  { %v3160_v1 = vpop.permute.xlu1 %3159 }
0x2d7e   :  { %v3044_v35 = vpop.permute.xlu0 %3043 }
0x2d7f   :  { %v3046_v37 = vmul.f32 %v3044_v35, %v3041_v59  ;;  %v5637_v59 = vpop.permute.xlu1 %3165  ;;  %v2160_v35 = vmul.f32 1.442695, %v5252_v6 }
0x2d80   :  { %vm3181_vm7 = vcmp.eq.s32.totalorder %v5617_v8, %v5637_v59 }
0x2d81   :  { %v3048_v10 = vadd.f32 %v3047_v50, %v3046_v37  ;;  %v3343_v50 = vmul.f32 %v3639_v22, %v5486_v29 }
0x2d83   :  { %3049 = vst.msk [vmem:[#allocation2 + $0x40] sm:$0xff] %vm917_vm3, %v3048_v10 }
0x2d84   :  { %3286 = vadd.xlane.f32.xlu0 %v3285_v21 }
0x2d87   :  { %v2165_v10 = vpop.permute.xlu1 %2164 }
0x2d8a   :  { %v3058_v44 = vld [vmem:[#allocation2 + $0x40] sm:$0xff] }
0x2d8b   :  { %3634 = vmatmul.msk.f32.gmra.mxu2 %vm917_vm3, %v3058_v44  ;;  %vm3179_vm3 = vcmp.eq.s32.totalorder %v5617_v8, %v3160_v1 }
0x2d8c   :  { %3295 = vadd.xlane.f32.xlu0 %v3294_v25  ;;  %v3638_v33 = vsel %vm3179_vm3, 1.0, %v4087_v0  ;;  %vm3210_vm3 = vcmp.ne.s32.totalorder %v5587_v13, 0 }
0x2d8d   :  { %v3342_v41 = vmul.f32 %v3638_v33, %v5525_v23  ;;  %v3354_v23 = vsel %vm3230_vm5, %v3341_v39, 0.0 }
0x2d8f   :  { %v3357_v55 = vsel %vm3230_vm5, %v3342_v41, 0.0 }
0x2da9   :  { %v5602_v9 = vpop.xlane.xlu0 %3238 }
0x2db1   :  { %v5608_v38 = vpop.xlane.xlu0 %3250 }
0x2db2   :  { %v3264_v2 = vsub.f32 %v5563_v61, %v5608_v38 }
0x2db4   :  { %v3279_v63 = vmul.f32 1.442695, %v3264_v2 }
0x2db6   :  { %4040 = vpow2.f32 %v3279_v63 }
0x2db7   :  { %4042 = vpow2.f32 %v3281_v12 }
0x2db8   :  { %4044 = vpow2.f32 %v2160_v35 }
0x2dbc   :  { %v4041_v19 = vpop.eup %4040 }
0x2dbd   :  { %v3303_v5 = vsel %vm3230_vm5, %v4041_v19, 0.0  ;;  %v4043_v26 = vpop.eup %4042 }
0x2dbe   :  { %3304 = vadd.xlane.f32.xlu0 %v3303_v5  ;;  %v3306_v40 = vsel %vm3230_vm5, %v4043_v26, 0.0  ;;  %v4045_v14 = vpop.eup %4044  ;;  %v3260_v26 = vsub.f32 %v5557_v4, %v5602_v9  ;;  %v3277_v4 = vmul.f32 1.442695, %v3263_v62 }
0x2dbf   :  { %v2167_v44 = vadd.f32 %v4045_v14, %v2165_v10 }
0x2dc1   :  { %v3596_v29 = vadd.f32 -1.0, %v2167_v44 }
0x2dc3   :  { %v2169_v2 = vsub.f32 %v3596_v29, %v5252_v6 }
0x2dc4   :  { %v3151_v36 = vpop.permute.xlu0 %3150  ;;  %v3290_v59 = vpop.xlane.xlu1 %3289 }
0x2dc5   :  { %vm3176_vm13 = vcmp.eq.s32.totalorder %v5617_v8, %v3151_v36 }
0x2dc6   :  { %v3635_v28 = vsel %vm3176_vm13, 1.0, %v4087_v0  ;;  %3307 = vadd.xlane.f32.xlu0 %v3306_v40  ;;  %vm3208_vm13 = vcmp.ne.s32.totalorder %v5510_v57, 0 }
0x2dc7   :  { %v3339_v34 = vmul.f32 %v3635_v28, %v5479_v20  ;;  %v3345_v20 = vmul.f32 %v3641_v47, %v5563_v61  ;;  %v3360_v61 = vsel %vm3230_vm5, %v3343_v50, 0.0  ;;  %v3271_v28 = vmul.f32 1.442695, %v3260_v26 }
0x2dc9   :  { %v3348_v60 = vsel %vm3230_vm5, %v3339_v34, 0.0  ;;  %v3366_v37 = vsel %vm3230_vm5, %v3345_v20, 0.0 }
0x2dca   :  { %3349 = vadd.xlane.f32.xlu1 %v3348_v60 }
0x2dcc   :  { %v3172_v42 = vpop.permute.xlu0 %3171 }
0x2dcd   :  { %vm3183_vm4 = vcmp.eq.s32.totalorder %v5617_v8, %v3172_v42 }
0x2dce   :  { %3358 = vadd.xlane.f32.xlu0 %v3357_v55  ;;  %v3642_v56 = vsel %vm3183_vm4, 1.0, %v4087_v0  ;;  %v3636_v55 = vsel %vm3177_vm6, 1.0, %v4087_v0 }
0x2dcf   :  { %v3346_v21 = vmul.f32 %v3642_v56, %v5491_v17  ;;  %v5654_v17 = vld [vmem:[%s5785_s5 + $0x40] sm:$0xff]  ;;  %s4090_s5 = smov 1  }
0x2dd0   :  { %vm3211_vm14 = vcmp.ne.s32.totalorder %v5654_v17, 0 }
0x2dd1   :  { %v3369_v25 = vsel %vm3230_vm5, %v3346_v21, 0.0  ;;  %v3652_v13 = vsel %vm3211_vm14, 1.0, %v4087_v0 }
0x2dd2   :  { %3355 = vadd.xlane.f32.xlu1 %v3354_v23  ;;  %v3340_v23 = vmul.f32 %v3636_v55, %v5520_v27 }
0x2dd4   :  { %v3351_v22 = vsel %vm3230_vm5, %v3340_v23, 0.0 }
0x2dd6   :  { %3367 = vadd.xlane.f32.xlu0 %v3366_v37 }
0x2dda   :  { %3361 = vadd.xlane.f32.xlu1 %v3360_v61  ;;  %v3640_v61 = vsel %vm3181_vm7, 1.0, %v4087_v0 }
0x2ddb   :  { %v3344_v56 = vmul.f32 %v3640_v61, %v5530_v43 }
0x2ddd   :  { %v3363_v10 = vsel %vm3230_vm5, %v3344_v56, 0.0  ;;  %v3427_v56 = vsel %vm2178_vm1, %v3650_v32, 0.0 }
0x2de2   :  { %3370 = vadd.xlane.f32.xlu1 %v3369_v25  ;;  %v5697_v25 = vpop.xlane.xlu1 %3298 }
0x2dea   :  { %2171 = vrot.lane.b32.xlu0 %v2169_v2, %s5828_s14 }
0x2df7   :  { %v3287_v12 = vpop.xlane.xlu0 %3286 }
0x2dff   :  { %v3296_v19 = vpop.xlane.xlu0 %3295 }
0x2e00   :  { %4046 = vlog2.f32 %v3296_v19 }
0x2e06   :  { %v4047_v6 = vpop.eup %4046 }
0x2e07   :  { %v3319_v18 = vmul.f32 0.6931472, %v4047_v6 }
0x2e0e   :  { %v3135_v30 = vpop.f32.mrf.mxu2 }
0x2e0f   :  { %v3136_v58 = vadd.f32 %v5476_v51, %v3135_v30  ;;  %v5660_v51 = vadd.f32 %v3319_v18, %v5593_v24 }
0x2e11   :  { %v3255_v63 = vsel %vm3230_vm5, %v3136_v58, -inf }
0x2e12   :  { %3256 = vmax.xlane.f32.xlu2 %v3255_v63 }
0x2e2a   :  { %3174 = vperm.xlu2 %3789, %v5654_v17  }
0x2e31   :  { %v3305_v48 = vpop.xlane.xlu0 %3304 }
0x2e32   :  { %4048 = vlog2.f32 %v3305_v48 }
0x2e33   :  { %4050 = vpow2.f32 %v3271_v28 }
0x2e34   :  { %4052 = vpow2.f32 %v3277_v4 }
0x2e38   :  { %v4049_v1 = vpop.eup %4048 }
0x2e39   :  { %v5657_v5 = vpop.xlane.xlu0 %3307  ;;  %v3325_v33 = vmul.f32 0.6931472, %v4049_v1  ;;  %v4051_v60 = vpop.eup %4050  ;;  %v3644_v1 = vsel %vm3203_vm8, 1.0, %v4087_v0 }
0x2e3a   :  { %v3291_v54 = vsel %vm3230_vm5, %v4051_v60, 0.0  ;;  %v4053_v39 = vpop.eup %4052  ;;  %v3647_v60 = vsel %vm3206_vm10, 1.0, %v4087_v0 }
0x2e3b   :  { %v5669_v34 = vadd.f32 %v3325_v33, %v5608_v38  ;;  %v3300_v38 = vsel %vm3230_vm5, %v4053_v39, 0.0 }
0x2e3d   :  { %v3350_v43 = vpop.xlane.xlu1 %3349 }
0x2e41   :  { %v5664_v36 = vpop.xlane.xlu0 %3358 }
0x2e42   :  { %v3378_v40 = vsub.f32 %v5660_v51, %v5664_v36 }
0x2e44   :  { %v3387_v55 = vmul.f32 %v3647_v60, %v3378_v40  ;;  %v3649_v40 = vsel %vm3208_vm13, 1.0, %v4087_v0 }
0x2e45   :  { %v3356_v26 = vpop.xlane.xlu1 %3355 }
0x2e49   :  { %v5673_v24 = vpop.xlane.xlu0 %3367 }
0x2e4a   :  { %v3381_v41 = vsub.f32 %v5669_v34, %v5673_v24 }
0x2e53   :  { %3292 = vadd.xlane.f32.xlu2 %v3291_v54 }
0x2e5b   :  { %3301 = vadd.xlane.f32.xlu2 %v3300_v38 }
0x2e5c   :  { %v2172_v47 = vpop.permute.xlu0 %2171 }
0x2e5d   :  { %v2174_v20 = vsel %vm532_vm2, %v2172_v47, 0.0 }
0x2e5e   :  { %2175 = vadd.xlane.f32.xlu1 %v2174_v20 }
0x2e63   :  { %3352 = vadd.xlane.f32.xlu2 %v3351_v22 }
0x2e85   :  { %v5685_v42 = vpop.xlane.xlu2 %3256 }
0x2e86   :  { %v3266_v35 = vsub.f32 %v3136_v58, %v5685_v42 }
0x2e88   :  { %v3283_v50 = vmul.f32 1.442695, %v3266_v35 }
0x2e8a   :  { %4054 = vpow2.f32 %v3283_v50  ;;  %v3421_v50 = vsel %vm2178_vm1, %v3647_v60, 0.0 }
0x2e8b   :  { %4056 = vlog2.f32 %v3287_v12 }
0x2e8d   :  { %v3175_v27 = vpop.permute.xlu2 %3174 }
0x2e8e   :  { %vm3184_vm2 = vcmp.eq.s32.totalorder %v5617_v8, %v3175_v27 }
0x2e8f   :  { %v3643_v21 = vsel %vm3184_vm2, 1.0, %v4087_v0  ;;  %vm3460_vm2 = vcmask 8192  }
0x2e90   :  { %v4055_v31 = vpop.eup %4054  ;;  %v3347_v14 = vmul.f32 %v3643_v21, %v3136_v58  ;;  %v3651_v21 = vsel %vm3210_vm3, 1.0, %v4087_v0 }
0x2e91   :  { %v3309_v37 = vsel %vm3230_vm5, %v4055_v31, 0.0  ;;  %v4057_v2 = vpop.eup %4056  ;;  %v3398_v31 = vsel %vm2178_vm1, %v3387_v55, 0.0  ;;  %v3429_v46 = vsel %vm2178_vm1, %v3651_v21, 0.0 }
0x2e92   :  { %3310 = vadd.xlane.f32.xlu2 %v3309_v37  ;;  %v3372_v44 = vsel %vm3230_vm5, %v3347_v14, 0.0  ;;  %v3313_v8 = vmul.f32 0.6931472, %v4057_v2  ;;  %vm3205_vm5 = vcmp.ne.s32.totalorder %v5537_v7, 0  ;;  %v3648_v37 = vsel %vm3207_vm11, 1.0, %v4087_v0 }
0x2e93   :  { %v3646_v45 = vsel %vm3205_vm5, 1.0, %v4087_v0  ;;  %v3423_v51 = vsel %vm2178_vm1, %v3648_v37, 0.0 }
0x2e94   :  { %v3330_v58 = vadd.f32 %v3313_v8, %v5565_v11  ;;  %v3645_v11 = vsel %vm3204_vm9, 1.0, %v4087_v0  ;;  %v3419_v38 = vsel %vm2178_vm1, %v3646_v45, 0.0 }
0x2e95   :  { %v3417_v4 = vsel %vm2178_vm1, %v3645_v11, 0.0 }
0x2e96   :  { %v3375_v12 = vsub.f32 %v3330_v58, %v3350_v43 }
0x2e98   :  { %v3384_v7 = vmul.f32 %v3644_v1, %v3375_v12 }
0x2e9a   :  { %3364 = vadd.xlane.f32.xlu2 %v3363_v10  ;;  %v3425_v10 = vsel %vm2178_vm1, %v3649_v40, 0.0 }
0x2ea2   :  { %3373 = vadd.xlane.f32.xlu2 %v3372_v44 }
0x2ec6   :  { %v3293_v29 = vpop.xlane.xlu2 %3292 }
0x2ec7   :  { %4058 = vlog2.f32 %v3293_v29 }
0x2ec8   :  { %4060 = vlog2.f32 %v3290_v59  ;;  %v3431_v59 = vsel %vm2178_vm1, %v3652_v13, 0.0 }
0x2ec9   :  { %4062 = vlog2.f32 %v5697_v25 }
0x2eca   :  { %4064 = vlog2.f32 %v5657_v5 }
0x2ecd   :  { %v4059_v30 = vpop.eup %4058 }
0x2ece   :  { %v4061_v63 = vpop.eup %4060  ;;  %v3317_v19 = vmul.f32 0.6931472, %v4059_v30  ;;  %v5699_v48 = vpop.xlane.xlu2 %3301 }
0x2ecf   :  { %v3315_v6 = vmul.f32 0.6931472, %v4061_v63  ;;  %4066 = vlog2.f32 %v5699_v48 }
0x2ed0   :  { %v3332_v18 = vadd.f32 %v3317_v19, %v5602_v9  ;;  %v3416_v9 = vsel %vm2178_vm1, %v3644_v1, 0.0  ;;  %v4063_v19 = vpop.eup %4062 }
0x2ed1   :  { %v3331_v28 = vadd.f32 %v3315_v6, %v5571_v15  ;;  %v3418_v49 = vadd.f32 %v3417_v4, %v3416_v9  ;;  %v3393_v15 = vsel %vm2178_vm1, %v3384_v7, 0.0  ;;  %v3362_v6 = vpop.xlane.xlu1 %3361  ;;  %v3321_v17 = vmul.f32 0.6931472, %v4063_v19  ;;  %v4065_v0 = vpop.eup %4064 }
0x2ed2   :  { %v3377_v33 = vsub.f32 %v3332_v18, %v3356_v26 }
0x2ed3   :  { %v3420_v22 = vadd.f32 %v3419_v38, %v3418_v49  ;;  %v3334_v1 = vadd.f32 %v3321_v17, %v5569_v3  ;;  %v3390_v3 = vmul.f32 %v3650_v32, %v3381_v41 }
0x2ed4   :  { %v3386_v54 = vmul.f32 %v3646_v45, %v3377_v33  ;;  %v3327_v33 = vmul.f32 0.6931472, %v4065_v0 }
0x2ed5   :  { %v3422_v36 = vadd.f32 %v3421_v50, %v3420_v22  ;;  %v4067_v18 = vpop.eup %4066 }
0x2ed6   :  { %v3353_v62 = vpop.xlane.xlu2 %3352  ;;  %v3396_v23 = vsel %vm2178_vm1, %v3386_v54, 0.0  ;;  %v3323_v25 = vmul.f32 0.6931472, %v4067_v18 }
0x2ed7   :  { %v3376_v53 = vsub.f32 %v3331_v28, %v3353_v62  ;;  %v3424_v27 = vadd.f32 %v3423_v51, %v3422_v36  ;;  %v3379_v28 = vsub.f32 %v3334_v1, %v3362_v6 }
0x2ed8   :  { %v3335_v48 = vadd.f32 %v3323_v25, %v5604_v52  ;;  %v3404_v52 = vsel %vm2178_vm1, %v3390_v3, 0.0 }
0x2ed9   :  { %v3385_v39 = vmul.f32 %v3645_v11, %v3376_v53  ;;  %v3426_v14 = vadd.f32 %v3425_v10, %v3424_v27  ;;  %v3371_v45 = vpop.xlane.xlu1 %3370  ;;  %v3388_v5 = vmul.f32 %v3648_v37, %v3379_v28  ;;  %v3337_v11 = vadd.f32 %v3327_v33, %v5606_v16 }
0x2edb   :  { %v3394_v47 = vsel %vm2178_vm1, %v3385_v39, 0.0  ;;  %v3428_v44 = vadd.f32 %v3427_v56, %v3426_v14  ;;  %v3382_v7 = vsub.f32 %v3337_v11, %v3371_v45  ;;  %v3400_v60 = vsel %vm2178_vm1, %v3388_v5, 0.0 }
0x2edc   :  { %v3395_v20 = vadd.f32 %v3394_v47, %v3393_v15 }
0x2edd   :  { %v3430_v57 = vadd.f32 %v3429_v46, %v3428_v44  ;;  %v3391_v38 = vmul.f32 %v3651_v21, %v3382_v7 }
0x2ede   :  { %v3397_v35 = vadd.f32 %v3396_v23, %v3395_v20 }
0x2edf   :  { %v3432_v29 = vadd.f32 %v3431_v59, %v3430_v57  ;;  %v3406_v22 = vsel %vm2178_vm1, %v3391_v38, 0.0 }
0x2ee0   :  { %v3399_v61 = vadd.f32 %v3398_v31, %v3397_v35 }
0x2ee1   :  { %v3433_v2 = vrot.slane %v3432_v29, 4  ;;  %v2176_v57 = vpop.xlane.xlu1 %2175 }
0x2ee2   :  { %v3401_v49 = vadd.f32 %v3400_v60, %v3399_v61 }
0x2ee3   :  { %v3434_v43 = vadd.f32 %v3433_v2, %v3432_v29 }
0x2ee5   :  { %v3435_v30 = vrot.slane %v3434_v43, 2 }
0x2ee7   :  { %v3436_v8 = vadd.f32 %v3435_v30, %v3434_v43  ;;  %v4091_v43 = vmov 2.0  }
0x2ee9   :  { %v3437_v63 = vrot.slane %v3436_v8, 1 }
0x2eeb   :  { %v3438_v58 = vadd.f32 %v3437_v63, %v3436_v8 }
0x2eed   :  { %v3439_v26 = vmax.f32 %v3438_v58, 1.0 }
0x2eef   :  { %vm3445_vm15 = vweird.f32 %v3439_v26  ;;  %v3451_v51 = vand.u32 2147483648, %v3439_v26 }
0x2ef1   :  { %v3452_v27 = vor.u32 1.1754944e-38, %v3451_v51 }
0x2f05   :  { %v3311_v12 = vpop.xlane.xlu2 %3310 }
0x2f06   :  { %4068 = vlog2.f32 %v3311_v12 }
0x2f07   :  { %4070 = vrcp.f32 %v3439_v26 }
0x2f08   :  { %4072 = vrcp.f32 %v4091_v43 }
0x2f0c   :  { %v4069_v62 = vpop.eup %4068 }
0x2f0d   :  { %v3365_v9 = vpop.xlane.xlu2 %3364  ;;  %v4071_v53 = vpop.eup %4070  ;;  %v3329_v54 = vmul.f32 0.6931472, %v4069_v62 }
0x2f0e   :  { %v3380_v4 = vsub.f32 %v3335_v48, %v3365_v9  ;;  %v3441_v55 = vmul.f32 %v4071_v53, %v3439_v26  ;;  %vm3446_vm0 = vweird.f32 %v4071_v53  ;;  %v4073_v8 = vpop.eup %4072 }
0x2f0f   :  { %v3338_v47 = vadd.f32 %v3329_v54, %v5685_v42  ;;  %vm3447_vm4 = vmor %vm3445_vm15, %vm3446_vm0  ;;  %v2188_v19 = vmul.f32 2.0, %v4073_v8  ;;  %vm2192_vm7 = vweird.f32 %v4073_v8 }
0x2f10   :  { %v3389_v39 = vmul.f32 %v3649_v40, %v3380_v4  ;;  %v3442_v41 = vsub.f32 1.0, %v3441_v55  ;;  %v3449_v40 = vand.u32 2147483647, %v3439_v26 }
0x2f11   :  { %v2189_v17 = vsub.f32 1.0, %v2188_v19 }
0x2f12   :  { %v3402_v15 = vsel %vm2178_vm1, %v3389_v39, 0.0  ;;  %v3443_v37 = vmul.f32 %v4071_v53, %v3442_v41  ;;  %vm3450_vm6 = vcmp.eq.f32.partialorder %v3449_v40, 8.507059e+37 }
0x2f13   :  { %v3403_v16 = vadd.f32 %v3402_v15, %v3401_v49  ;;  %v2190_v0 = vmul.f32 %v4073_v8, %v2189_v17 }
0x2f14   :  { %v3444_v32 = vadd.f32 %v4071_v53, %v3443_v37 }
0x2f15   :  { %v3405_v20 = vadd.f32 %v3404_v52, %v3403_v16  ;;  %v3374_v23 = vpop.xlane.xlu2 %3373  ;;  %v2191_v12 = vadd.f32 %v4073_v8, %v2190_v0 }
0x2f16   :  { %v3383_v34 = vsub.f32 %v3338_v47, %v3374_v23  ;;  %v3448_v10 = vsel %vm3447_vm4, %v4071_v53, %v3444_v32 }
0x2f17   :  { %v3407_v24 = vadd.f32 %v3406_v22, %v3405_v20  ;;  %v3453_v14 = vsel %vm3450_vm6, %v3452_v27, %v3448_v10  ;;  %v2193_v26 = vsel %vm2192_vm7, %v4073_v8, %v2191_v12 }
0x2f18   :  { %v3392_v35 = vmul.f32 %v3652_v13, %v3383_v34  ;;  %v2159_v13 = vld [vmem:[%s5786_s6] sm:$0xff] }
0x2f19   :  { %v2177_v59 = vmul.f32 %v2176_v57, %v2159_v13 }
0x2f1a   :  { %v3408_v50 = vsel %vm2178_vm1, %v3392_v35, 0.0 }
0x2f1b   :  { %v3409_v31 = vadd.f32 %v3408_v50, %v3407_v24  ;;  %v2179_v29 = vsel %vm2178_vm1, %v2177_v59, 0.0 }
0x2f1c   :  { %v2180_v2 = vrot.slane %v2179_v29, 4 }
0x2f1d   :  { %v3410_v61 = vrot.slane %v3409_v31, 4 }
0x2f1e   :  { %v2181_v30 = vadd.f32 %v2180_v2, %v2179_v29 }
0x2f1f   :  { %v3411_v36 = vadd.f32 %v3410_v61, %v3409_v31 }
0x2f20   :  { %v2182_v63 = vrot.slane %v2181_v30, 2 }
0x2f21   :  { %v3412_v42 = vrot.slane %v3411_v36, 2 }
0x2f22   :  { %v2183_v6 = vadd.f32 %v2182_v63, %v2181_v30 }
0x2f23   :  { %v3413_v56 = vadd.f32 %v3412_v42, %v3411_v36 }
0x2f24   :  { %v2184_v58 = vrot.slane %v2183_v6, 1 }
0x2f25   :  { %v3414_v21 = vrot.slane %v3413_v56, 1 }
0x2f26   :  { %v2185_v18 = vadd.f32 %v2184_v58, %v2183_v6 }
0x2f27   :  { %v3415_v46 = vadd.f32 %v3414_v21, %v3413_v56 }
0x2f28   :  { %v2186_v1 = vmul.f32 0.5, %v2185_v18 }
0x2f29   :  { %v3454_v44 = vmul.f32 %v3453_v14, %v3415_v46 }
0x2f2a   :  { %v2194_v33 = vmul.f32 %v2193_v26, %v2186_v1 }
0x2f2b   :  { %3456 = vrot.lane.b32.xlu2 %v3454_v44, %s4090_s5 }
0x2f85   :  { %v3457_v28 = vpop.permute.xlu2 %3456 }
0x2f86   :  { %v3459_v25 = vsel %vm2178_vm1, %v2194_v33, %v3457_v28 }
0x2f87   :  { %3461 = vst.msk [vmem:[%s5787_s26] sm:$0x1] %vm3460_vm2, %v3459_v25 }

</bundles_post_ra>
